<compile_context>
chip_gen: v6e
topology: v6e:2x2x1
jax: 0.10.0
libtpu: 0.0.40
codegen_flags: <defaults>
</compile_context>

<pallas_src>
import functools

import jax
import jax.numpy as jnp
from jax import lax
from jax.experimental import pallas as pl
from jax.experimental.pallas import tpu as pltpu


_CONTRACT_LAST = (((1,), (1,)), ((), ()))          # contract last dim of both operands
_CONTRACT_STD = (((1,), (0,)), ((), ()))           # standard (M,K) x (K,N) contraction


def _round_up(v, m):
    return ((v + m - 1) // m) * m


def _pick_heads_per_step(num_heads, head_dim, target_width=256):
    """Pack heads so per-step matmul width ~= MXU width.

    target_width=256 matches v6e/v7x (2x256^2 MXU); on v5e (4x128^2) 128 is
    already saturating, but 256 is not harmful beyond a little extra VMEM.
    """
    hp = max(1, min(num_heads, target_width // max(1, head_dim)))
    while num_heads % hp:
        hp -= 1
    return hp


def attention_kernel(x_ref, wq_ref, wk_ref, wv_ref, wp_ref, bias_ref,
                     out_ref, vproj_ref, acc_ref, *,
                     scale, heads_per_step, head_dim, n_real):
    g = pl.program_id(1)
    num_groups = pl.num_programs(1)

    x = x_ref[0]          # (Np, Dp)   bf16
    wq = wq_ref[g]        # (HP*d, Dp) bf16  -- resident weights, dynamic group index
    wk = wk_ref[g]
    wv = wv_ref[g]
    wp = wp_ref[g]        # (HP*d, Dp) bf16  -- rows of Wproj^T for this head group

    seq = x.shape[0]      # padded sequence length (multiple of 128)

    # Group qkv projections at full MXU width HP*d, f32 accumulation.
    q = lax.dot_general(x, wq, _CONTRACT_LAST, preferred_element_type=jnp.float32)
    k = lax.dot_general(x, wk, _CONTRACT_LAST, preferred_element_type=jnp.float32)
    v = lax.dot_general(x, wv, _CONTRACT_LAST, preferred_element_type=jnp.float32)

    q = (q * scale).astype(jnp.bfloat16)      # fold softmax scale into q
    k = k.astype(jnp.bfloat16)
    v = v.astype(jnp.bfloat16)                # (Np, HP*d)

    # Mask padded key columns (only traced when padding exists).
    if n_real < seq:
        key_pad = lax.broadcasted_iota(jnp.int32, (1, seq), 1) >= n_real
    else:
        key_pad = None

    head_outs = []
    for hp in range(heads_per_step):
        lo = hp * head_dim
        qh = q[:, lo:lo + head_dim]
        kh = k[:, lo:lo + head_dim]
        vh = v[:, lo:lo + head_dim]

        # Scores (Np, Np): contract head_dim of both operands (no transpose).
        s = lax.dot_general(qh, kh, _CONTRACT_LAST,
                            preferred_element_type=jnp.float32)
        if key_pad is not None:
            s = jnp.where(key_pad, -1e30, s)

        # Max-stabilized softmax in f32; defer the 1/sum normalization.
        m = jnp.max(s, axis=-1, keepdims=True)
        e = jnp.exp(s - m)
        denom = jnp.sum(e, axis=-1, keepdims=True)

        # (Np, Np) @ (Np, d): normalize the small (Np, d) result with the EUP
        # approximate reciprocal (explicit accuracy trade-off, ~1e-3 rel).
        o = lax.dot_general(e.astype(jnp.bfloat16), vh, _CONTRACT_STD,
                            preferred_element_type=jnp.float32)
        o = o * pl.reciprocal(denom, approx=True)
        head_outs.append(o.astype(jnp.bfloat16))

    out_g = head_outs[0] if heads_per_step == 1 else jnp.concatenate(head_outs, axis=-1)

    # One wide output-projection MXU call per group covering both the attention
    # output path and the auxiliary vproj path: (2*Np, HP*d) @ (HP*d, Dp).
    stacked = jnp.concatenate([out_g, v], axis=0)
    contrib = lax.dot_general(stacked, wp, _CONTRACT_STD,
                              preferred_element_type=jnp.float32)   # (2*Np, Dp)

    @pl.when(g == 0)
    def _first():
        acc_ref[...] = contrib            # first group writes directly: no zero-fill

    @pl.when(g > 0)
    def _accum():
        acc_ref[...] += contrib

    @pl.when(g == num_groups - 1)
    def _finalize():
        acc = acc_ref[...]
        out_ref[0] = (acc[:seq] + bias_ref[...]).astype(out_ref.dtype)
        vproj_ref[0] = acc[seq:].astype(vproj_ref.dtype)


def _vmem_limit_bytes(np_, dp, hpd, num_groups, out_itemsize):
    bf16, f32 = 2, 4
    x_blk = np_ * dp * bf16 * 2                      # double-buffered input block
    weights = 4 * num_groups * hpd * dp * bf16 * 2   # resident weights (x2 headroom)
    outs = 2 * np_ * dp * out_itemsize * 2           # two outputs, double-buffered
    acc = 2 * np_ * dp * f32                         # accumulator scratch
    tmp = (3 * np_ * hpd * (f32 + bf16)              # q/k/v (f32 + bf16 copies)
           + 3 * np_ * np_ * f32                     # scores / exp temporaries
           + 3 * np_ * hpd * bf16                    # head outputs + stacked
           + 2 * np_ * dp * f32)                     # projection contribution
    est = x_blk + weights + outs + acc + 2 * tmp + (1 << 20)
    return int(max(16 << 20, min(est, 100 << 20)))


def attention_forward(x, w_qkv, w_proj, b_proj, *, num_heads,
                      heads_per_step=None, compute_dtype=jnp.bfloat16):
    b, n, dim = x.shape
    d = dim // num_heads
    scale = d ** (-0.5)
    out_dtype = x.dtype

    hp = heads_per_step or _pick_heads_per_step(num_heads, d)
    hpd = hp * d
    num_groups = num_heads // hp

    b_proj = jnp.reshape(b_proj, (1, dim))

    # qkv rows are ordered (qkv, head, head_dim); Wproj^T rows are the proj
    # input features in (head, head_dim) order.
    wq = w_qkv[0 * dim:1 * dim]
    wk = w_qkv[1 * dim:2 * dim]
    wv = w_qkv[2 * dim:3 * dim]
    wpT = w_proj.T                                   # (dim_in, dim_out)

    # Pad model dim to a multiple of 128 (lane-dense stores / aligned MXU lanes)
    # and sequence to a multiple of 128 (aligned scores / concatenates). Zero
    # padding keeps the math exact; padded key columns are masked in-kernel.
    dp = _round_up(dim, 128)
    np_ = _round_up(n, 128)
    pad_d = dp - dim
    pad_n = np_ - n
    if pad_d or pad_n:
        x = jnp.pad(x, ((0, 0), (0, pad_n), (0, pad_d)))
    if pad_d:
        wq = jnp.pad(wq, ((0, 0), (0, pad_d)))
        wk = jnp.pad(wk, ((0, 0), (0, pad_d)))
        wv = jnp.pad(wv, ((0, 0), (0, pad_d)))
        wpT = jnp.pad(wpT, ((0, 0), (0, pad_d)))
        b_proj = jnp.pad(b_proj, ((0, 0), (0, pad_d)))

    # Per-group weight blocks with a leading group axis (kernel indexes wq_ref[g]).
    wq = wq.reshape(num_groups, hpd, dp)
    wk = wk.reshape(num_groups, hpd, dp)
    wv = wv.reshape(num_groups, hpd, dp)
    wpT = wpT.reshape(num_groups, hpd, dp)

    # bf16 operands for the MXU; accumulation stays f32 inside the kernel.
    x = x.astype(compute_dtype)
    wq = wq.astype(compute_dtype)
    wk = wk.astype(compute_dtype)
    wv = wv.astype(compute_dtype)
    wpT = wpT.astype(compute_dtype)
    b_proj = b_proj.astype(jnp.float32)

    kernel = functools.partial(attention_kernel, scale=scale,
                               heads_per_step=hp, head_dim=d, n_real=n)

    vmem_bytes = _vmem_limit_bytes(np_, dp, hpd, num_groups,
                                   jnp.dtype(out_dtype).itemsize)

    weight_spec = pl.BlockSpec((num_groups, hpd, dp), lambda bi, gi: (0, 0, 0))

    out, vproj = pl.pallas_call(
        kernel,
        out_shape=(jax.ShapeDtypeStruct((b, np_, dp), out_dtype),
                   jax.ShapeDtypeStruct((b, np_, dp), out_dtype)),
        grid_spec=pltpu.PrefetchScalarGridSpec(
            num_scalar_prefetch=0,
            grid=(b, num_groups),
            in_specs=[
                pl.BlockSpec((1, np_, dp), lambda bi, gi: (bi, 0, 0)),   # x
                weight_spec,                                             # wq (resident)
                weight_spec,                                             # wk
                weight_spec,                                             # wv
                weight_spec,                                             # Wproj^T rows
                pl.BlockSpec((1, dp), lambda bi, gi: (0, 0)),            # proj bias
            ],
            out_specs=[
                pl.BlockSpec((1, np_, dp), lambda bi, gi: (bi, 0, 0)),
                pl.BlockSpec((1, np_, dp), lambda bi, gi: (bi, 0, 0)),
            ],
            scratch_shapes=[pltpu.VMEM((2 * np_, dp), jnp.float32)],
        ),
        compiler_params=pltpu.CompilerParams(
            dimension_semantics=("parallel", "arbitrary"),
            vmem_limit_bytes=vmem_bytes),
    )(x, wq, wk, wv, wpT, b_proj)

    if pad_d or pad_n:
        out = out[:, :n, :dim]
        vproj = vproj[:, :n, :dim]
    return out, vproj


def attention_reference(x, w_qkv, w_proj, b_proj, *, num_heads):
    b, n, dim = x.shape
    d = dim // num_heads
    scale = d ** (-0.5)
    qkv = jnp.einsum('bnd,ed->bne', x, w_qkv)                       # (b, n, 3*dim)
    qkv = qkv.reshape(b, n, 3, num_heads, d)
    q = jnp.transpose(qkv[:, :, 0], (0, 2, 1, 3))                   # (b, h, n, d)
    k = jnp.transpose(qkv[:, :, 1], (0, 2, 1, 3))
    v = jnp.transpose(qkv[:, :, 2], (0, 2, 1, 3))
    dots = jnp.einsum('bhid,bhjd->bhij', q, k) * scale
    attn = jax.nn.softmax(dots, axis=-1)
    out = jnp.einsum('bhij,bhjd->bhid', attn, v)
    out = jnp.transpose(out, (0, 2, 1, 3)).reshape(b, n, dim)
    out = jnp.einsum('bnd,ed->bne', out, w_proj) + b_proj[0]
    v_flat = jnp.transpose(v, (0, 2, 1, 3)).reshape(b, n, dim)
    vproj = jnp.einsum('bnd,ed->bne', v_flat, w_proj)
    return out, vproj


if __name__ == "__main__":
    batch, seq, dim, num_heads = 2, 8, 32, 8

    key = jax.random.PRNGKey(0)
    kx, kqkv, kproj, kbias = jax.random.split(key, 4)

    x = jax.random.normal(kx, (batch, seq, dim), dtype=jnp.float32)
    # nn.Linear(dim, 3*dim, bias=False): weight shape (3*dim, dim)
    w_qkv = jax.random.normal(kqkv, (3 * dim, dim), dtype=jnp.float32) * 0.05
    # nn.Linear(dim, dim): weight (dim, dim), bias kept as (1, dim)
    w_proj = jax.random.normal(kproj, (dim, dim), dtype=jnp.float32) * 0.05
    b_proj = jax.random.normal(kbias, (1, dim), dtype=jnp.float32) * 0.05

    out, vproj = attention_forward(x, w_qkv, w_proj, b_proj, num_heads=num_heads)
    out = jax.block_until_ready(out)
    vproj = jax.block_until_ready(vproj)

    ref_out, ref_vproj = attention_reference(x, w_qkv, w_proj, b_proj, num_heads=num_heads)
    # bf16 MXU operands + approximate reciprocal -> relaxed tolerance vs f32 reference.
    assert jnp.allclose(out, ref_out, atol=2e-2, rtol=2e-2), "out mismatch"
    assert jnp.allclose(vproj, ref_vproj, atol=2e-2, rtol=2e-2), "vproj mismatch"

    print("KERNEL_OK")
</pallas_src>

<mosaic_0001>
module attributes {stable_mosaic.version = 11 : i64} {
  func.func @attention_kernel(%arg0: i32, %arg1: i32, %arg2: memref<1x128x128xbf16, #tpu.memory_space<vmem>>, %arg3: memref<1x32x128xbf16, #tpu.memory_space<vmem>>, %arg4: memref<1x32x128xbf16, #tpu.memory_space<vmem>>, %arg5: memref<1x32x128xbf16, #tpu.memory_space<vmem>>, %arg6: memref<1x32x128xbf16, #tpu.memory_space<vmem>>, %arg7: memref<1x128xf32, #tpu.memory_space<vmem>>, %arg8: memref<1x128x128xf32, #tpu.memory_space<vmem>>, %arg9: memref<1x128x128xf32, #tpu.memory_space<vmem>>, %arg10: memref<256x128xf32, #tpu.memory_space<vmem>>) attributes {dimension_semantics = [#tpu.dimension_semantics<parallel>, #tpu.dimension_semantics<arbitrary>], iteration_bounds = array<i64: 2, 1>, scalar_prefetch = 0 : i64, scratch_operands = 1 : i64, tpu.core_type = #tpu.core_type<tc>, window_params = [{transform_indices = @transform_0, window_bounds = array<i64: 1, 128, 128>}, {pipeline_mode = #tpu.pipeline_mode<synchronous>, transform_indices = @transform_1, window_bounds = array<i64: 1, 32, 128>}, {pipeline_mode = #tpu.pipeline_mode<synchronous>, transform_indices = @transform_2, window_bounds = array<i64: 1, 32, 128>}, {pipeline_mode = #tpu.pipeline_mode<synchronous>, transform_indices = @transform_3, window_bounds = array<i64: 1, 32, 128>}, {pipeline_mode = #tpu.pipeline_mode<synchronous>, transform_indices = @transform_4, window_bounds = array<i64: 1, 32, 128>}, {pipeline_mode = #tpu.pipeline_mode<synchronous>, transform_indices = @transform_5, window_bounds = array<i64: 1, 128>}, {transform_indices = @transform_6, window_bounds = array<i64: 1, 128, 128>}, {transform_indices = @transform_7, window_bounds = array<i64: 1, 128, 128>}]} {
    %c0 = arith.constant 0 : index
    %c0_0 = arith.constant 0 : index
    %c0_1 = arith.constant 0 : index
    %0 = vector.load %arg2[%c0, %c0_0, %c0_1] : memref<1x128x128xbf16, #tpu.memory_space<vmem>>, vector<1x128x128xbf16>
    %1 = vector.shape_cast %0 : vector<1x128x128xbf16> to vector<128x128xbf16>
    %2 = arith.index_cast %arg1 : i32 to index
    %c0_2 = arith.constant 0 : index
    %c0_3 = arith.constant 0 : index
    %3 = vector.load %arg3[%2, %c0_2, %c0_3] : memref<1x32x128xbf16, #tpu.memory_space<vmem>>, vector<1x32x128xbf16>
    %4 = vector.shape_cast %3 : vector<1x32x128xbf16> to vector<32x128xbf16>
    %5 = arith.index_cast %arg1 : i32 to index
    %c0_4 = arith.constant 0 : index
    %c0_5 = arith.constant 0 : index
    %6 = vector.load %arg4[%5, %c0_4, %c0_5] : memref<1x32x128xbf16, #tpu.memory_space<vmem>>, vector<1x32x128xbf16>
    %7 = vector.shape_cast %6 : vector<1x32x128xbf16> to vector<32x128xbf16>
    %8 = arith.index_cast %arg1 : i32 to index
    %c0_6 = arith.constant 0 : index
    %c0_7 = arith.constant 0 : index
    %9 = vector.load %arg5[%8, %c0_6, %c0_7] : memref<1x32x128xbf16, #tpu.memory_space<vmem>>, vector<1x32x128xbf16>
    %10 = vector.shape_cast %9 : vector<1x32x128xbf16> to vector<32x128xbf16>
    %11 = arith.index_cast %arg1 : i32 to index
    %c0_8 = arith.constant 0 : index
    %c0_9 = arith.constant 0 : index
    %12 = vector.load %arg6[%11, %c0_8, %c0_9] : memref<1x32x128xbf16, #tpu.memory_space<vmem>>, vector<1x32x128xbf16>
    %13 = vector.shape_cast %12 : vector<1x32x128xbf16> to vector<32x128xbf16>
    %cst = arith.constant dense<0.000000e+00> : vector<128x32xf32>
    %14 = tpu.matmul %1, %4, %cst {dimension_numbers = #tpu.dot_dimension_numbers<[1], [1], [0], [0], [0, 0, 1, 0], [], []>} : vector<128x128xbf16>, vector<32x128xbf16>, vector<128x32xf32> -> vector<128x32xf32>
    %cst_10 = arith.constant dense<0.000000e+00> : vector<128x32xf32>
    %15 = tpu.matmul %1, %7, %cst_10 {dimension_numbers = #tpu.dot_dimension_numbers<[1], [1], [0], [0], [0, 0, 1, 0], [], []>} : vector<128x128xbf16>, vector<32x128xbf16>, vector<128x32xf32> -> vector<128x32xf32>
    %cst_11 = arith.constant dense<0.000000e+00> : vector<128x32xf32>
    %16 = tpu.matmul %1, %10, %cst_11 {dimension_numbers = #tpu.dot_dimension_numbers<[1], [1], [0], [0], [0, 0, 1, 0], [], []>} : vector<128x128xbf16>, vector<32x128xbf16>, vector<128x32xf32> -> vector<128x32xf32>
    %cst_12 = arith.constant 5.000000e-01 : f32
    %17 = vector.broadcast %cst_12 : f32 to vector<128x32xf32>
    %18 = arith.mulf %14, %17 : vector<128x32xf32>
    %19 = arith.truncf %18 : vector<128x32xf32> to vector<128x32xbf16>
    %20 = arith.truncf %15 : vector<128x32xf32> to vector<128x32xbf16>
    %21 = arith.truncf %16 : vector<128x32xf32> to vector<128x32xbf16>
    %22 = tpu.iota {dimensions = array<i32: 1>} : vector<1x128xi32>
    %c8_i32 = arith.constant 8 : i32
    %23 = vector.broadcast %c8_i32 : i32 to vector<1x128xi32>
    %24 = arith.cmpi sge, %22, %23 : vector<1x128xi32>
    %25 = vector.extract_strided_slice %19 {offsets = [0, 0], sizes = [128, 4], strides = [1, 1]} : vector<128x32xbf16> to vector<128x4xbf16>
    %26 = vector.extract_strided_slice %20 {offsets = [0, 0], sizes = [128, 4], strides = [1, 1]} : vector<128x32xbf16> to vector<128x4xbf16>
    %27 = vector.extract_strided_slice %21 {offsets = [0, 0], sizes = [128, 4], strides = [1, 1]} : vector<128x32xbf16> to vector<128x4xbf16>
    %cst_13 = arith.constant dense<0.000000e+00> : vector<128x128xf32>
    %28 = tpu.matmul %25, %26, %cst_13 {dimension_numbers = #tpu.dot_dimension_numbers<[1], [1], [0], [0], [0, 0, 1, 0], [], []>} : vector<128x4xbf16>, vector<128x4xbf16>, vector<128x128xf32> -> vector<128x128xf32>
    %cst_14 = arith.constant -1.000000e+30 : f32
    %29 = vector.shape_cast %24 : vector<1x128xi1> to vector<1x128xi1>
    %30 = vector.broadcast %29 : vector<1x128xi1> to vector<128x128xi1>
    %31 = vector.broadcast %cst_14 : f32 to vector<128x128xf32>
    %32 = arith.select %30, %31, %28 : vector<128x128xi1>, vector<128x128xf32>
    %cst_15 = arith.constant dense<0xFF800000> : vector<128xf32>
    %33 = vector.multi_reduction <maximumf>, %32, %cst_15 [1] : vector<128x128xf32> to vector<128xf32>
    %34 = vector.shape_cast %33 : vector<128xf32> to vector<128x1xf32>
    %35 = vector.broadcast %34 : vector<128x1xf32> to vector<128x128xf32>
    %36 = arith.subf %32, %35 : vector<128x128xf32>
    %37 = math.exp %36 : vector<128x128xf32>
    %cst_16 = arith.constant dense<0.000000e+00> : vector<128xf32>
    %38 = vector.multi_reduction <add>, %37, %cst_16 [1] : vector<128x128xf32> to vector<128xf32>
    %39 = vector.shape_cast %38 : vector<128xf32> to vector<128x1xf32>
    %40 = arith.truncf %37 : vector<128x128xf32> to vector<128x128xbf16>
    %cst_17 = arith.constant dense<0.000000e+00> : vector<128x4xf32>
    %41 = tpu.matmul %40, %27, %cst_17 {dimension_numbers = #tpu.dot_dimension_numbers<[1], [0], [0], [1], [0, 0, 1, 1], [], []>} : vector<128x128xbf16>, vector<128x4xbf16>, vector<128x4xf32> -> vector<128x4xf32>
    %42 = tpu.reciprocal %39 {approx = true} : vector<128x1xf32> -> vector<128x1xf32>
    %43 = vector.broadcast %42 : vector<128x1xf32> to vector<128x4xf32>
    %44 = arith.mulf %41, %43 : vector<128x4xf32>
    %45 = arith.truncf %44 : vector<128x4xf32> to vector<128x4xbf16>
    %46 = vector.extract_strided_slice %19 {offsets = [0, 4], sizes = [128, 4], strides = [1, 1]} : vector<128x32xbf16> to vector<128x4xbf16>
    %47 = vector.extract_strided_slice %20 {offsets = [0, 4], sizes = [128, 4], strides = [1, 1]} : vector<128x32xbf16> to vector<128x4xbf16>
    %48 = vector.extract_strided_slice %21 {offsets = [0, 4], sizes = [128, 4], strides = [1, 1]} : vector<128x32xbf16> to vector<128x4xbf16>
    %cst_18 = arith.constant dense<0.000000e+00> : vector<128x128xf32>
    %49 = tpu.matmul %46, %47, %cst_18 {dimension_numbers = #tpu.dot_dimension_numbers<[1], [1], [0], [0], [0, 0, 1, 0], [], []>} : vector<128x4xbf16>, vector<128x4xbf16>, vector<128x128xf32> -> vector<128x128xf32>
    %cst_19 = arith.constant -1.000000e+30 : f32
    %50 = vector.shape_cast %24 : vector<1x128xi1> to vector<1x128xi1>
    %51 = vector.broadcast %50 : vector<1x128xi1> to vector<128x128xi1>
    %52 = vector.broadcast %cst_19 : f32 to vector<128x128xf32>
    %53 = arith.select %51, %52, %49 : vector<128x128xi1>, vector<128x128xf32>
    %cst_20 = arith.constant dense<0xFF800000> : vector<128xf32>
    %54 = vector.multi_reduction <maximumf>, %53, %cst_20 [1] : vector<128x128xf32> to vector<128xf32>
    %55 = vector.shape_cast %54 : vector<128xf32> to vector<128x1xf32>
    %56 = vector.broadcast %55 : vector<128x1xf32> to vector<128x128xf32>
    %57 = arith.subf %53, %56 : vector<128x128xf32>
    %58 = math.exp %57 : vector<128x128xf32>
    %cst_21 = arith.constant dense<0.000000e+00> : vector<128xf32>
    %59 = vector.multi_reduction <add>, %58, %cst_21 [1] : vector<128x128xf32> to vector<128xf32>
    %60 = vector.shape_cast %59 : vector<128xf32> to vector<128x1xf32>
    %61 = arith.truncf %58 : vector<128x128xf32> to vector<128x128xbf16>
    %cst_22 = arith.constant dense<0.000000e+00> : vector<128x4xf32>
    %62 = tpu.matmul %61, %48, %cst_22 {dimension_numbers = #tpu.dot_dimension_numbers<[1], [0], [0], [1], [0, 0, 1, 1], [], []>} : vector<128x128xbf16>, vector<128x4xbf16>, vector<128x4xf32> -> vector<128x4xf32>
    %63 = tpu.reciprocal %60 {approx = true} : vector<128x1xf32> -> vector<128x1xf32>
    %64 = vector.broadcast %63 : vector<128x1xf32> to vector<128x4xf32>
    %65 = arith.mulf %62, %64 : vector<128x4xf32>
    %66 = arith.truncf %65 : vector<128x4xf32> to vector<128x4xbf16>
    %67 = vector.extract_strided_slice %19 {offsets = [0, 8], sizes = [128, 4], strides = [1, 1]} : vector<128x32xbf16> to vector<128x4xbf16>
    %68 = vector.extract_strided_slice %20 {offsets = [0, 8], sizes = [128, 4], strides = [1, 1]} : vector<128x32xbf16> to vector<128x4xbf16>
    %69 = vector.extract_strided_slice %21 {offsets = [0, 8], sizes = [128, 4], strides = [1, 1]} : vector<128x32xbf16> to vector<128x4xbf16>
    %cst_23 = arith.constant dense<0.000000e+00> : vector<128x128xf32>
    %70 = tpu.matmul %67, %68, %cst_23 {dimension_numbers = #tpu.dot_dimension_numbers<[1], [1], [0], [0], [0, 0, 1, 0], [], []>} : vector<128x4xbf16>, vector<128x4xbf16>, vector<128x128xf32> -> vector<128x128xf32>
    %cst_24 = arith.constant -1.000000e+30 : f32
    %71 = vector.shape_cast %24 : vector<1x128xi1> to vector<1x128xi1>
    %72 = vector.broadcast %71 : vector<1x128xi1> to vector<128x128xi1>
    %73 = vector.broadcast %cst_24 : f32 to vector<128x128xf32>
    %74 = arith.select %72, %73, %70 : vector<128x128xi1>, vector<128x128xf32>
    %cst_25 = arith.constant dense<0xFF800000> : vector<128xf32>
    %75 = vector.multi_reduction <maximumf>, %74, %cst_25 [1] : vector<128x128xf32> to vector<128xf32>
    %76 = vector.shape_cast %75 : vector<128xf32> to vector<128x1xf32>
    %77 = vector.broadcast %76 : vector<128x1xf32> to vector<128x128xf32>
    %78 = arith.subf %74, %77 : vector<128x128xf32>
    %79 = math.exp %78 : vector<128x128xf32>
    %cst_26 = arith.constant dense<0.000000e+00> : vector<128xf32>
    %80 = vector.multi_reduction <add>, %79, %cst_26 [1] : vector<128x128xf32> to vector<128xf32>
    %81 = vector.shape_cast %80 : vector<128xf32> to vector<128x1xf32>
    %82 = arith.truncf %79 : vector<128x128xf32> to vector<128x128xbf16>
    %cst_27 = arith.constant dense<0.000000e+00> : vector<128x4xf32>
    %83 = tpu.matmul %82, %69, %cst_27 {dimension_numbers = #tpu.dot_dimension_numbers<[1], [0], [0], [1], [0, 0, 1, 1], [], []>} : vector<128x128xbf16>, vector<128x4xbf16>, vector<128x4xf32> -> vector<128x4xf32>
    %84 = tpu.reciprocal %81 {approx = true} : vector<128x1xf32> -> vector<128x1xf32>
    %85 = vector.broadcast %84 : vector<128x1xf32> to vector<128x4xf32>
    %86 = arith.mulf %83, %85 : vector<128x4xf32>
    %87 = arith.truncf %86 : vector<128x4xf32> to vector<128x4xbf16>
    %88 = vector.extract_strided_slice %19 {offsets = [0, 12], sizes = [128, 4], strides = [1, 1]} : vector<128x32xbf16> to vector<128x4xbf16>
    %89 = vector.extract_strided_slice %20 {offsets = [0, 12], sizes = [128, 4], strides = [1, 1]} : vector<128x32xbf16> to vector<128x4xbf16>
    %90 = vector.extract_strided_slice %21 {offsets = [0, 12], sizes = [128, 4], strides = [1, 1]} : vector<128x32xbf16> to vector<128x4xbf16>
    %cst_28 = arith.constant dense<0.000000e+00> : vector<128x128xf32>
    %91 = tpu.matmul %88, %89, %cst_28 {dimension_numbers = #tpu.dot_dimension_numbers<[1], [1], [0], [0], [0, 0, 1, 0], [], []>} : vector<128x4xbf16>, vector<128x4xbf16>, vector<128x128xf32> -> vector<128x128xf32>
    %cst_29 = arith.constant -1.000000e+30 : f32
    %92 = vector.shape_cast %24 : vector<1x128xi1> to vector<1x128xi1>
    %93 = vector.broadcast %92 : vector<1x128xi1> to vector<128x128xi1>
    %94 = vector.broadcast %cst_29 : f32 to vector<128x128xf32>
    %95 = arith.select %93, %94, %91 : vector<128x128xi1>, vector<128x128xf32>
    %cst_30 = arith.constant dense<0xFF800000> : vector<128xf32>
    %96 = vector.multi_reduction <maximumf>, %95, %cst_30 [1] : vector<128x128xf32> to vector<128xf32>
    %97 = vector.shape_cast %96 : vector<128xf32> to vector<128x1xf32>
    %98 = vector.broadcast %97 : vector<128x1xf32> to vector<128x128xf32>
    %99 = arith.subf %95, %98 : vector<128x128xf32>
    %100 = math.exp %99 : vector<128x128xf32>
    %cst_31 = arith.constant dense<0.000000e+00> : vector<128xf32>
    %101 = vector.multi_reduction <add>, %100, %cst_31 [1] : vector<128x128xf32> to vector<128xf32>
    %102 = vector.shape_cast %101 : vector<128xf32> to vector<128x1xf32>
    %103 = arith.truncf %100 : vector<128x128xf32> to vector<128x128xbf16>
    %cst_32 = arith.constant dense<0.000000e+00> : vector<128x4xf32>
    %104 = tpu.matmul %103, %90, %cst_32 {dimension_numbers = #tpu.dot_dimension_numbers<[1], [0], [0], [1], [0, 0, 1, 1], [], []>} : vector<128x128xbf16>, vector<128x4xbf16>, vector<128x4xf32> -> vector<128x4xf32>
    %105 = tpu.reciprocal %102 {approx = true} : vector<128x1xf32> -> vector<128x1xf32>
    %106 = vector.broadcast %105 : vector<128x1xf32> to vector<128x4xf32>
    %107 = arith.mulf %104, %106 : vector<128x4xf32>
    %108 = arith.truncf %107 : vector<128x4xf32> to vector<128x4xbf16>
    %109 = vector.extract_strided_slice %19 {offsets = [0, 16], sizes = [128, 4], strides = [1, 1]} : vector<128x32xbf16> to vector<128x4xbf16>
    %110 = vector.extract_strided_slice %20 {offsets = [0, 16], sizes = [128, 4], strides = [1, 1]} : vector<128x32xbf16> to vector<128x4xbf16>
    %111 = vector.extract_strided_slice %21 {offsets = [0, 16], sizes = [128, 4], strides = [1, 1]} : vector<128x32xbf16> to vector<128x4xbf16>
    %cst_33 = arith.constant dense<0.000000e+00> : vector<128x128xf32>
    %112 = tpu.matmul %109, %110, %cst_33 {dimension_numbers = #tpu.dot_dimension_numbers<[1], [1], [0], [0], [0, 0, 1, 0], [], []>} : vector<128x4xbf16>, vector<128x4xbf16>, vector<128x128xf32> -> vector<128x128xf32>
    %cst_34 = arith.constant -1.000000e+30 : f32
    %113 = vector.shape_cast %24 : vector<1x128xi1> to vector<1x128xi1>
    %114 = vector.broadcast %113 : vector<1x128xi1> to vector<128x128xi1>
    %115 = vector.broadcast %cst_34 : f32 to vector<128x128xf32>
    %116 = arith.select %114, %115, %112 : vector<128x128xi1>, vector<128x128xf32>
    %cst_35 = arith.constant dense<0xFF800000> : vector<128xf32>
    %117 = vector.multi_reduction <maximumf>, %116, %cst_35 [1] : vector<128x128xf32> to vector<128xf32>
    %118 = vector.shape_cast %117 : vector<128xf32> to vector<128x1xf32>
    %119 = vector.broadcast %118 : vector<128x1xf32> to vector<128x128xf32>
    %120 = arith.subf %116, %119 : vector<128x128xf32>
    %121 = math.exp %120 : vector<128x128xf32>
    %cst_36 = arith.constant dense<0.000000e+00> : vector<128xf32>
    %122 = vector.multi_reduction <add>, %121, %cst_36 [1] : vector<128x128xf32> to vector<128xf32>
    %123 = vector.shape_cast %122 : vector<128xf32> to vector<128x1xf32>
    %124 = arith.truncf %121 : vector<128x128xf32> to vector<128x128xbf16>
    %cst_37 = arith.constant dense<0.000000e+00> : vector<128x4xf32>
    %125 = tpu.matmul %124, %111, %cst_37 {dimension_numbers = #tpu.dot_dimension_numbers<[1], [0], [0], [1], [0, 0, 1, 1], [], []>} : vector<128x128xbf16>, vector<128x4xbf16>, vector<128x4xf32> -> vector<128x4xf32>
    %126 = tpu.reciprocal %123 {approx = true} : vector<128x1xf32> -> vector<128x1xf32>
    %127 = vector.broadcast %126 : vector<128x1xf32> to vector<128x4xf32>
    %128 = arith.mulf %125, %127 : vector<128x4xf32>
    %129 = arith.truncf %128 : vector<128x4xf32> to vector<128x4xbf16>
    %130 = vector.extract_strided_slice %19 {offsets = [0, 20], sizes = [128, 4], strides = [1, 1]} : vector<128x32xbf16> to vector<128x4xbf16>
    %131 = vector.extract_strided_slice %20 {offsets = [0, 20], sizes = [128, 4], strides = [1, 1]} : vector<128x32xbf16> to vector<128x4xbf16>
    %132 = vector.extract_strided_slice %21 {offsets = [0, 20], sizes = [128, 4], strides = [1, 1]} : vector<128x32xbf16> to vector<128x4xbf16>
    %cst_38 = arith.constant dense<0.000000e+00> : vector<128x128xf32>
    %133 = tpu.matmul %130, %131, %cst_38 {dimension_numbers = #tpu.dot_dimension_numbers<[1], [1], [0], [0], [0, 0, 1, 0], [], []>} : vector<128x4xbf16>, vector<128x4xbf16>, vector<128x128xf32> -> vector<128x128xf32>
    %cst_39 = arith.constant -1.000000e+30 : f32
    %134 = vector.shape_cast %24 : vector<1x128xi1> to vector<1x128xi1>
    %135 = vector.broadcast %134 : vector<1x128xi1> to vector<128x128xi1>
    %136 = vector.broadcast %cst_39 : f32 to vector<128x128xf32>
    %137 = arith.select %135, %136, %133 : vector<128x128xi1>, vector<128x128xf32>
    %cst_40 = arith.constant dense<0xFF800000> : vector<128xf32>
    %138 = vector.multi_reduction <maximumf>, %137, %cst_40 [1] : vector<128x128xf32> to vector<128xf32>
    %139 = vector.shape_cast %138 : vector<128xf32> to vector<128x1xf32>
    %140 = vector.broadcast %139 : vector<128x1xf32> to vector<128x128xf32>
    %141 = arith.subf %137, %140 : vector<128x128xf32>
    %142 = math.exp %141 : vector<128x128xf32>
    %cst_41 = arith.constant dense<0.000000e+00> : vector<128xf32>
    %143 = vector.multi_reduction <add>, %142, %cst_41 [1] : vector<128x128xf32> to vector<128xf32>
    %144 = vector.shape_cast %143 : vector<128xf32> to vector<128x1xf32>
    %145 = arith.truncf %142 : vector<128x128xf32> to vector<128x128xbf16>
    %cst_42 = arith.constant dense<0.000000e+00> : vector<128x4xf32>
    %146 = tpu.matmul %145, %132, %cst_42 {dimension_numbers = #tpu.dot_dimension_numbers<[1], [0], [0], [1], [0, 0, 1, 1], [], []>} : vector<128x128xbf16>, vector<128x4xbf16>, vector<128x4xf32> -> vector<128x4xf32>
    %147 = tpu.reciprocal %144 {approx = true} : vector<128x1xf32> -> vector<128x1xf32>
    %148 = vector.broadcast %147 : vector<128x1xf32> to vector<128x4xf32>
    %149 = arith.mulf %146, %148 : vector<128x4xf32>
    %150 = arith.truncf %149 : vector<128x4xf32> to vector<128x4xbf16>
    %151 = vector.extract_strided_slice %19 {offsets = [0, 24], sizes = [128, 4], strides = [1, 1]} : vector<128x32xbf16> to vector<128x4xbf16>
    %152 = vector.extract_strided_slice %20 {offsets = [0, 24], sizes = [128, 4], strides = [1, 1]} : vector<128x32xbf16> to vector<128x4xbf16>
    %153 = vector.extract_strided_slice %21 {offsets = [0, 24], sizes = [128, 4], strides = [1, 1]} : vector<128x32xbf16> to vector<128x4xbf16>
    %cst_43 = arith.constant dense<0.000000e+00> : vector<128x128xf32>
    %154 = tpu.matmul %151, %152, %cst_43 {dimension_numbers = #tpu.dot_dimension_numbers<[1], [1], [0], [0], [0, 0, 1, 0], [], []>} : vector<128x4xbf16>, vector<128x4xbf16>, vector<128x128xf32> -> vector<128x128xf32>
    %cst_44 = arith.constant -1.000000e+30 : f32
    %155 = vector.shape_cast %24 : vector<1x128xi1> to vector<1x128xi1>
    %156 = vector.broadcast %155 : vector<1x128xi1> to vector<128x128xi1>
    %157 = vector.broadcast %cst_44 : f32 to vector<128x128xf32>
    %158 = arith.select %156, %157, %154 : vector<128x128xi1>, vector<128x128xf32>
    %cst_45 = arith.constant dense<0xFF800000> : vector<128xf32>
    %159 = vector.multi_reduction <maximumf>, %158, %cst_45 [1] : vector<128x128xf32> to vector<128xf32>
    %160 = vector.shape_cast %159 : vector<128xf32> to vector<128x1xf32>
    %161 = vector.broadcast %160 : vector<128x1xf32> to vector<128x128xf32>
    %162 = arith.subf %158, %161 : vector<128x128xf32>
    %163 = math.exp %162 : vector<128x128xf32>
    %cst_46 = arith.constant dense<0.000000e+00> : vector<128xf32>
    %164 = vector.multi_reduction <add>, %163, %cst_46 [1] : vector<128x128xf32> to vector<128xf32>
    %165 = vector.shape_cast %164 : vector<128xf32> to vector<128x1xf32>
    %166 = arith.truncf %163 : vector<128x128xf32> to vector<128x128xbf16>
    %cst_47 = arith.constant dense<0.000000e+00> : vector<128x4xf32>
    %167 = tpu.matmul %166, %153, %cst_47 {dimension_numbers = #tpu.dot_dimension_numbers<[1], [0], [0], [1], [0, 0, 1, 1], [], []>} : vector<128x128xbf16>, vector<128x4xbf16>, vector<128x4xf32> -> vector<128x4xf32>
    %168 = tpu.reciprocal %165 {approx = true} : vector<128x1xf32> -> vector<128x1xf32>
    %169 = vector.broadcast %168 : vector<128x1xf32> to vector<128x4xf32>
    %170 = arith.mulf %167, %169 : vector<128x4xf32>
    %171 = arith.truncf %170 : vector<128x4xf32> to vector<128x4xbf16>
    %172 = vector.extract_strided_slice %19 {offsets = [0, 28], sizes = [128, 4], strides = [1, 1]} : vector<128x32xbf16> to vector<128x4xbf16>
    %173 = vector.extract_strided_slice %20 {offsets = [0, 28], sizes = [128, 4], strides = [1, 1]} : vector<128x32xbf16> to vector<128x4xbf16>
    %174 = vector.extract_strided_slice %21 {offsets = [0, 28], sizes = [128, 4], strides = [1, 1]} : vector<128x32xbf16> to vector<128x4xbf16>
    %cst_48 = arith.constant dense<0.000000e+00> : vector<128x128xf32>
    %175 = tpu.matmul %172, %173, %cst_48 {dimension_numbers = #tpu.dot_dimension_numbers<[1], [1], [0], [0], [0, 0, 1, 0], [], []>} : vector<128x4xbf16>, vector<128x4xbf16>, vector<128x128xf32> -> vector<128x128xf32>
    %cst_49 = arith.constant -1.000000e+30 : f32
    %176 = vector.shape_cast %24 : vector<1x128xi1> to vector<1x128xi1>
    %177 = vector.broadcast %176 : vector<1x128xi1> to vector<128x128xi1>
    %178 = vector.broadcast %cst_49 : f32 to vector<128x128xf32>
    %179 = arith.select %177, %178, %175 : vector<128x128xi1>, vector<128x128xf32>
    %cst_50 = arith.constant dense<0xFF800000> : vector<128xf32>
    %180 = vector.multi_reduction <maximumf>, %179, %cst_50 [1] : vector<128x128xf32> to vector<128xf32>
    %181 = vector.shape_cast %180 : vector<128xf32> to vector<128x1xf32>
    %182 = vector.broadcast %181 : vector<128x1xf32> to vector<128x128xf32>
    %183 = arith.subf %179, %182 : vector<128x128xf32>
    %184 = math.exp %183 : vector<128x128xf32>
    %cst_51 = arith.constant dense<0.000000e+00> : vector<128xf32>
    %185 = vector.multi_reduction <add>, %184, %cst_51 [1] : vector<128x128xf32> to vector<128xf32>
    %186 = vector.shape_cast %185 : vector<128xf32> to vector<128x1xf32>
    %187 = arith.truncf %184 : vector<128x128xf32> to vector<128x128xbf16>
    %cst_52 = arith.constant dense<0.000000e+00> : vector<128x4xf32>
    %188 = tpu.matmul %187, %174, %cst_52 {dimension_numbers = #tpu.dot_dimension_numbers<[1], [0], [0], [1], [0, 0, 1, 1], [], []>} : vector<128x128xbf16>, vector<128x4xbf16>, vector<128x4xf32> -> vector<128x4xf32>
    %189 = tpu.reciprocal %186 {approx = true} : vector<128x1xf32> -> vector<128x1xf32>
    %190 = vector.broadcast %189 : vector<128x1xf32> to vector<128x4xf32>
    %191 = arith.mulf %188, %190 : vector<128x4xf32>
    %192 = arith.truncf %191 : vector<128x4xf32> to vector<128x4xbf16>
    %193 = tpu.concatenate %45, %66, %87, %108, %129, %150, %171, %192 in 1 : vector<128x4xbf16>, vector<128x4xbf16>, vector<128x4xbf16>, vector<128x4xbf16>, vector<128x4xbf16>, vector<128x4xbf16>, vector<128x4xbf16>, vector<128x4xbf16> -> vector<128x32xbf16>
    %194 = tpu.concatenate %193, %21 in 0 : vector<128x32xbf16>, vector<128x32xbf16> -> vector<256x32xbf16>
    %cst_53 = arith.constant dense<0.000000e+00> : vector<256x128xf32>
    %195 = tpu.matmul %194, %13, %cst_53 {dimension_numbers = #tpu.dot_dimension_numbers<[1], [0], [0], [1], [0, 0, 1, 1], [], []>} : vector<256x32xbf16>, vector<32x128xbf16>, vector<256x128xf32> -> vector<256x128xf32>
    %c0_i32 = arith.constant 0 : i32
    %196 = arith.cmpi eq, %arg1, %c0_i32 : i32
    %197 = arith.extui %196 : i1 to i32
    %c0_i32_54 = arith.constant 0 : i32
    %198 = arith.cmpi ne, %197, %c0_i32_54 : i32
    scf.if %198 {
      %c0_59 = arith.constant 0 : index
      %c0_60 = arith.constant 0 : index
      %205 = vector.load %arg10[%c0_59, %c0_60] : memref<256x128xf32, #tpu.memory_space<vmem>>, vector<256x128xf32>
      tpu.vector_store %arg10[%c0_59, %c0_60], %195 {strides = array<i32>} : memref<256x128xf32, #tpu.memory_space<vmem>>, vector<256x128xf32>,
    } else {
    }
    %c0_i32_55 = arith.constant 0 : i32
    %199 = arith.cmpi sgt, %arg1, %c0_i32_55 : i32
    %200 = arith.extui %199 : i1 to i32
    %c0_i32_56 = arith.constant 0 : i32
    %201 = arith.cmpi ne, %200, %c0_i32_56 : i32
    scf.if %201 {
      %c0_59 = arith.constant 0 : index
      %c0_60 = arith.constant 0 : index
      %205 = vector.load %arg10[%c0_59, %c0_60] : memref<256x128xf32, #tpu.memory_space<vmem>>, vector<256x128xf32>
      %206 = arith.addf %205, %195 : vector<256x128xf32>
      %c0_61 = arith.constant 0 : index
      %c0_62 = arith.constant 0 : index
      %207 = vector.load %arg10[%c0_61, %c0_62] : memref<256x128xf32, #tpu.memory_space<vmem>>, vector<256x128xf32>
      tpu.vector_store %arg10[%c0_61, %c0_62], %206 {strides = array<i32>} : memref<256x128xf32, #tpu.memory_space<vmem>>, vector<256x128xf32>,
    } else {
    }
    %c0_i32_57 = arith.constant 0 : i32
    %202 = arith.cmpi eq, %arg1, %c0_i32_57 : i32
    %203 = arith.extui %202 : i1 to i32
    %c0_i32_58 = arith.constant 0 : i32
    %204 = arith.cmpi ne, %203, %c0_i32_58 : i32
    scf.if %204 {
      %c0_59 = arith.constant 0 : index
      %c0_60 = arith.constant 0 : index
      %205 = vector.load %arg10[%c0_59, %c0_60] : memref<256x128xf32, #tpu.memory_space<vmem>>, vector<256x128xf32>
      %206 = vector.extract_strided_slice %205 {offsets = [0, 0], sizes = [128, 128], strides = [1, 1]} : vector<256x128xf32> to vector<128x128xf32>
      %c0_61 = arith.constant 0 : index
      %c0_62 = arith.constant 0 : index
      %207 = vector.load %arg7[%c0_61, %c0_62] : memref<1x128xf32, #tpu.memory_space<vmem>>, vector<1x128xf32>
      %208 = vector.broadcast %207 : vector<1x128xf32> to vector<128x128xf32>
      %209 = arith.addf %206, %208 : vector<128x128xf32>
      %c0_63 = arith.constant 0 : index
      %c0_64 = arith.constant 0 : index
      %c0_65 = arith.constant 0 : index
      %210 = vector.load %arg8[%c0_63, %c0_64, %c0_65] : memref<1x128x128xf32, #tpu.memory_space<vmem>>, vector<1x128x128xf32>
      %211 = vector.shape_cast %210 : vector<1x128x128xf32> to vector<128x128xf32>
      %212 = vector.shape_cast %209 : vector<128x128xf32> to vector<1x128x128xf32>
      tpu.vector_store %arg8[%c0_63, %c0_64, %c0_65], %212 {strides = array<i32>} : memref<1x128x128xf32, #tpu.memory_space<vmem>>, vector<1x128x128xf32>,
      %213 = vector.extract_strided_slice %205 {offsets = [128, 0], sizes = [128, 128], strides = [1, 1]} : vector<256x128xf32> to vector<128x128xf32>
      %c0_66 = arith.constant 0 : index
      %c0_67 = arith.constant 0 : index
      %c0_68 = arith.constant 0 : index
      %214 = vector.load %arg9[%c0_66, %c0_67, %c0_68] : memref<1x128x128xf32, #tpu.memory_space<vmem>>, vector<1x128x128xf32>
      %215 = vector.shape_cast %214 : vector<1x128x128xf32> to vector<128x128xf32>
      %216 = vector.shape_cast %213 : vector<128x128xf32> to vector<1x128x128xf32>
      tpu.vector_store %arg9[%c0_66, %c0_67, %c0_68], %216 {strides = array<i32>} : memref<1x128x128xf32, #tpu.memory_space<vmem>>, vector<1x128x128xf32>,
    } else {
    }
    return
  }
  func.func @transform_0(%arg0: i32, %arg1: i32) -> (i32, i32, i32) {
    %c0_i32 = arith.constant 0 : i32
    %c0_i32_0 = arith.constant 0 : i32
    %c0_i32_1 = arith.constant 0 : i32
    return %arg0, %c0_i32, %c0_i32_0 : i32, i32, i32
  }
  func.func @transform_1(%arg0: i32, %arg1: i32) -> (i32, i32, i32) {
    %c0_i32 = arith.constant 0 : i32
    %c0_i32_0 = arith.constant 0 : i32
    %c0_i32_1 = arith.constant 0 : i32
    %c0_i32_2 = arith.constant 0 : i32
    return %c0_i32, %c0_i32_0, %c0_i32_1 : i32, i32, i32
  }
  func.func @transform_2(%arg0: i32, %arg1: i32) -> (i32, i32, i32) {
    %c0_i32 = arith.constant 0 : i32
    %c0_i32_0 = arith.constant 0 : i32
    %c0_i32_1 = arith.constant 0 : i32
    %c0_i32_2 = arith.constant 0 : i32
    return %c0_i32, %c0_i32_0, %c0_i32_1 : i32, i32, i32
  }
  func.func @transform_3(%arg0: i32, %arg1: i32) -> (i32, i32, i32) {
    %c0_i32 = arith.constant 0 : i32
    %c0_i32_0 = arith.constant 0 : i32
    %c0_i32_1 = arith.constant 0 : i32
    %c0_i32_2 = arith.constant 0 : i32
    return %c0_i32, %c0_i32_0, %c0_i32_1 : i32, i32, i32
  }
  func.func @transform_4(%arg0: i32, %arg1: i32) -> (i32, i32, i32) {
    %c0_i32 = arith.constant 0 : i32
    %c0_i32_0 = arith.constant 0 : i32
    %c0_i32_1 = arith.constant 0 : i32
    %c0_i32_2 = arith.constant 0 : i32
    return %c0_i32, %c0_i32_0, %c0_i32_1 : i32, i32, i32
  }
  func.func @transform_5(%arg0: i32, %arg1: i32) -> (i32, i32) {
    %c0_i32 = arith.constant 0 : i32
    %c0_i32_0 = arith.constant 0 : i32
    %c0_i32_1 = arith.constant 0 : i32
    return %c0_i32, %c0_i32_0 : i32, i32
  }
  func.func @transform_6(%arg0: i32, %arg1: i32) -> (i32, i32, i32) {
    %c0_i32 = arith.constant 0 : i32
    %c0_i32_0 = arith.constant 0 : i32
    %c0_i32_1 = arith.constant 0 : i32
    return %arg0, %c0_i32, %c0_i32_0 : i32, i32, i32
  }
  func.func @transform_7(%arg0: i32, %arg1: i32) -> (i32, i32, i32) {
    %c0_i32 = arith.constant 0 : i32
    %c0_i32_0 = arith.constant 0 : i32
    %c0_i32_1 = arith.constant 0 : i32
    return %arg0, %c0_i32, %c0_i32_0 : i32, i32, i32
  }
}

</mosaic_0001>

<bundles_post_ra>
// kernel: tpu_custom_call.1
= control target key start
LH: loop header
LB: loop body
LE: loop exit
PB: predicated region body
PF: predicated region fallthrough
CT: control target
= control target key end

     0   :  { %s10847_s0 = inlined_call_operand.hbm [shape: bf16[2,128,128], index: 0, kind: input, shape index: {}]   ;;  %s10848_s1 = inlined_call_operand.hbm [shape: bf16[1,32,128], index: 1, kind: input, shape index: {}]   ;;  %s10849_s2 = inlined_call_operand.hbm [shape: bf16[1,32,128], index: 2, kind: input, shape index: {}]   ;;  %s10850_s3 = inlined_call_operand.hbm [shape: bf16[1,32,128], index: 3, kind: input, shape index: {}]   ;;  %s10851_s4 = inlined_call_operand.hbm [shape: bf16[1,32,128], index: 4, kind: input, shape index: {}]   ;;  %s10852_s5 = inlined_call_operand.vmem [shape: f32[1,128], index: 5, kind: input, shape index: {}]   ;;  %s10853_s6 = inlined_call_operand.hbm [shape: f32[2,128,128], index: 6, kind: output, shape index: {0}]   ;;  %s10854_s7 = inlined_call_operand.hbm [shape: f32[2,128,128], index: 7, kind: output, shape index: {1}]  }
   0x1   :  { %10949 = sst [smem:[#allocation195_spill]] %s10848_s1 }
   0x2   :  { %10950 = sst [smem:[#allocation196_spill]] %s10849_s2 }
   0x3   :  { %10951 = sst [smem:[#allocation197_spill]] %s10850_s3 }
   0x4   :  { %13 = vsyncpa [#allocation4], 0 }
   0x5   :  { %15 = vsyncpa [#allocation4 + $0x1], 0 }
   0x6   :  { %16 = vsyncpa [#allocation7], 0 }
   0x7   :  { %17 = vsyncpa [#allocation10], 0 }
   0x8   :  { %18 = vsyncpa [#allocation5], 0 }
   0x9   :  { %20 = vsyncpa [#allocation5 + $0x1], 0 }
   0xa   :  { %21 = vsyncpa [#allocation14], 0 }
   0xb   :  { %23 = vsyncpa [#allocation14 + $0x1], 0  ;;  %s7617_s24 = smov 0   ;;  %s7619_s25 = smov 0  }
   0xc   :  { %s7621_s26 = smov 0   ;;  %s7623_s27 = smov 0  }
   0xd   :  { %s7625_s28 = smov 0   ;;  %s7627_s29 = smov 0  }
   0xe LB: > { %s5529_s30 = sadd.s32 4294967295, %s7551_s29   ;;  %s5530_s8 = sadd.s32 4294967294, %s7551_s29   ;;  %s7551_s29 = sphi %s7627_s29, %s29_s29   ;;  %s7547_s28 = sphi %s7625_s28, %s11395_s28   ;;  %s7543_s27 = sphi %s7623_s27, %s11394_s27   ;;  %s7539_s26 = sphi %s7621_s26, %s11393_s26   ;;  %s7535_s25 = sphi %s7619_s25, %s11392_s25   ;;  %s7531_s24 = sphi %s7617_s24, %s11391_s24  }
   0xf   : > { %p61_p0 = scmp.ne.s32.totalorder %s7535_s25, %s7531_s24  ;;  %p7651_p1 = scmp.eq.s32.totalorder %s5529_s30, 0 }
  0x10   : > { %p7655_p2 = scmp.eq.s32.totalorder %s5529_s30, 1  ;;  %p196_p3 = scmp.eq.s32.totalorder %s5530_s8, 1 }
  0x11   : > { %p7661_p4 = por %p7651_p1, %p61_p0  ;;  %p5531_p5 = scmp.ge.s32.totalorder %s7551_s29, 1 }
  0x12   : > { %p7666_p6 = por %p196_p3, %p61_p0  ;;  %p229_p7 = scmp.lt.s32.totalorder %s7551_s29, 3 }
  0x13   : > { %s7553_s14 = smov [#allocation6]   ;;  %s7554_s17 = smov [#allocation9]  }
  0x14   : > { %s10955_s12 = scalar_select %p7666_p6, 1, 0 }
  0x15   : > { %p7671_p8 = pnand %p5531_p5, %p229_p7  ;;  %s241_s15 = sshll.u32 %s7553_s14, 4  ;;  %s242_s15 = int_to_ptr.vmem [resolvable:$true] %s241_s15 }
  0x16   : > { %s267_s18 = sshll.u32 %s7554_s17, 4  ;;  %s7555_s19 = smov [#allocation8]   ;;  %s268_s18 = int_to_ptr.vmem [resolvable:$true] %s267_s18 }
  0x17   : > { %p6670_p9 = pneg %p7671_p8  ;;  %s254_s20 = sshll.u32 %s7555_s19, 4  ;;  %s255_s20 = int_to_ptr.vmem [resolvable:$true] %s254_s20 }
  0x18   : > { %s7312_s21 = scalar_lea.vmem %s242_s15, 256  ;;  %p7320_p5 = scmp.lt.s32.totalorder %s242_s15, %s242_s15 }
  0x19   : > { %p7680_p11 = pnand %p6670_p9, %p7651_p1  ;;  %p7313_p13 = scmp.ne.s32.totalorder %s242_s15, %s7312_s21 }
  0x1a   : > { %p7321_p7 = scmp.lt.s32.totalorder %s7312_s21, %s7312_s21 }
  0x1b   : > { %p7303_p12 = pneg %p7680_p11 }
  0x1c   : > { %p7322_p9 = por %p7321_p7, %p7320_p5 }
  0x1d   : > { %p7315_p0 = pnand %p7313_p13, %p7303_p12 }
  0x1f   : > { %p7316_p3 = pneg %p7315_p0 }
  0x21   : > { %p7323_p10 = pnand %p7322_p9, %p7316_p3 }
  0x23   : > { %7326 = shalt.err (!%p7323_p10)
}
  0x24   : > { %s10855_s22 = smov 64   ;;  %s10856_s23 = smov 4  }
  0x25   : > { %s10958_s1 = sld [smem:[#allocation195_spill]]  ;;  %s7338_s14 = scalar_lea.vmem %s268_s18, 256 }
  0x26   : > { %p7339_p13 = scmp.ne.s32.totalorder %s268_s18, %s7338_s14  ;;  %p7346_p3 = scmp.lt.s32.totalorder %s268_s18, %s268_s18 }
  0x27   : > { %p7347_p10 = scmp.lt.s32.totalorder %s7338_s14, %s7338_s14 }
  0x28   : > { %p7341_p0 = pnand %p7339_p13, %p7303_p12 }
  0x29   : > { %p7348_p7 = por %p7347_p10, %p7346_p3 }
  0x2a   : > { %p7342_p5 = pneg %p7341_p0 }
  0x2b   : > { %6673 = dma.hbm_to_vmem [thread:$0]  (!%p7680_p11), %s10958_s1, 256, %s242_s15, [#allocation7], %s10855_s22, %s10855_s22, %s10856_s23  }
  0x2c   : > { %p7349_p9 = pnand %p7348_p7, %p7342_p5 }
  0x2e   : > { %7352 = shalt.err (!%p7349_p9)
}
  0x2f   : > { %s10959_s3 = sld [smem:[#allocation197_spill]]  ;;  %s7364_s15 = scalar_lea.vmem %s255_s20, 256 }
  0x30   : > { %p7365_p6 = scmp.ne.s32.totalorder %s255_s20, %s7364_s15  ;;  %p7372_p3 = scmp.lt.s32.totalorder %s255_s20, %s255_s20 }
  0x31   : > { %p7373_p5 = scmp.lt.s32.totalorder %s7364_s15, %s7364_s15 }
  0x32   : > { %p7367_p13 = pnand %p7365_p6, %p7303_p12 }
  0x33   : > { %p7374_p10 = por %p7373_p5, %p7372_p3 }
  0x34   : > { %p7368_p0 = pneg %p7367_p13 }
  0x35   : > { %6679 = dma.hbm_to_vmem [thread:$0]  (!%p7680_p11), %s10959_s3, 256, %s268_s18, [#allocation10], %s10855_s22, %s10855_s22, %s10856_s23  }
  0x36   : > { %p7375_p7 = pnand %p7374_p10, %p7368_p0 }
  0x38   : > { %7378 = shalt.err (!%p7375_p7)
}
  0x39   : > { %s10960_s2 = sld [smem:[#allocation196_spill]]  ;;  %s7558_s18 = smov [#allocation11]  }
  0x3a   : > { %s280_s8 = sshll.u32 %s7558_s18, 4  ;;  %s281_s8 = int_to_ptr.vmem [resolvable:$true] %s280_s8 }
  0x3b   : > { %s7390_s14 = scalar_lea.vmem %s281_s8, 256  ;;  %p7398_p0 = scmp.lt.s32.totalorder %s281_s8, %s281_s8 }
  0x3c   : > { %p7391_p6 = scmp.ne.s32.totalorder %s281_s8, %s7390_s14  ;;  %p7399_p3 = scmp.lt.s32.totalorder %s7390_s14, %s7390_s14 }
  0x3e   : > { %p7393_p9 = pnand %p7391_p6, %p7303_p12  ;;  %p7400_p5 = por %p7399_p3, %p7398_p0 }
  0x3f   : > { %6676 = dma.hbm_to_vmem [thread:$0]  (!%p7680_p11), %s10960_s2, 256, %s255_s20, [#allocation7], %s10855_s22, %s10855_s22, %s10856_s23  }
  0x40   : > { %p7394_p13 = pneg %p7393_p9 }
  0x42   : > { %p7401_p10 = pnand %p7400_p5, %p7394_p13 }
  0x44   : > { %7404 = shalt.err (!%p7401_p10)
}
  0x45   : > { %6682 = dma.hbm_to_vmem [thread:$0]  (!%p7680_p11), %s10851_s4, 256, %s281_s8, [#allocation10], %s10855_s22, %s10855_s22, %s10856_s23  }
  0x46   : > { %s41_s19 = sadd.s32 1, %s7547_s28  ;;  %s48_s16 = sadd.s32 1, %s7539_s26 }
  0x47   : > { %p43_p12 = scmp.ge.s32.totalorder %s41_s19, 2  ;;  %p55_p7 = scmp.ne.s32.totalorder %s7539_s26, %s7535_s25 }
  0x48   : > { %p56_p6 = scmp.eq.s32.totalorder %s7551_s29, 0  ;;  %p6698_p9 = scmp.lt.s32.totalorder %s7551_s29, 2 }
  0x49   : > { %s11397_s19 = smov (%p43_p12, %s41_s19), 0  ;;  %p7740_p0 = por %p7655_p2, %p55_p7 }
  0x4a   : > { %p57_p13 = por %p56_p6, %p55_p7  ;;  %s45_s21 = ssub.s32 %s7547_s28, %s11397_s19 }
  0x4b   : > { %s297_s30 = sand.u32 1, %s7539_s26   ;;  %p46_p3 = scmp.eq.s32.totalorder %s45_s21, 0 }
  0x4c   : > { %s5537_s18 = sshll.u32 %s297_s30, 6  ;;  %s5653_s8 = sshll.u32 %s7547_s28, 10 }
  0x4d   : > { %s7749_s14 = scalar_select %p46_p3, %s7539_s26, %s48_s16  }
  0x4e   : > { %s307_s22 = scalar_lea.hbm %s10847_s0, %s5653_s8  ;;  %s301_s23 = scalar_lea.vmem [#allocation3], %s5537_s18 }
  0x4f   : > { %s308_s1 = sshll.u32 %s301_s23, 4  ;;  %p7756_p11 = pnand %p6698_p9, %p57_p13  ;;  %s309_s1 = int_to_ptr.vmem [resolvable:$true] %s308_s1 }
  0x50   : > { %s298_s2 = scalar_lea.sflag [#allocation4], %s297_s30  ;;  %s7418_s21 = scalar_lea.vmem %s309_s1, 1024 }
  0x51   : > { %p7407_p2 = pneg %p7756_p11  ;;  %p7419_p5 = scmp.ne.s32.totalorder %s309_s1, %s7418_s21 }
  0x52   : > { %s7559_s16 = smov [#allocation3]  }
  0x53   : > { %p7421_p10 = pnand %p7419_p5, %p7407_p2  ;;  %s7423_s3 = sshll.u32 %s7559_s16, 4  ;;  %s7424_s3 = int_to_ptr.vmem [resolvable:$false] %s7423_s3 }
  0x54   : > { %s7425_s8 = scalar_lea.vmem %s7424_s3, 2048  ;;  %p7426_p7 = scmp.lt.s32.totalorder %s309_s1, %s7424_s3 }
  0x55   : > { %p7422_p12 = pneg %p7421_p10  ;;  %p7427_p6 = scmp.lt.s32.totalorder %s7425_s8, %s7418_s21 }
  0x57   : > { %p7428_p3 = por %p7427_p6, %p7426_p7 }
  0x59   : > { %p7429_p9 = pnand %p7428_p3, %p7422_p12 }
  0x5b   : > { %7432 = shalt.err (!%p7429_p9)
}
  0x5c   : > { %s10963_s23 = smov 4   ;;  %s10964_s18 = smov 64  }
  0x5d   : > { %6686 = dma.hbm_to_vmem [thread:$0]  (!%p7756_p11), %s307_s22, 1024, %s309_s1, %s298_s2, %s10964_s18, %s10964_s18, %s10963_s23  }
  0x5e   : > { %320 = sbr.rel (%p7671_p8) target bundleno = 4491 (0x118b), region = 44 }
  0x63   : > { %s7770_s30 = sand.u32 1, %s7535_s25  }
  0x64   : > { %s5541_s3 = sshll.u32 %s7770_s30, 6  ;;  %s323_s20 = scalar_lea.sflag [#allocation4], %s7770_s30 }
  0x65   : > { %s7774_s17 = scalar_lea.vmem [#allocation3], %s5541_s3 }
  0x66   : > { %7510 = dma.done.wait (%p7661_p4), %s323_s20, 1024  }
  0x67   : > { %7512 = vsyncadd (%p7661_p4), %s323_s20, 4294966272 }
  0x68   : > { %7514 = dma.done.wait (%p7651_p1), [#allocation7], 512  }
  0x69   : > { %7516 = vsyncadd (%p7651_p1), [#allocation7], 4294966784 }
  0x6a   : > { %7518 = dma.done.wait (%p7651_p1), [#allocation10], 512  }
  0x6b   : > { %7520 = vsyncadd (%p7651_p1), [#allocation10], 4294966784  ;;  %v6773_v0 = vld [vmem:[#allocation8 + $0x8] sm:$0xff]   ;;  %v6774_v1 = vld [vmem:[#allocation8] sm:$0xff]   ;;  %vm838_vm0 = vcmask 31744   ;;  %s7560_s1 = smov 124  }
  0x6c   : > { %5980 = vmatprep.subr.bf16.mxu1 %v6773_v0  ;;  %v6775_v2 = vld [vmem:[%s7774_s17] sm:$0xff]   ;;  %v6783_v3 = vld [vmem:[#allocation6 + $0x8] sm:$0xff]   ;;  %v6777_v6 = vld [vmem:[%s7774_s17 + $0x10] sm:$0xff]   ;;  %s7561_s2 = smov 120   ;;  %s7562_s9 = smov 116   ;;  %vm4793_vm2 = vcmask 64512  }
  0x6d   : > { %5981 = vmatpush3.bf16.xpose.msra.mxu1 %v6773_v0  ;;  %5984 = vmatprep.mubr.bf16.mxu1 %v6775_v2  ;;  %v6784_v4 = vld [vmem:[#allocation6] sm:$0xff]   ;;  %v6776_v5 = vld [vmem:[%s7774_s17 + $0x8] sm:$0xff]   ;;  %v6778_v8 = vld [vmem:[%s7774_s17 + $0x18] sm:$0xff]   ;;  %s7563_s11 = smov 112   ;;  %s7564_s13 = smov 108   ;;  %vm4810_vm3 = vcmask 97280  }
  0x6e   : > { %5982 = vmatprep.subr.bf16.mxu1 %v6774_v1  ;;  %5964 = vmatprep.mubr.bf16.mxu0 %v6775_v2  ;;  %v6785_v7 = vld [vmem:[#allocation9 + $0x8] sm:$0xff]   ;;  %v6779_v9 = vld [vmem:[%s7774_s17 + $0x20] sm:$0xff]   ;;  %v6781_v12 = vld [vmem:[%s7774_s17 + $0x30] sm:$0xff]   ;;  %s7565_s22 = smov 104   ;;  %s7566_s10 = smov 100   ;;  %vm4827_vm4 = vcmask 130048  }
  0x6f   : > { %5960 = vmatprep.subr.bf16.mxu0 %v6783_v3  ;;  %v6786_v10 = vld [vmem:[#allocation9] sm:$0xff]   ;;  %v6780_v11 = vld [vmem:[%s7774_s17 + $0x28] sm:$0xff]   ;;  %v6782_v13 = vld [vmem:[%s7774_s17 + $0x38] sm:$0xff]   ;;  %s7567_s21 = smov 4   ;;  %s7568_s16 = smov 8   ;;  %vm4844_vm5 = vcmask 162816  }
  0x70   : > { %5961 = vmatpush3.bf16.xpose.msra.mxu0 %v6783_v3  ;;  %s7569_s8 = smov 12   ;;  %s7570_s23 = smov 16   ;;  %vm4861_vm6 = vcmask 195584   ;;  %vm4878_vm7 = vcmask 228352   ;;  %vm4907_vm8 = vcmask 261120  }
  0x71   : > { %5962 = vmatprep.subr.bf16.mxu0 %v6784_v4  ;;  %s7571_s18 = smov 20   ;;  %s7572_s3 = smov 24  }
  0x72   : > { %s7573_s20 = smov 28   ;;  %s5546_s17 = sshll.u32 %s7770_s30, 7 }
  0x75   : > { %5983 = vmatpush3.bf16.xpose.msra.mxu1 %v6774_v1 }
  0x78   : > { %5963 = vmatpush3.bf16.xpose.msra.mxu0 %v6784_v4 }
  0x79   : > { %6000 = vmatprep.subr.bf16.mxu0 %v6785_v7 }
  0x7c   : > { %5985 = vmatmul.mubr.bf16.vlgmr.msra.gmra.mxu1 %v6776_v5 }
  0x7d   : > { %5988 = vmatprep.mubr.bf16.mxu1 %v6777_v6 }
  0x7f   : > { %5965 = vmatmul.mubr.bf16.vlgmr.msra.gmra.mxu0 %v6776_v5 }
  0x80   : > { %5968 = vmatprep.mubr.bf16.mxu0 %v6777_v6  ;;  %6001 = vmatpush3.bf16.xpose.msra.mxu0 %v6785_v7 }
  0x81   : > { %6002 = vmatprep.subr.bf16.mxu0 %v6786_v10 }
  0x84   : > { %5989 = vmatmul.mubr.bf16.gmra.mxu1 %v6778_v8 }
  0x85   : > { %5992 = vmatprep.mubr.bf16.mxu1 %v6779_v9 }
  0x87   : > { %5969 = vmatmul.mubr.bf16.gmra.mxu0 %v6778_v8 }
  0x88   : > { %5972 = vmatprep.mubr.bf16.mxu0 %v6779_v9  ;;  %6003 = vmatpush3.bf16.xpose.msra.mxu0 %v6786_v10 }
  0x8c   : > { %5993 = vmatmul.mubr.bf16.gmra.mxu1 %v6780_v11 }
  0x8d   : > { %5996 = vmatprep.mubr.bf16.mxu1 %v6781_v12 }
  0x8f   : > { %5973 = vmatmul.mubr.bf16.gmra.mxu0 %v6780_v11 }
  0x90   : > { %5976 = vmatprep.mubr.bf16.mxu0 %v6781_v12 }
  0x94   : > { %5997 = vmatmul.mubr.bf16.gmra.mxu1 %v6782_v13 }
  0x97   : > { %5977 = vmatmul.mubr.bf16.gmra.mxu0 %v6782_v13 }
  0x98   : > { %6004 = vmatprep.mubr.bf16.mxu0 %v6775_v2 }
  0x9f   : > { %6005 = vmatmul.mubr.bf16.vlgmr.msra.gmra.mxu0 %v6776_v5 }
  0xa0   : > { %6008 = vmatprep.mubr.bf16.mxu0 %v6777_v6 }
  0xa7   : > { %6009 = vmatmul.mubr.bf16.gmra.mxu0 %v6778_v8 }
  0xa8   : > { %6012 = vmatprep.mubr.bf16.mxu0 %v6779_v9 }
  0xaf   : > { %6013 = vmatmul.mubr.bf16.gmra.mxu0 %v6780_v11 }
  0xb0   : > { %6016 = vmatprep.mubr.bf16.mxu0 %v6781_v12 }
  0xb7   : > { %6017 = vmatmul.mubr.bf16.gmra.mxu0 %v6782_v13 }
 0x13c   : > { %v5986_v14 = vpop.f32.mrf.mxu1 }
 0x13e   : > { %v7796_v15 = vpop.f32.mrf.mxu1 }
 0x13f   : > { %v5966_v21 = vpop.f32.mrf.mxu0 }
 0x140   : > { %v5987_v16 = vpop.f32.mrf.mxu1  ;;  %v797_v24 = vmul.f32 0.5, %v5966_v21 }
 0x141   : > { %v7798_v17 = vpack.c.bf16 %v5987_v16, %v5986_v14  ;;  %v514_v23 = vpop.f32.mrf.mxu0 }
 0x142   : > { %v7800_v18 = vpop.f32.mrf.mxu1  ;;  %v795_v27 = vmul.f32 0.5, %v514_v23 }
 0x143   : > { %v5967_v26 = vpop.f32.mrf.mxu0 }
 0x144   : > { %v7802_v19 = vpop.f32.mrf.mxu1  ;;  %v798_v28 = vmul.f32 0.5, %v5967_v26 }
 0x145   : > { %v517_v30 = vpop.f32.mrf.mxu0 }
 0x146   : > { %v7804_v20 = vpop.f32.mrf.mxu1  ;;  %v7810_v31 = vpack.c.bf16 %v798_v28, %v797_v24  ;;  %v796_v32 = vmul.f32 0.5, %v517_v30 }
 0x147   : > { %v5970_v34 = vpop.f32.mrf.mxu0 }
 0x148   : > { %v7806_v22 = vpop.f32.mrf.mxu1  ;;  %v7812_v35 = vpack.c.bf16 %v796_v32, %v795_v27  ;;  %v801_v39 = vmul.f32 0.5, %v5970_v34  ;;  %v867_v34 = vsel %vm838_vm0, %v7798_v17, 0 }
 0x149   : > { %v7814_v37 = vpop.f32.mrf.mxu0  ;;  %v7864_v12 = vpack.c.bf16 %v7806_v22, %v7802_v19 }
 0x14a   : > { %v7808_v25 = vpop.f32.mrf.mxu1  ;;  %6036 = vmatprep.mubr.msk.bf16.mxu1 %vm838_vm0, %v7812_v35 }
 0x14b   : > { %v5971_v41 = vpop.f32.mrf.mxu0  ;;  %v7872_v24 = vpack.c.bf16 %v7808_v25, %v7804_v20  ;;  %v873_v26 = vsel %vm838_vm0, %v7864_v12, 0 }
 0x14c   : > { %v5994_v29 = vpop.f32.mrf.mxu1  ;;  %v802_v42 = vmul.f32 0.5, %v5971_v41 }
 0x14d   : > { %v7822_v44 = vpop.f32.mrf.mxu0 }
 0x14e   : > { %v655_v33 = vpop.f32.mrf.mxu1  ;;  %v7824_v45 = vpack.c.bf16 %v802_v42, %v801_v39  ;;  %v800_v41 = vmul.f32 0.5, %v7822_v44 }
 0x14f   : > { %v5974_v47 = vpop.f32.mrf.mxu0 }
 0x150   : > { %v5995_v36 = vpop.f32.mrf.mxu1  ;;  %v805_v51 = vmul.f32 0.5, %v5974_v47 }
 0x151   : > { %v7816_v38 = vpack.c.bf16 %v5995_v36, %v5994_v29  ;;  %v7826_v49 = vpop.f32.mrf.mxu0  ;;  %v870_v29 = vsel %vm838_vm0, %v7872_v24, 0 }
 0x152   : > { %v658_v40 = vpop.f32.mrf.mxu1 }
 0x153   : > { %1301 = vrot.lane.b32.xlu0 %v7816_v38, %s7560_s1  ;;  %v5975_v53 = vpop.f32.mrf.mxu0  ;;  %v7856_v6 = vpack.c.bf16 %v658_v40, %v655_v33  ;;  %v879_v7 = vsel %vm838_vm0, %v7816_v38, 0  ;;  %v7894_v33 = vpack.c.bf16 %v7800_v18, %v7796_v15  ;;  %v799_v40 = vmul.f32 0.5, %v7814_v37 }
 0x154   : > { %v5998_v43 = vpop.f32.mrf.mxu1  ;;  %v806_v56 = vmul.f32 0.5, %v5975_v53  ;;  %v803_v37 = vmul.f32 0.5, %v7826_v49 }
 0x155   : > { %v7838_v57 = vpop.f32.mrf.mxu0  ;;  %v876_v13 = vsel %vm838_vm0, %v7856_v6, 0  ;;  %v864_v15 = vsel %vm838_vm0, %v7894_v33, 0 }
 0x156   : > { %v671_v46 = vpop.f32.mrf.mxu1  ;;  %v7844_v58 = vpack.c.bf16 %v806_v56, %v805_v51  ;;  %v804_v44 = vmul.f32 0.5, %v7838_v57 }
 0x157   : > { %v5978_v59 = vpop.f32.mrf.mxu0 }
 0x158   : > { %v5999_v48 = vpop.f32.mrf.mxu1  ;;  %v809_v61 = vmul.f32 0.5, %v5978_v59  ;;  %v7933_v47 = vpack.c.bf16 %v804_v44, %v803_v37 }
 0x159   : > { %v7828_v50 = vpack.c.bf16 %v5999_v48, %v5998_v43  ;;  %v7846_v60 = vpop.f32.mrf.mxu0  ;;  %v7919_v43 = vpack.c.bf16 %v800_v41, %v799_v40 }
 0x15a   : > { %v674_v52 = vpop.f32.mrf.mxu1  ;;  %v807_v48 = vmul.f32 0.5, %v7846_v60 }
 0x15b   : > { %v7830_v54 = vpack.c.bf16 %v674_v52, %v671_v46  ;;  %1305 = vrot.lane.b32.xlu0 %v7828_v50, %s7560_s1  ;;  %6584 = vmatprep.subr.msk.bf16.mxu1 %vm838_vm0, %v7828_v50  ;;  %v885_v55 = vsel %vm838_vm0, %v7828_v50, 0  ;;  %v5979_v62 = vpop.f32.mrf.mxu0 }
 0x15c   : > { %6021 = vmatpush3.bf16.xpose.msra.mxu1 %v885_v55  ;;  %v810_v0 = vmul.f32 0.5, %v5979_v62  ;;  %v835_v55 = vlaneseq }
 0x15d   : > { %1303 = vrot.lane.b32.xlu1 %v7830_v54, %s7560_s1  ;;  %6585 = vmatprep.subr.msk.bf16.mxu1 %vm838_vm0, %v7830_v54  ;;  %v882_v63 = vsel %vm838_vm0, %v7830_v54, 0  ;;  %v7850_v1 = vpop.f32.mrf.mxu0 }
 0x15e   : > { %v7854_v2 = vpack.c.bf16 %v810_v0, %v809_v61  ;;  %v808_v49 = vmul.f32 0.5, %v7850_v1  ;;  %v7956_v56 = vand.u32 127, %v835_v55 }
 0x15f   : > { %v6006_v3 = vpop.f32.mrf.mxu0 }
 0x160   : > { %v7942_v51 = vpack.c.bf16 %v808_v49, %v807_v48  ;;  %vm837_vm1 = vcmp.ge.s32.totalorder %v7956_v56, 8 }
 0x161   : > { %v732_v4 = vpop.f32.mrf.mxu0 }
 0x163   : > { %v6007_v5 = vpop.f32.mrf.mxu0 }
 0x164   : > { %6023 = vmatpush3.bf16.xpose.msra.mxu1 %v882_v63  ;;  %v7916_v42 = vpack.c.bf16 %v6007_v5, %v6006_v3 }
 0x165   : > { %6586 = vmatprep.subr.msk.bf16.mxu1 %vm838_vm0, %v7816_v38  ;;  %v735_v8 = vpop.f32.mrf.mxu0 }
 0x166   : > { %10971 = vst [vmem:[#allocation26_spill] sm:$0xff] %v7916_v42  ;;  %v7922_v46 = vpack.c.bf16 %v735_v8, %v732_v4 }
 0x167   : > { %v6010_v9 = vpop.f32.mrf.mxu0 }
 0x168   : > { %10972 = vst [vmem:[#allocation27_spill] sm:$0xff] %v7922_v46 }
 0x169   : > { %v748_v10 = vpop.f32.mrf.mxu0 }
 0x16b   : > { %v6011_v11 = vpop.f32.mrf.mxu0 }
 0x16c   : > { %6025 = vmatpush3.bf16.xpose.msra.mxu1 %v879_v7  ;;  %v7904_v39 = vpack.c.bf16 %v6011_v11, %v6010_v9 }
 0x16d   : > { %6587 = vmatprep.subr.msk.bf16.mxu1 %vm838_vm0, %v7856_v6  ;;  %v751_v14 = vpop.f32.mrf.mxu0 }
 0x16e   : > { %10969 = vst [vmem:[#allocation24_spill] sm:$0xff] %v7904_v39  ;;  %v7910_v18 = vpack.c.bf16 %v751_v14, %v748_v10 }
 0x16f   : > { %v6014_v16 = vpop.f32.mrf.mxu0 }
 0x170   : > { %10970 = vst [vmem:[#allocation25_spill] sm:$0xff] %v7910_v18 }
 0x171   : > { %v764_v21 = vpop.f32.mrf.mxu0 }
 0x173   : > { %v6015_v23 = vpop.f32.mrf.mxu0 }
 0x174   : > { %6027 = vmatpush3.bf16.xpose.msra.mxu1 %v876_v13  ;;  %v7888_v25 = vpack.c.bf16 %v6015_v23, %v6014_v16 }
 0x175   : > { %6588 = vmatprep.subr.msk.bf16.mxu1 %vm838_vm0, %v7864_v12  ;;  %v767_v19 = vpop.f32.mrf.mxu0 }
 0x176   : > { %10967 = vst [vmem:[#allocation22_spill] sm:$0xff] %v7888_v25  ;;  %v7898_v36 = vpack.c.bf16 %v767_v19, %v764_v21 }
 0x177   : > { %v6018_v22 = vpop.f32.mrf.mxu0 }
 0x178   : > { %10968 = vst [vmem:[#allocation23_spill] sm:$0xff] %v7898_v36 }
 0x179   : > { %v780_v27 = vpop.f32.mrf.mxu0 }
 0x17b   : > { %v6019_v28 = vpop.f32.mrf.mxu0 }
 0x17c   : > { %6029 = vmatpush3.bf16.xpose.msra.mxu1 %v873_v26  ;;  %v7880_v30 = vpack.c.bf16 %v6019_v28, %v6018_v22 }
 0x17d   : > { %6589 = vmatprep.subr.msk.bf16.mxu1 %vm838_vm0, %v7872_v24  ;;  %v783_v32 = vpop.f32.mrf.mxu0 }
 0x17e   : > { %10965 = vst [vmem:[#allocation20_spill] sm:$0xff] %v7880_v30  ;;  %6052 = vmatprep.subr.bf16.mxu0 %v7880_v30  ;;  %v7885_v20 = vpack.c.bf16 %v783_v32, %v780_v27 }
 0x17f   : > { %6053 = vmatpush3.bf16.msra.mxu0 %v7880_v30 }
 0x180   : > { %10966 = vst [vmem:[#allocation21_spill] sm:$0xff] %v7885_v20  ;;  %6054 = vmatprep.subr.bf16.mxu0 %v7885_v20 }
 0x183   : > { %6055 = vmatpush3.bf16.msra.mxu0 %v7885_v20 }
 0x184   : > { %6031 = vmatpush3.bf16.xpose.msra.mxu1 %v870_v29  ;;  %6056 = vmatprep.subr.bf16.mxu0 %v7888_v25 }
 0x185   : > { %6590 = vmatprep.subr.msk.bf16.mxu1 %vm838_vm0, %v7798_v17 }
 0x187   : > { %6057 = vmatpush3.bf16.msra.mxu0 %v7888_v25 }
 0x188   : > { %6058 = vmatprep.subr.bf16.mxu0 %v7898_v36 }
 0x18b   : > { %6059 = vmatpush3.bf16.msra.mxu0 %v7898_v36 }
 0x18c   : > { %6033 = vmatpush3.bf16.xpose.msra.mxu1 %v867_v34  ;;  %6060 = vmatprep.subr.bf16.mxu0 %v7904_v39 }
 0x18d   : > { %6591 = vmatprep.subr.msk.bf16.mxu1 %vm838_vm0, %v7894_v33 }
 0x18f   : > { %6061 = vmatpush3.bf16.msra.mxu0 %v7904_v39 }
 0x190   : > { %6062 = vmatprep.subr.bf16.mxu0 %v7910_v18 }
 0x193   : > { %6063 = vmatpush3.bf16.msra.mxu0 %v7910_v18 }
 0x194   : > { %6035 = vmatpush3.bf16.xpose.msra.mxu1 %v864_v15  ;;  %6064 = vmatprep.subr.bf16.mxu0 %v7916_v42 }
 0x197   : > { %6065 = vmatpush3.bf16.msra.mxu0 %v7916_v42 }
 0x198   : > { %6066 = vmatprep.subr.bf16.mxu0 %v7922_v46 }
 0x19b   : > { %6037 = vmatmul.mubr.msk.bf16.vlgmr.msra.gmra.mxu1 %vm838_vm0, %v7810_v31  ;;  %6067 = vmatpush3.bf16.msra.mxu0 %v7922_v46 }
 0x19c   : > { %6040 = vmatprep.mubr.msk.bf16.mxu1 %vm838_vm0, %v7919_v43 }
 0x1a3   : > { %6041 = vmatmul.mubr.msk.bf16.gmra.mxu1 %vm838_vm0, %v7824_v45 }
 0x1a4   : > { %6044 = vmatprep.mubr.msk.bf16.mxu1 %vm838_vm0, %v7933_v47 }
 0x1ab   : > { %6045 = vmatmul.mubr.msk.bf16.gmra.mxu1 %vm838_vm0, %v7844_v58 }
 0x1ac   : > { %6048 = vmatprep.mubr.msk.bf16.mxu1 %vm838_vm0, %v7942_v51 }
 0x1b3   : > { %6049 = vmatmul.mubr.msk.bf16.gmra.mxu1 %vm838_vm0, %v7854_v2 }
 0x1c5   : > { %v7950_v52 = vpop.permute.xlu0 %1301 }
 0x1cd   : > { %v7952_v53 = vpop.permute.xlu0 %1305 }
 0x1ce   : > { %6592 = vmatprep.subr.msk.bf16.mxu0 %vm838_vm0, %v7952_v53 }
 0x1cf   : > { %v1304_v37 = vpop.permute.xlu1 %1303 }
 0x25b   : > { %v6038_v57 = vpop.f32.mrf.mxu1 }
 0x25c   : > { %v7961_v59 = vsel %vm837_vm1, -1e+30, %v6038_v57 }
 0x25d   : > { %1006 = vmax.xlane.f32.xlu1 %v7961_v59  ;;  %v921_v60 = vpop.f32.mrf.mxu1 }
 0x25e   : > { %v7966_v61 = vsel %vm837_vm1, -1e+30, %v921_v60 }
 0x25f   : > { %1002 = vmax.xlane.f32.xlu0 %v7966_v61  ;;  %v6039_v62 = vpop.f32.mrf.mxu1 }
 0x260   : > { %v7971_v63 = vsel %vm837_vm1, -1e+30, %v6039_v62 }
 0x261   : > { %1008 = vmax.xlane.f32.xlu1 %v7971_v63  ;;  %v924_v0 = vpop.f32.mrf.mxu1 }
 0x262   : > { %v7976_v1 = vsel %vm837_vm1, -1e+30, %v924_v0 }
 0x263   : > { %1004 = vmax.xlane.f32.xlu0 %v7976_v1  ;;  %v6042_v3 = vpop.f32.mrf.mxu1 }
 0x264   : > { %v7981_v4 = vsel %vm837_vm1, -1e+30, %v6042_v3 }
 0x265   : > { %1014 = vmax.xlane.f32.xlu1 %v7981_v4  ;;  %v937_v5 = vpop.f32.mrf.mxu1 }
 0x266   : > { %v7986_v7 = vsel %vm837_vm1, -1e+30, %v937_v5 }
 0x267   : > { %v6043_v8 = vpop.f32.mrf.mxu1 }
 0x268   : > { %v7991_v10 = vsel %vm837_vm1, -1e+30, %v6043_v8 }
 0x269   : > { %1010 = vmax.xlane.f32.xlu1 %v7986_v7  ;;  %v940_v9 = vpop.f32.mrf.mxu1 }
 0x26a   : > { %v7996_v14 = vsel %vm837_vm1, -1e+30, %v940_v9 }
 0x26b   : > { %v6046_v11 = vpop.f32.mrf.mxu1 }
 0x26c   : > { %v8030_v15 = vsel %vm837_vm1, -1e+30, %v6046_v11 }
 0x26d   : > { %1016 = vmax.xlane.f32.xlu1 %v7991_v10  ;;  %v953_v13 = vpop.f32.mrf.mxu1 }
 0x26e   : > { %v8037_v40 = vsel %vm837_vm1, -1e+30, %v953_v13 }
 0x26f   : > { %v6047_v16 = vpop.f32.mrf.mxu1 }
 0x270   : > { %v8044_v41 = vsel %vm837_vm1, -1e+30, %v6047_v16 }
 0x271   : > { %1012 = vmax.xlane.f32.xlu1 %v7996_v14  ;;  %v956_v21 = vpop.f32.mrf.mxu1 }
 0x272   : > { %v8001_v23 = vsel %vm837_vm1, -1e+30, %v956_v21 }
 0x273   : > { %v6050_v26 = vpop.f32.mrf.mxu1 }
 0x274   : > { %v8006_v19 = vsel %vm837_vm1, -1e+30, %v6050_v26 }
 0x275   : > { %1020 = vmax.xlane.f32.xlu1 %v8001_v23  ;;  %v969_v22 = vpop.f32.mrf.mxu1 }
 0x276   : > { %v8013_v27 = vsel %vm837_vm1, -1e+30, %v969_v22 }
 0x277   : > { %v6051_v28 = vpop.f32.mrf.mxu1 }
 0x278   : > { %v8018_v29 = vsel %vm837_vm1, -1e+30, %v6051_v28 }
 0x279   : > { %1299 = vrot.lane.b32.xlu0 %v7856_v6, %s7560_s1  ;;  %1030 = vmax.xlane.f32.xlu1 %v8006_v19  ;;  %v972_v32 = vpop.f32.mrf.mxu1 }
 0x27a   : > { %v8023_v34 = vsel %vm837_vm1, -1e+30, %v972_v32 }
 0x27d   : > { %1026 = vmax.xlane.f32.xlu1 %v8013_v27 }
 0x281   : > { %1032 = vmax.xlane.f32.xlu1 %v8018_v29 }
 0x285   : > { %1028 = vmax.xlane.f32.xlu1 %v8023_v34 }
 0x296   : > { %1297 = vrot.lane.b32.xlu1 %v7864_v12, %s7560_s1 }
 0x298   : > { %1022 = vmax.xlane.f32.xlu0 %v8030_v15 }
 0x29a   : > { %1269 = vrot.lane.b32.xlu1 %v7810_v31, %s7560_s1 }
 0x29c   : > { %1018 = vmax.xlane.f32.xlu0 %v8037_v40 }
 0x29e   : > { %1273 = vrot.lane.b32.xlu1 %v7824_v45, %s7560_s1 }
 0x2a0   : > { %1024 = vmax.xlane.f32.xlu0 %v8044_v41 }
 0x2a2   : > { %1277 = vrot.lane.b32.xlu1 %v7844_v58, %s7560_s1 }
 0x2a6   : > { %1281 = vrot.lane.b32.xlu1 %v7854_v2, %s7560_s1 }
 0x2aa   : > { %1608 = vrot.lane.b32.xlu1 %v7885_v20, %s7560_s1 }
 0x2ae   : > { %1600 = vrot.lane.b32.xlu1 %v7910_v18, %s7560_s1 }
 0x2b2   : > { %1596 = vrot.lane.b32.xlu1 %v7922_v46, %s7560_s1 }
 0x2b6   : > { %1295 = vrot.lane.b32.xlu0 %v7872_v24, %s7560_s1  ;;  %1785 = vrot.lane.b32.xlu1 %v7830_v54, %s7561_s2 }
 0x2ba   : > { %1293 = vrot.lane.b32.xlu0 %v7798_v17, %s7560_s1 }
 0x2be   : > { %1291 = vrot.lane.b32.xlu0 %v7894_v33, %s7560_s1 }
 0x2c2   : > { %1267 = vrot.lane.b32.xlu0 %v7812_v35, %s7560_s1 }
 0x2c6   : > { %1271 = vrot.lane.b32.xlu0 %v7919_v43, %s7560_s1 }
 0x2ca   : > { %1275 = vrot.lane.b32.xlu0 %v7933_v47, %s7560_s1 }
 0x2ce   : > { %1279 = vrot.lane.b32.xlu0 %v7942_v51, %s7560_s1 }
 0x2d2   : > { %1610 = vrot.lane.b32.xlu0 %v7880_v30, %s7560_s1 }
 0x2d6   : > { %1606 = vrot.lane.b32.xlu0 %v7888_v25, %s7560_s1 }
 0x2da   : > { %1604 = vrot.lane.b32.xlu0 %v7898_v36, %s7560_s1 }
 0x2de   : > { %1602 = vrot.lane.b32.xlu0 %v7904_v39, %s7560_s1 }
 0x2e2   : > { %1598 = vrot.lane.b32.xlu0 %v7916_v42, %s7560_s1 }
 0x2e6   : > { %v1007_v44 = vpop.xlane.xlu1 %1006  ;;  %1787 = vrot.lane.b32.xlu0 %v7828_v50, %s7561_s2 }
 0x2e7   : > { %v1036_v55 = vsub.f32 %v7961_v59, %v1007_v44 }
 0x2e8   : > { %v1003_v48 = vpop.xlane.xlu0 %1002 }
 0x2e9   : > { %v1034_v49 = vsub.f32 %v7966_v61, %v1003_v48  ;;  %v1054_v8 = vmul.f32 1.442695, %v1036_v55 }
 0x2ea   : > { %v1009_v57 = vpop.xlane.xlu1 %1008 }
 0x2eb   : > { %v1050_v60 = vmul.f32 1.442695, %v1034_v49  ;;  %v1037_v62 = vsub.f32 %v7971_v63, %v1009_v57 }
 0x2ec   : > { %v1005_v0 = vpop.xlane.xlu0 %1004 }
 0x2ed   : > { %v1056_v3 = vmul.f32 1.442695, %v1037_v62  ;;  %v1035_v5 = vsub.f32 %v7976_v1, %v1005_v0  ;;  %6789 = vpow2.f32 %v1050_v60  ;;  %v1350_v0 = vsel %vm838_vm0, %v1304_v37, 0 }
 0x2ee   : > { %v1015_v9 = vpop.xlane.xlu1 %1014 }
 0x2ef   : > { %v1052_v11 = vmul.f32 1.442695, %v1035_v5  ;;  %6791 = vpow2.f32 %v1056_v3  ;;  %v1040_v21 = vsub.f32 %v7981_v4, %v1015_v9 }
 0x2f1   : > { %6793 = vpow2.f32 %v1052_v11  ;;  %v1062_v32 = vmul.f32 1.442695, %v1040_v21 }
 0x2f2   : > { %6795 = vpow2.f32 %v1054_v8  ;;  %v1011_v13 = vpop.xlane.xlu1 %1010 }
 0x2f3   : > { %v1038_v61 = vsub.f32 %v7986_v7, %v1011_v13  ;;  %v1300_v13 = vpop.permute.xlu0 %1299 }
 0x2f5   : > { %v1058_v63 = vmul.f32 1.442695, %v1038_v61 }
 0x2f6   : > { %v1017_v16 = vpop.xlane.xlu1 %1016 }
 0x2f7   : > { %v1041_v59 = vsub.f32 %v7991_v10, %v1017_v16  ;;  %6797 = vpow2.f32 %v1058_v63  ;;  %v1344_v16 = vsel %vm838_vm0, %v1300_v13, 0 }
 0x2f9   : > { %v1064_v26 = vmul.f32 1.442695, %v1041_v59 }
 0x2fa   : > { %v1013_v22 = vpop.xlane.xlu1 %1012  ;;  %v8093_v28 = vpop.eup %6789 }
 0x2fb   : > { %v1039_v1 = vsub.f32 %v7996_v14, %v1013_v22  ;;  %10973 = vst [vmem:[#allocation28_spill] sm:$0xff] %v8093_v28  ;;  %6799 = vpow2.f32 %v1064_v26  ;;  %v1353_v14 = vsel %vm838_vm0, %v7952_v53, 0 }
 0x2fc   : > { %v8095_v44 = vpop.eup %6791 }
 0x2fd   : > { %10974 = vst [vmem:[#allocation29_spill] sm:$0xff] %v8095_v44  ;;  %v1060_v48 = vmul.f32 1.442695, %v1039_v1 }
 0x2fe   : > { %v8097_v49 = vpop.eup %6793  ;;  %v1021_v7 = vpop.xlane.xlu1 %1020 }
 0x2ff   : > { %10975 = vst [vmem:[#allocation30_spill] sm:$0xff] %v8097_v49  ;;  %v8099_v55 = vpop.eup %6795  ;;  %6801 = vpow2.f32 %v1060_v48  ;;  %v1114_v4 = vpack.c.bf16 %v8097_v49, %v8093_v28  ;;  %v1043_v21 = vsub.f32 %v8001_v23, %v1021_v7 }
 0x300   : > { %10976 = vst [vmem:[#allocation31_spill] sm:$0xff] %v8099_v55  ;;  %6803 = vpow2.f32 %v1062_v32  ;;  %v1115_v10 = vpack.c.bf16 %v8095_v44, %v8099_v55 }
 0x301   : > { %6068 = vmatprep.mubr.bf16.mxu0 %v1114_v4 }
 0x302   : > { %6069 = vmatmul.mubr.bf16.vlgmr.msra.gmra.mxu0 %v1115_v10  ;;  %v1031_v57 = vpop.xlane.xlu1 %1030 }
 0x303   : > { %6085 = vmatpush3.bf16.xpose.msra.mxu0 %v1353_v14 }
 0x304   : > { %6593 = vmatprep.subr.msk.bf16.mxu0 %vm838_vm0, %v1304_v37  ;;  %v8108_v62 = vpop.eup %6797  ;;  %v1347_v37 = vsel %vm838_vm0, %v7950_v52, 0 }
 0x305   : > { %10977 = vst [vmem:[#allocation32_spill] sm:$0xff] %v8108_v62 }
 0x306   : > { %v1027_v60 = vpop.xlane.xlu1 %1026 }
 0x307   : > { %v1046_v4 = vsub.f32 %v8013_v27, %v1027_v60 }
 0x308   : > { %v8111_v3 = vpop.eup %6799 }
 0x309   : > { %10978 = vst [vmem:[#allocation33_spill] sm:$0xff] %v8111_v3  ;;  %v1074_v7 = vmul.f32 1.442695, %v1046_v4 }
 0x30a   : > { %v1033_v11 = vpop.xlane.xlu1 %1032 }
 0x30b   : > { %6087 = vmatpush3.bf16.xpose.msra.mxu0 %v1350_v0 }
 0x30c   : > { %v8113_v5 = vpop.eup %6801  ;;  %6594 = vmatprep.subr.msk.bf16.mxu0 %vm838_vm0, %v7950_v52  ;;  %v1068_v52 = vmul.f32 1.442695, %v1043_v21 }
 0x30d   : > { %10979 = vst [vmem:[#allocation34_spill] sm:$0xff] %v8113_v5  ;;  %v8117_v8 = vpop.eup %6803  ;;  %v1116_v53 = vpack.c.bf16 %v8113_v5, %v8108_v62 }
 0x30e   : > { %10980 = vst [vmem:[#allocation35_spill] sm:$0xff] %v8117_v8  ;;  %v1117_v9 = vpack.c.bf16 %v8111_v3, %v8117_v8  ;;  %v1029_v61 = vpop.xlane.xlu1 %1028  ;;  %6805 = vpow2.f32 %v1068_v52 }
 0x30f   : > { %6072 = vmatprep.mubr.bf16.mxu0 %v1116_v53  ;;  %v1047_v22 = vsub.f32 %v8023_v34, %v1029_v61 }
 0x310   : > { %6073 = vmatmul.mubr.bf16.gmra.mxu0 %v1117_v9  ;;  %v1049_v9 = vsub.f32 %v8018_v29, %v1033_v11 }
 0x311   : > { %v1076_v10 = vmul.f32 1.442695, %v1047_v22 }
 0x312   : > { %v1298_v59 = vpop.permute.xlu1 %1297 }
 0x313   : > { %6089 = vmatpush3.bf16.xpose.msra.mxu0 %v1347_v37  ;;  %v1341_v26 = vsel %vm838_vm0, %v1298_v59, 0  ;;  %v1048_v37 = vsub.f32 %v8006_v19, %v1031_v57 }
 0x314   : > { %6595 = vmatprep.subr.msk.bf16.mxu0 %vm838_vm0, %v1300_v13 }
 0x315   : > { %v1078_v13 = vmul.f32 1.442695, %v1048_v37 }
 0x31b   : > { %6091 = vmatpush3.bf16.xpose.msra.mxu0 %v1344_v16  ;;  %v8140_v11 = vpop.eup %6805 }
 0x31c   : > { %6596 = vmatprep.subr.msk.bf16.mxu0 %vm838_vm0, %v1298_v59  ;;  %10981 = vst [vmem:[#allocation36_spill] sm:$0xff] %v8140_v11 }
 0x321   : > { %v1023_v63 = vpop.xlane.xlu0 %1022 }
 0x322   : > { %v1044_v1 = vsub.f32 %v8030_v15, %v1023_v63 }
 0x323   : > { %6093 = vmatpush3.bf16.xpose.msra.mxu0 %v1341_v26 }
 0x324   : > { %v1070_v0 = vmul.f32 1.442695, %v1044_v1 }
 0x325   : > { %v1019_v32 = vpop.xlane.xlu0 %1018 }
 0x326   : > { %v1042_v48 = vsub.f32 %v8037_v40, %v1019_v32  ;;  %v1080_v40 = vmul.f32 1.442695, %v1049_v9 }
 0x328   : > { %v1066_v14 = vmul.f32 1.442695, %v1042_v48 }
 0x329   : > { %v1025_v53 = vpop.xlane.xlu0 %1024 }
 0x32a   : > { %6807 = vpow2.f32 %v1066_v14  ;;  %v1045_v23 = vsub.f32 %v8044_v41, %v1025_v53  ;;  %v1270_v41 = vpop.permute.xlu1 %1269 }
 0x32b   : > { %6809 = vpow2.f32 %v1076_v10 }
 0x32c   : > { %v1072_v34 = vmul.f32 1.442695, %v1045_v23  ;;  %6811 = vpow2.f32 %v1070_v0 }
 0x32d   : > { %v1296_v15 = vpop.permute.xlu0 %1295 }
 0x32e   : > { %6813 = vpow2.f32 %v1072_v34  ;;  %6597 = vmatprep.subr.msk.bf16.mxu0 %vm838_vm0, %v1296_v15  ;;  %v1338_v27 = vsel %vm838_vm0, %v1296_v15, 0  ;;  %v1274_v59 = vpop.permute.xlu1 %1273 }
 0x32f   : > { %6815 = vpow2.f32 %v1074_v7  ;;  %6095 = vmatpush3.bf16.xpose.msra.mxu0 %v1338_v27 }
 0x330   : > { %6817 = vpow2.f32 %v1080_v40 }
 0x331   : > { %v1294_v60 = vpop.permute.xlu0 %1293  ;;  %6819 = vpow2.f32 %v1078_v13 }
 0x332   : > { %6598 = vmatprep.subr.msk.bf16.mxu0 %vm838_vm0, %v1294_v60  ;;  %v1335_v19 = vsel %vm838_vm0, %v1294_v60, 0  ;;  %v1278_v4 = vpop.permute.xlu1 %1277 }
 0x335   : > { %v1292_v29 = vpop.permute.xlu0 %1291 }
 0x336   : > { %v1332_v48 = vsel %vm838_vm0, %v1292_v29, 0  ;;  %v1282_v23 = vpop.permute.xlu1 %1281 }
 0x337   : > { %v8143_v57 = vpop.eup %6807  ;;  %6097 = vmatpush3.bf16.xpose.msra.mxu0 %v1335_v19 }
 0x338   : > { %10982 = vst [vmem:[#allocation37_spill] sm:$0xff] %v8143_v57  ;;  %6599 = vmatprep.subr.msk.bf16.mxu0 %vm838_vm0, %v1292_v29  ;;  %v1118_v61 = vpack.c.bf16 %v8140_v11, %v8143_v57  ;;  %v8148_v16 = vpop.eup %6809 }
 0x339   : > { %10983 = vst [vmem:[#allocation38_spill] sm:$0xff] %v8148_v16  ;;  %v1268_v21 = vpop.permute.xlu0 %1267  ;;  %v8150_v63 = vpop.eup %6811 }
 0x33a   : > { %10984 = vst [vmem:[#allocation39_spill] sm:$0xff] %v8150_v63  ;;  %6076 = vmatprep.mubr.bf16.mxu0 %v1118_v61  ;;  %v1609_v34 = vpop.permute.xlu1 %1608 }
 0x33b   : > { %v8152_v26 = vpop.eup %6813 }
 0x33c   : > { %10985 = vst [vmem:[#allocation40_spill] sm:$0xff] %v8152_v26  ;;  %v8154_v22 = vpop.eup %6815  ;;  %v1119_v52 = vpack.c.bf16 %v8152_v26, %v8150_v63 }
 0x33d   : > { %10986 = vst [vmem:[#allocation41_spill] sm:$0xff] %v8154_v22  ;;  %v1272_v1 = vpop.permute.xlu0 %1271  ;;  %v1120_v32 = vpack.c.bf16 %v8148_v16, %v8154_v22  ;;  %v8161_v10 = vpop.eup %6817 }
 0x33e   : > { %6077 = vmatmul.mubr.bf16.gmra.mxu0 %v1119_v52  ;;  %10987 = vst [vmem:[#allocation42_spill] sm:$0xff] %v8161_v10  ;;  %v8163_v0 = vpop.eup %6819  ;;  %v1601_v40 = vpop.permute.xlu1 %1600 }
 0x33f   : > { %6080 = vmatprep.mubr.bf16.mxu0 %v1120_v32  ;;  %6099 = vmatpush3.bf16.xpose.msra.mxu0 %v1332_v48  ;;  %10988 = vst [vmem:[#allocation43_spill] sm:$0xff] %v8163_v0  ;;  %v1121_v53 = vpack.c.bf16 %v8161_v10, %v8163_v0 }
 0x341   : > { %v1276_v14 = vpop.permute.xlu0 %1275 }
 0x342   : > { %v1597_v13 = vpop.permute.xlu1 %1596 }
 0x345   : > { %v1280_v7 = vpop.permute.xlu0 %1279 }
 0x346   : > { %6081 = vmatmul.mubr.bf16.gmra.mxu0 %v1121_v53 }
 0x347   : > { %6100 = vmatprep.mubr.msk.bf16.mxu0 %vm838_vm0, %v1268_v21 }
 0x349   : > { %v1611_v9 = vpop.permute.xlu0 %1610 }
 0x34a   : > { %6116 = vmatprep.subr.bf16.mxu1 %v1611_v9 }
 0x34b   : > { %6117 = vmatpush3.bf16.msra.mxu1 %v1611_v9 }
 0x34c   : > { %6118 = vmatprep.subr.bf16.mxu1 %v1609_v34 }
 0x34d   : > { %v1607_v15 = vpop.permute.xlu0 %1606 }
 0x34e   : > { %6101 = vmatmul.mubr.msk.bf16.vlgmr.msra.gmra.mxu0 %vm838_vm0, %v1270_v41 }
 0x34f   : > { %6104 = vmatprep.mubr.msk.bf16.mxu0 %vm838_vm0, %v1272_v1  ;;  %6119 = vmatpush3.bf16.msra.mxu1 %v1609_v34 }
 0x350   : > { %6120 = vmatprep.subr.bf16.mxu1 %v1607_v15 }
 0x351   : > { %v1605_v37 = vpop.permute.xlu0 %1604 }
 0x353   : > { %6121 = vmatpush3.bf16.msra.mxu1 %v1607_v15 }
 0x354   : > { %6122 = vmatprep.subr.bf16.mxu1 %v1605_v37 }
 0x355   : > { %v1603_v27 = vpop.permute.xlu0 %1602 }
 0x356   : > { %6105 = vmatmul.mubr.msk.bf16.gmra.mxu0 %vm838_vm0, %v1274_v59 }
 0x357   : > { %6108 = vmatprep.mubr.msk.bf16.mxu0 %vm838_vm0, %v1276_v14  ;;  %6123 = vmatpush3.bf16.msra.mxu1 %v1605_v37 }
 0x358   : > { %6124 = vmatprep.subr.bf16.mxu1 %v1603_v27 }
 0x359   : > { %v1599_v60 = vpop.permute.xlu0 %1598 }
 0x35b   : > { %6125 = vmatpush3.bf16.msra.mxu1 %v1603_v27 }
 0x35c   : > { %6126 = vmatprep.subr.bf16.mxu1 %v1601_v40 }
 0x35d   : > { %v8175_v41 = vpop.permute.xlu0 %1787 }
 0x35e   : > { %6109 = vmatmul.mubr.msk.bf16.gmra.mxu0 %vm838_vm0, %v1278_v4 }
 0x35f   : > { %6112 = vmatprep.mubr.msk.bf16.mxu0 %vm838_vm0, %v1280_v7  ;;  %6127 = vmatpush3.bf16.msra.mxu1 %v1601_v40 }
 0x360   : > { %6128 = vmatprep.subr.bf16.mxu1 %v1599_v60 }
 0x363   : > { %6129 = vmatpush3.bf16.msra.mxu1 %v1599_v60 }
 0x364   : > { %6130 = vmatprep.subr.bf16.mxu1 %v1597_v13 }
 0x366   : > { %6113 = vmatmul.mubr.msk.bf16.gmra.mxu0 %vm838_vm0, %v1282_v23 }
 0x367   : > { %6131 = vmatpush3.bf16.msra.mxu1 %v1597_v13 }
 0x368   : > { %6600 = vmatprep.subr.msk.bf16.mxu1 %vm838_vm0, %v8175_v41 }
 0x3c2   : > { %v8179_v29 = vpop.f32.mrf.mxu0 }
 0x3c3   : > { %10989 = vst [vmem:[#allocation44_spill] sm:$0xff] %v8179_v29 }
 0x3c4   : > { %v8181_v19 = vpop.f32.mrf.mxu0 }
 0x3c5   : > { %10990 = vst [vmem:[#allocation45_spill] sm:$0xff] %v8181_v19 }
 0x3c6   : > { %v8183_v61 = vpop.f32.mrf.mxu0 }
 0x3c7   : > { %10991 = vst [vmem:[#allocation46_spill] sm:$0xff] %v8183_v61 }
 0x3c8   : > { %v8185_v59 = vpop.f32.mrf.mxu0 }
 0x3c9   : > { %10992 = vst [vmem:[#allocation47_spill] sm:$0xff] %v8185_v59 }
 0x3d0   : > { %v8187_v21 = vpop.f32.mrf.mxu0 }
 0x3d1   : > { %10993 = vst [vmem:[#allocation48_spill] sm:$0xff] %v8187_v21 }
 0x3d2   : > { %v8189_v52 = vpop.f32.mrf.mxu0 }
 0x3d3   : > { %10994 = vst [vmem:[#allocation49_spill] sm:$0xff] %v8189_v52 }
 0x3d4   : > { %v8191_v1 = vpop.f32.mrf.mxu0 }
 0x3d5   : > { %10995 = vst [vmem:[#allocation50_spill] sm:$0xff] %v8191_v1 }
 0x3d6   : > { %v8193_v32 = vpop.f32.mrf.mxu0 }
 0x3d7   : > { %10996 = vst [vmem:[#allocation51_spill] sm:$0xff] %v8193_v32 }
 0x3fe   : > { %v8195_v48 = vpop.f32.mrf.mxu0 }
 0x3ff   : > { %10997 = vst [vmem:[#allocation52_spill] sm:$0xff] %v8195_v48 }
 0x400   : > { %v8197_v4 = vpop.f32.mrf.mxu0 }
 0x401   : > { %10998 = vst [vmem:[#allocation53_spill] sm:$0xff] %v8197_v4 }
 0x402   : > { %v8199_v14 = vpop.f32.mrf.mxu0 }
 0x403   : > { %10999 = vst [vmem:[#allocation54_spill] sm:$0xff] %v8199_v14 }
 0x404   : > { %v8201_v53 = vpop.f32.mrf.mxu0 }
 0x405   : > { %11000 = vst [vmem:[#allocation55_spill] sm:$0xff] %v8201_v53 }
 0x406   : > { %v8203_v23 = vpop.f32.mrf.mxu0 }
 0x407   : > { %11001 = vst [vmem:[#allocation56_spill] sm:$0xff] %v8203_v23 }
 0x408   : > { %v8205_v7 = vpop.f32.mrf.mxu0 }
 0x409   : > { %11002 = vst [vmem:[#allocation57_spill] sm:$0xff] %v8205_v7 }
 0x40a   : > { %v8207_v9 = vpop.f32.mrf.mxu0 }
 0x40b   : > { %11003 = vst [vmem:[#allocation58_spill] sm:$0xff] %v8207_v9 }
 0x40c   : > { %v8209_v34 = vpop.f32.mrf.mxu0 }
 0x40d   : > { %11004 = vst [vmem:[#allocation59_spill] sm:$0xff] %v8209_v34 }
 0x40e   : > { %v6102_v15 = vpop.f32.mrf.mxu0 }
 0x40f   : > { %v8213_v37 = vsel %vm837_vm1, -1e+30, %v6102_v15 }
 0x410   : > { %1472 = vmax.xlane.f32.xlu1 %v8213_v37  ;;  %v1389_v27 = vpop.f32.mrf.mxu0 }
 0x411   : > { %v8218_v40 = vsel %vm837_vm1, -1e+30, %v1389_v27 }
 0x412   : > { %1468 = vmax.xlane.f32.xlu0 %v8218_v40  ;;  %v6103_v60 = vpop.f32.mrf.mxu0 }
 0x413   : > { %v8223_v13 = vsel %vm837_vm1, -1e+30, %v6103_v60 }
 0x414   : > { %1474 = vmax.xlane.f32.xlu1 %v8223_v13  ;;  %v1392_v9 = vpop.f32.mrf.mxu0 }
 0x415   : > { %v8228_v15 = vsel %vm837_vm1, -1e+30, %v1392_v9 }
 0x416   : > { %v6106_v23 = vpop.f32.mrf.mxu0 }
 0x417   : > { %v8239_v21 = vsel %vm837_vm1, -1e+30, %v6106_v23 }
 0x418   : > { %1470 = vmax.xlane.f32.xlu1 %v8228_v15  ;;  %v1405_v7 = vpop.f32.mrf.mxu0 }
 0x419   : > { %v8244_v52 = vsel %vm837_vm1, -1e+30, %v1405_v7 }
 0x41a   : > { %v6107_v27 = vpop.f32.mrf.mxu0 }
 0x41b   : > { %v8249_v29 = vsel %vm837_vm1, -1e+30, %v6107_v27 }
 0x41c   : > { %v1408_v60 = vpop.f32.mrf.mxu0 }
 0x41d   : > { %v8259_v23 = vsel %vm837_vm1, -1e+30, %v1408_v60 }
 0x41e   : > { %v6110_v34 = vpop.f32.mrf.mxu0 }
 0x41f   : > { %v8264_v7 = vsel %vm837_vm1, -1e+30, %v6110_v34 }
 0x420   : > { %v1421_v14 = vpop.f32.mrf.mxu0 }
 0x421   : > { %v8269_v27 = vsel %vm837_vm1, -1e+30, %v1421_v14 }
 0x422   : > { %v6111_v48 = vpop.f32.mrf.mxu0 }
 0x424   : > { %v1424_v9 = vpop.f32.mrf.mxu0 }
 0x425   : > { %v8281_v34 = vsel %vm837_vm1, -1e+30, %v1424_v9 }
 0x426   : > { %v6114_v4 = vpop.f32.mrf.mxu0 }
 0x427   : > { %v8288_v14 = vsel %vm837_vm1, -1e+30, %v6114_v4 }
 0x428   : > { %1781 = vrot.lane.b32.xlu0 %v7856_v6, %s7561_s2  ;;  %v1437_v53 = vpop.f32.mrf.mxu0 }
 0x429   : > { %1783 = vrot.lane.b32.xlu1 %v7816_v38, %s7561_s2 }
 0x42a   : > { %v6115_v1 = vpop.f32.mrf.mxu0 }
 0x42b   : > { %v8302_v60 = vsel %vm837_vm1, -1e+30, %v6115_v1  ;;  %v1786_v1 = vpop.permute.xlu1 %1785 }
 0x42c   : > { %1779 = vrot.lane.b32.xlu0 %v7864_v12, %s7561_s2  ;;  %v1440_v32 = vpop.f32.mrf.mxu0 }
 0x42d   : > { %v8254_v61 = vsel %vm837_vm1, -1e+30, %v1440_v32  ;;  %v8274_v32 = vsel %vm837_vm1, -1e+30, %v6111_v48  ;;  %v8295_v48 = vsel %vm837_vm1, -1e+30, %v1437_v53 }
 0x44b   : > { %1480 = vmax.xlane.f32.xlu0 %v8239_v21 }
 0x44d   : > { %1476 = vmax.xlane.f32.xlu1 %v8244_v52 }
 0x44f   : > { %1482 = vmax.xlane.f32.xlu0 %v8249_v29 }
 0x451   : > { %1494 = vmax.xlane.f32.xlu1 %v8254_v61 }
 0x453   : > { %1478 = vmax.xlane.f32.xlu0 %v8259_v23 }
 0x457   : > { %1488 = vmax.xlane.f32.xlu0 %v8264_v7 }
 0x45b   : > { %1484 = vmax.xlane.f32.xlu0 %v8269_v27 }
 0x45f   : > { %1490 = vmax.xlane.f32.xlu0 %v8274_v32 }
 0x462   : > { %1777 = vrot.lane.b32.xlu1 %v7872_v24, %s7561_s2 }
 0x463   : > { %1486 = vmax.xlane.f32.xlu0 %v8281_v34 }
 0x466   : > { %1763 = vrot.lane.b32.xlu1 %v7824_v45, %s7561_s2 }
 0x467   : > { %1496 = vmax.xlane.f32.xlu0 %v8288_v14 }
 0x46a   : > { %1767 = vrot.lane.b32.xlu1 %v7844_v58, %s7561_s2 }
 0x46b   : > { %1492 = vmax.xlane.f32.xlu0 %v8295_v48 }
 0x46e   : > { %1771 = vrot.lane.b32.xlu1 %v7854_v2, %s7561_s2 }
 0x46f   : > { %1498 = vmax.xlane.f32.xlu0 %v8302_v60 }
 0x472   : > { %2082 = vrot.lane.b32.xlu1 %v7885_v20, %s7561_s2 }
 0x476   : > { %2074 = vrot.lane.b32.xlu1 %v7910_v18, %s7561_s2 }
 0x47a   : > { %2070 = vrot.lane.b32.xlu1 %v7922_v46, %s7561_s2 }
 0x47e   : > { %2257 = vrot.lane.b32.xlu1 %v7816_v38, %s7562_s9 }
 0x485   : > { %1775 = vrot.lane.b32.xlu0 %v7798_v17, %s7561_s2 }
 0x489   : > { %1773 = vrot.lane.b32.xlu0 %v7894_v33, %s7561_s2 }
 0x48d   : > { %1757 = vrot.lane.b32.xlu0 %v7812_v35, %s7561_s2 }
 0x491   : > { %1759 = vrot.lane.b32.xlu0 %v7810_v31, %s7561_s2 }
 0x495   : > { %1761 = vrot.lane.b32.xlu0 %v7919_v43, %s7561_s2 }
 0x499   : > { %v1473_v4 = vpop.xlane.xlu1 %1472  ;;  %1765 = vrot.lane.b32.xlu0 %v7933_v47, %s7561_s2 }
 0x49a   : > { %v1502_v10 = vsub.f32 %v8213_v37, %v1473_v4 }
 0x49b   : > { %v1469_v53 = vpop.xlane.xlu0 %1468 }
 0x49c   : > { %v1500_v9 = vsub.f32 %v8218_v40, %v1469_v53  ;;  %v1520_v11 = vmul.f32 1.442695, %v1502_v10  ;;  %v1835_v10 = vsel %vm838_vm0, %v8175_v41, 0 }
 0x49d   : > { %v1475_v59 = vpop.xlane.xlu1 %1474  ;;  %1769 = vrot.lane.b32.xlu0 %v7942_v51, %s7561_s2 }
 0x49e   : > { %v1503_v19 = vsub.f32 %v8223_v13, %v1475_v59  ;;  %v1516_v16 = vmul.f32 1.442695, %v1500_v9 }
 0x49f   : > { %v1782_v40 = vpop.permute.xlu0 %1781 }
 0x4a0   : > { %v1522_v0 = vmul.f32 1.442695, %v1503_v19  ;;  %6821 = vpow2.f32 %v1516_v16  ;;  %v1826_v41 = vsel %vm838_vm0, %v1782_v40, 0 }
 0x4a1   : > { %v1471_v26 = vpop.xlane.xlu1 %1470  ;;  %2084 = vrot.lane.b32.xlu0 %v7880_v30, %s7561_s2 }
 0x4a2   : > { %v1501_v22 = vsub.f32 %v8228_v15, %v1471_v26  ;;  %6823 = vpow2.f32 %v1522_v0  ;;  %v1832_v0 = vsel %vm838_vm0, %v1786_v1, 0 }
 0x4a3   : > { %v1780_v13 = vpop.permute.xlu0 %1779 }
 0x4a4   : > { %v1518_v63 = vmul.f32 1.442695, %v1501_v22  ;;  %v1823_v53 = vsel %vm838_vm0, %v1780_v13, 0 }
 0x4a5   : > { %2080 = vrot.lane.b32.xlu0 %v7888_v25, %s7561_s2  ;;  %v1784_v59 = vpop.permute.xlu1 %1783 }
 0x4a6   : > { %6825 = vpow2.f32 %v1518_v63  ;;  %v1829_v37 = vsel %vm838_vm0, %v1784_v59, 0 }
 0x4a7   : > { %6827 = vpow2.f32 %v1520_v11 }
 0x4a9   : > { %2078 = vrot.lane.b32.xlu0 %v7898_v36, %s7561_s2 }
 0x4ad   : > { %2076 = vrot.lane.b32.xlu0 %v7904_v39, %s7561_s2  ;;  %v8339_v19 = vpop.eup %6821 }
 0x4af   : > { %v8343_v26 = vpop.eup %6823 }
 0x4b1   : > { %2072 = vrot.lane.b32.xlu0 %v7916_v42, %s7561_s2 }
 0x4b3   : > { %v8345_v16 = vpop.eup %6825 }
 0x4b4   : > { %v8347_v22 = vpop.eup %6827  ;;  %v1580_v11 = vpack.c.bf16 %v8345_v16, %v8339_v19 }
 0x4b5   : > { %11005 = vst [vmem:[#allocation60_spill] sm:$0xff] %v8347_v22  ;;  %2261 = vrot.lane.b32.xlu0 %v7828_v50, %s7562_s9  ;;  %v1581_v63 = vpack.c.bf16 %v8343_v26, %v8347_v22 }
 0x4b6   : > { %6132 = vmatprep.mubr.bf16.mxu1 %v1580_v11 }
 0x4b7   : > { %6133 = vmatmul.mubr.bf16.vlgmr.msra.gmra.mxu1 %v1581_v63 }
 0x4b8   : > { %6149 = vmatpush3.bf16.xpose.msra.mxu1 %v1835_v10 }
 0x4b9   : > { %6601 = vmatprep.subr.msk.bf16.mxu1 %vm838_vm0, %v1786_v1  ;;  %2259 = vrot.lane.b32.xlu0 %v7830_v54, %s7562_s9 }
 0x4bd   : > { %2255 = vrot.lane.b32.xlu0 %v7856_v6, %s7562_s9 }
 0x4c0   : > { %6151 = vmatpush3.bf16.xpose.msra.mxu1 %v1832_v0 }
 0x4c1   : > { %6602 = vmatprep.subr.msk.bf16.mxu1 %vm838_vm0, %v1784_v59 }
 0x4c8   : > { %6153 = vmatpush3.bf16.xpose.msra.mxu1 %v1829_v37 }
 0x4c9   : > { %6603 = vmatprep.subr.msk.bf16.mxu1 %vm838_vm0, %v1782_v40 }
 0x4d0   : > { %6155 = vmatpush3.bf16.xpose.msra.mxu1 %v1826_v41 }
 0x4d1   : > { %6604 = vmatprep.subr.msk.bf16.mxu1 %vm838_vm0, %v1780_v13 }
 0x4d4   : > { %v1481_v15 = vpop.xlane.xlu0 %1480 }
 0x4d5   : > { %v1506_v63 = vsub.f32 %v8239_v21, %v1481_v15 }
 0x4d6   : > { %v1477_v4 = vpop.xlane.xlu1 %1476 }
 0x4d7   : > { %v1504_v1 = vsub.f32 %v8244_v52, %v1477_v4  ;;  %v1528_v41 = vmul.f32 1.442695, %v1506_v63 }
 0x4d8   : > { %6157 = vmatpush3.bf16.xpose.msra.mxu1 %v1823_v53  ;;  %v1483_v9 = vpop.xlane.xlu0 %1482 }
 0x4d9   : > { %v1507_v11 = vsub.f32 %v8249_v29, %v1483_v9  ;;  %v1524_v0 = vmul.f32 1.442695, %v1504_v1 }
 0x4da   : > { %v1495_v10 = vpop.xlane.xlu1 %1494 }
 0x4db   : > { %v1530_v59 = vmul.f32 1.442695, %v1507_v11  ;;  %6829 = vpow2.f32 %v1524_v0 }
 0x4dc   : > { %v1479_v37 = vpop.xlane.xlu0 %1478 }
 0x4dd   : > { %v1505_v40 = vsub.f32 %v8259_v23, %v1479_v37  ;;  %6831 = vpow2.f32 %v1530_v59 }
 0x4de   : > { %v1778_v3 = vpop.permute.xlu1 %1777 }
 0x4df   : > { %v1526_v57 = vmul.f32 1.442695, %v1505_v40  ;;  %6605 = vmatprep.subr.msk.bf16.mxu1 %vm838_vm0, %v1778_v3  ;;  %v1820_v52 = vsel %vm838_vm0, %v1778_v3, 0 }
 0x4e0   : > { %v1489_v13 = vpop.xlane.xlu0 %1488  ;;  %6159 = vmatpush3.bf16.xpose.msra.mxu1 %v1820_v52 }
 0x4e1   : > { %6833 = vpow2.f32 %v1526_v57  ;;  %v1510_v23 = vsub.f32 %v8264_v7, %v1489_v13  ;;  %v1513_v7 = vsub.f32 %v8254_v61, %v1495_v10 }
 0x4e2   : > { %6835 = vpow2.f32 %v1528_v41 }
 0x4e3   : > { %v1536_v57 = vmul.f32 1.442695, %v1510_v23 }
 0x4e4   : > { %v1485_v29 = vpop.xlane.xlu0 %1484 }
 0x4e5   : > { %v1508_v21 = vsub.f32 %v8269_v27, %v1485_v29 }
 0x4e7   : > { %v1532_v1 = vmul.f32 1.442695, %v1508_v21 }
 0x4e8   : > { %v1491_v15 = vpop.xlane.xlu0 %1490  ;;  %v8378_v53 = vpop.eup %6829 }
 0x4e9   : > { %v1511_v4 = vsub.f32 %v8274_v32, %v1491_v15  ;;  %11006 = vst [vmem:[#allocation61_spill] sm:$0xff] %v8378_v53  ;;  %6837 = vpow2.f32 %v1532_v1 }
 0x4ea   : > { %v8380_v63 = vpop.eup %6831 }
 0x4eb   : > { %v1538_v9 = vmul.f32 1.442695, %v1511_v4  ;;  %11007 = vst [vmem:[#allocation62_spill] sm:$0xff] %v8380_v63 }
 0x4ec   : > { %v1487_v11 = vpop.xlane.xlu0 %1486 }
 0x4ed   : > { %v1509_v3 = vsub.f32 %v8281_v34, %v1487_v11  ;;  %6839 = vpow2.f32 %v1538_v9  ;;  %v1542_v34 = vmul.f32 1.442695, %v1513_v7 }
 0x4ee   : > { %v8383_v0 = vpop.eup %6833 }
 0x4ef   : > { %11008 = vst [vmem:[#allocation63_spill] sm:$0xff] %v8383_v0  ;;  %v8385_v59 = vpop.eup %6835  ;;  %v1534_v27 = vmul.f32 1.442695, %v1509_v3  ;;  %v1582_v32 = vpack.c.bf16 %v8383_v0, %v8378_v53 }
 0x4f0   : > { %11009 = vst [vmem:[#allocation64_spill] sm:$0xff] %v8385_v59  ;;  %v1497_v37 = vpop.xlane.xlu0 %1496  ;;  %v1583_v40 = vpack.c.bf16 %v8380_v63, %v8385_v59 }
 0x4f1   : > { %6841 = vpow2.f32 %v1534_v27  ;;  %6136 = vmatprep.mubr.bf16.mxu1 %v1582_v32  ;;  %v1514_v41 = vsub.f32 %v8288_v14, %v1497_v37 }
 0x4f2   : > { %6843 = vpow2.f32 %v1536_v57  ;;  %6137 = vmatmul.mubr.bf16.gmra.mxu1 %v1583_v40  ;;  %v1764_v40 = vpop.permute.xlu1 %1763 }
 0x4f3   : > { %6845 = vpow2.f32 %v1542_v34  ;;  %v1544_v21 = vmul.f32 1.442695, %v1514_v41 }
 0x4f4   : > { %v1493_v52 = vpop.xlane.xlu0 %1492 }
 0x4f5   : > { %v1512_v13 = vsub.f32 %v8295_v48, %v1493_v52 }
 0x4f6   : > { %v8395_v4 = vpop.eup %6837 }
 0x4f7   : > { %v1540_v29 = vmul.f32 1.442695, %v1512_v13  ;;  %11010 = vst [vmem:[#allocation65_spill] sm:$0xff] %v8395_v4 }
 0x4f8   : > { %v1499_v15 = vpop.xlane.xlu0 %1498 }
 0x4f9   : > { %6847 = vpow2.f32 %v1540_v29  ;;  %v1515_v61 = vsub.f32 %v8302_v60, %v1499_v15 }
 0x4fa   : > { %6849 = vpow2.f32 %v1544_v21  ;;  %v8397_v1 = vpop.eup %6839  ;;  %v1768_v21 = vpop.permute.xlu1 %1767 }
 0x4fb   : > { %v1546_v10 = vmul.f32 1.442695, %v1515_v61  ;;  %11011 = vst [vmem:[#allocation66_spill] sm:$0xff] %v8397_v1 }
 0x4fc   : > { %v1776_v23 = vpop.permute.xlu0 %1775 }
 0x4fd   : > { %6851 = vpow2.f32 %v1546_v10  ;;  %6606 = vmatprep.subr.msk.bf16.mxu1 %vm838_vm0, %v1776_v23  ;;  %v1817_v14 = vsel %vm838_vm0, %v1776_v23, 0 }
 0x4fe   : > { %v8401_v48 = vpop.eup %6841  ;;  %6161 = vmatpush3.bf16.xpose.msra.mxu1 %v1817_v14  ;;  %v1772_v61 = vpop.permute.xlu1 %1771 }
 0x4ff   : > { %11012 = vst [vmem:[#allocation67_spill] sm:$0xff] %v8401_v48  ;;  %v8403_v9 = vpop.eup %6843  ;;  %v1584_v60 = vpack.c.bf16 %v8401_v48, %v8395_v4 }
 0x500   : > { %11013 = vst [vmem:[#allocation68_spill] sm:$0xff] %v8403_v9  ;;  %v1774_v11 = vpop.permute.xlu0 %1773  ;;  %v1585_v3 = vpack.c.bf16 %v8397_v1, %v8403_v9  ;;  %v8410_v27 = vpop.eup %6845 }
 0x501   : > { %6140 = vmatprep.mubr.bf16.mxu1 %v1584_v60  ;;  %6607 = vmatprep.subr.msk.bf16.mxu1 %vm838_vm0, %v1774_v11  ;;  %11014 = vst [vmem:[#allocation69_spill] sm:$0xff] %v8410_v27  ;;  %v1814_v32 = vsel %vm838_vm0, %v1774_v11, 0 }
 0x502   : > { %6141 = vmatmul.mubr.bf16.gmra.mxu1 %v1585_v3  ;;  %v2083_v14 = vpop.permute.xlu1 %2082 }
 0x504   : > { %v1758_v57 = vpop.permute.xlu0 %1757 }
 0x506   : > { %v8413_v7 = vpop.eup %6847  ;;  %6163 = vmatpush3.bf16.xpose.msra.mxu1 %v1814_v32 }
 0x507   : > { %11015 = vst [vmem:[#allocation70_spill] sm:$0xff] %v8413_v7  ;;  %v1586_v37 = vpack.c.bf16 %v8410_v27, %v8413_v7  ;;  %v8417_v41 = vpop.eup %6849 }
 0x508   : > { %v1760_v34 = vpop.permute.xlu0 %1759  ;;  %11016 = vst [vmem:[#allocation71_spill] sm:$0xff] %v8417_v41 }
 0x509   : > { %6144 = vmatprep.mubr.bf16.mxu1 %v1586_v37 }
 0x50a   : > { %v8419_v52 = vpop.eup %6851 }
 0x50b   : > { %11017 = vst [vmem:[#allocation72_spill] sm:$0xff] %v8419_v52  ;;  %v1587_v13 = vpack.c.bf16 %v8419_v52, %v8417_v41 }
 0x50c   : > { %v1762_v29 = vpop.permute.xlu0 %1761 }
 0x50d   : > { %6145 = vmatmul.mubr.bf16.gmra.mxu1 %v1587_v13 }
 0x50e   : > { %6164 = vmatprep.mubr.msk.bf16.mxu1 %vm838_vm0, %v1758_v57  ;;  %v2075_v57 = vpop.permute.xlu1 %2074 }
 0x510   : > { %v1766_v15 = vpop.permute.xlu0 %1765 }
 0x512   : > { %v2071_v37 = vpop.permute.xlu1 %2070 }
 0x514   : > { %v1770_v10 = vpop.permute.xlu0 %1769 }
 0x515   : > { %6165 = vmatmul.mubr.msk.bf16.vlgmr.msra.gmra.mxu1 %vm838_vm0, %v1760_v34 }
 0x516   : > { %6168 = vmatprep.mubr.msk.bf16.mxu1 %vm838_vm0, %v1762_v29 }
 0x518   : > { %v2085_v23 = vpop.permute.xlu0 %2084 }
 0x519   : > { %6180 = vmatprep.subr.bf16.mxu0 %v2085_v23 }
 0x51a   : > { %6181 = vmatpush3.bf16.msra.mxu0 %v2085_v23 }
 0x51b   : > { %6182 = vmatprep.subr.bf16.mxu0 %v2083_v14 }
 0x51c   : > { %v2081_v60 = vpop.permute.xlu0 %2080 }
 0x51d   : > { %6169 = vmatmul.mubr.msk.bf16.gmra.mxu1 %vm838_vm0, %v1764_v40 }
 0x51e   : > { %6172 = vmatprep.mubr.msk.bf16.mxu1 %vm838_vm0, %v1766_v15  ;;  %6183 = vmatpush3.bf16.msra.mxu0 %v2083_v14 }
 0x51f   : > { %6184 = vmatprep.subr.bf16.mxu0 %v2081_v60 }
 0x520   : > { %v2079_v11 = vpop.permute.xlu0 %2078 }
 0x522   : > { %6185 = vmatpush3.bf16.msra.mxu0 %v2081_v60 }
 0x523   : > { %6186 = vmatprep.subr.bf16.mxu0 %v2079_v11 }
 0x524   : > { %v2077_v3 = vpop.permute.xlu0 %2076 }
 0x525   : > { %6173 = vmatmul.mubr.msk.bf16.gmra.mxu1 %vm838_vm0, %v1768_v21 }
 0x526   : > { %6176 = vmatprep.mubr.msk.bf16.mxu1 %vm838_vm0, %v1770_v10  ;;  %6187 = vmatpush3.bf16.msra.mxu0 %v2079_v11 }
 0x527   : > { %6188 = vmatprep.subr.bf16.mxu0 %v2077_v3 }
 0x528   : > { %v2073_v32 = vpop.permute.xlu0 %2072 }
 0x52a   : > { %6189 = vmatpush3.bf16.msra.mxu0 %v2077_v3 }
 0x52b   : > { %6190 = vmatprep.subr.bf16.mxu0 %v2075_v57 }
 0x52c   : > { %v8431_v40 = vpop.permute.xlu0 %2261 }
 0x52d   : > { %6177 = vmatmul.mubr.msk.bf16.gmra.mxu1 %vm838_vm0, %v1772_v61 }
 0x52e   : > { %6191 = vmatpush3.bf16.msra.mxu0 %v2075_v57 }
 0x52f   : > { %6192 = vmatprep.subr.bf16.mxu0 %v2073_v32 }
 0x532   : > { %6193 = vmatpush3.bf16.msra.mxu0 %v2073_v32 }
 0x533   : > { %6194 = vmatprep.subr.bf16.mxu0 %v2071_v37 }
 0x536   : > { %6195 = vmatpush3.bf16.msra.mxu0 %v2071_v37 }
 0x537   : > { %6608 = vmatprep.subr.msk.bf16.mxu0 %vm838_vm0, %v8431_v40 }
 0x577   : > { %v8435_v34 = vpop.f32.mrf.mxu1 }
 0x578   : > { %11018 = vst [vmem:[#allocation73_spill] sm:$0xff] %v8435_v34 }
 0x579   : > { %v8437_v13 = vpop.f32.mrf.mxu1 }
 0x57a   : > { %11019 = vst [vmem:[#allocation74_spill] sm:$0xff] %v8437_v13 }
 0x57b   : > { %v8439_v29 = vpop.f32.mrf.mxu1 }
 0x57c   : > { %11020 = vst [vmem:[#allocation75_spill] sm:$0xff] %v8439_v29 }
 0x57d   : > { %v8441_v21 = vpop.f32.mrf.mxu1 }
 0x57e   : > { %11021 = vst [vmem:[#allocation76_spill] sm:$0xff] %v8441_v21 }
 0x5b2   : > { %v8443_v15 = vpop.f32.mrf.mxu1 }
 0x5b3   : > { %11022 = vst [vmem:[#allocation77_spill] sm:$0xff] %v8443_v15 }
 0x5b4   : > { %v8445_v61 = vpop.f32.mrf.mxu1 }
 0x5b5   : > { %11023 = vst [vmem:[#allocation78_spill] sm:$0xff] %v8445_v61 }
 0x5b6   : > { %v8447_v10 = vpop.f32.mrf.mxu1 }
 0x5b7   : > { %11024 = vst [vmem:[#allocation79_spill] sm:$0xff] %v8447_v10 }
 0x5b8   : > { %v8449_v23 = vpop.f32.mrf.mxu1 }
 0x5b9   : > { %11025 = vst [vmem:[#allocation80_spill] sm:$0xff] %v8449_v23 }
 0x5c2   : > { %v8451_v14 = vpop.f32.mrf.mxu1 }
 0x5c3   : > { %11026 = vst [vmem:[#allocation81_spill] sm:$0xff] %v8451_v14 }
 0x5c4   : > { %v8453_v60 = vpop.f32.mrf.mxu1 }
 0x5c5   : > { %11027 = vst [vmem:[#allocation82_spill] sm:$0xff] %v8453_v60 }
 0x5c6   : > { %v8455_v11 = vpop.f32.mrf.mxu1 }
 0x5c7   : > { %11028 = vst [vmem:[#allocation83_spill] sm:$0xff] %v8455_v11 }
 0x5c8   : > { %v8457_v3 = vpop.f32.mrf.mxu1 }
 0x5c9   : > { %11029 = vst [vmem:[#allocation84_spill] sm:$0xff] %v8457_v3 }
 0x5cd   : > { %v8459_v57 = vpop.f32.mrf.mxu1 }
 0x5ce   : > { %11030 = vst [vmem:[#allocation85_spill] sm:$0xff] %v8459_v57 }
 0x5cf   : > { %v8461_v32 = vpop.f32.mrf.mxu1 }
 0x5d0   : > { %11031 = vst [vmem:[#allocation86_spill] sm:$0xff] %v8461_v32 }
 0x5d1   : > { %v8463_v37 = vpop.f32.mrf.mxu1 }
 0x5d2   : > { %11032 = vst [vmem:[#allocation87_spill] sm:$0xff] %v8463_v37 }
 0x5d3   : > { %v8465_v15 = vpop.f32.mrf.mxu1 }
 0x5d4   : > { %11033 = vst [vmem:[#allocation88_spill] sm:$0xff] %v8465_v15 }
 0x5d5   : > { %v6166_v61 = vpop.f32.mrf.mxu1 }
 0x5d6   : > { %v8469_v23 = vsel %vm837_vm1, -1e+30, %v6166_v61 }
 0x5d7   : > { %1954 = vmax.xlane.f32.xlu1 %v8469_v23  ;;  %v1871_v60 = vpop.f32.mrf.mxu1 }
 0x5d8   : > { %v8474_v11 = vsel %vm837_vm1, -1e+30, %v1871_v60 }
 0x5d9   : > { %1950 = vmax.xlane.f32.xlu0 %v8474_v11  ;;  %v6167_v57 = vpop.f32.mrf.mxu1 }
 0x5da   : > { %v8479_v32 = vsel %vm837_vm1, -1e+30, %v6167_v57 }
 0x5db   : > { %1956 = vmax.xlane.f32.xlu1 %v8479_v32  ;;  %v1874_v15 = vpop.f32.mrf.mxu1 }
 0x5dc   : > { %v8488_v3 = vsel %vm837_vm1, -1e+30, %v1874_v15 }
 0x5dd   : > { %v6170_v37 = vpop.f32.mrf.mxu1 }
 0x5de   : > { %v8484_v61 = vsel %vm837_vm1, -1e+30, %v6170_v37 }
 0x5df   : > { %1952 = vmax.xlane.f32.xlu1 %v8488_v3  ;;  %1962 = vmax.xlane.f32.xlu0 %v8484_v61  ;;  %v1887_v60 = vpop.f32.mrf.mxu1 }
 0x5e0   : > { %v8494_v57 = vsel %vm837_vm1, -1e+30, %v1887_v60 }
 0x5e1   : > { %v6171_v14 = vpop.f32.mrf.mxu1 }
 0x5e2   : > { %v8504_v15 = vsel %vm837_vm1, -1e+30, %v6171_v14 }
 0x5e3   : > { %1958 = vmax.xlane.f32.xlu1 %v8494_v57  ;;  %v1890_v10 = vpop.f32.mrf.mxu1 }
 0x5e4   : > { %v8499_v37 = vsel %vm837_vm1, -1e+30, %v1890_v10 }
 0x5e5   : > { %1960 = vmax.xlane.f32.xlu0 %v8499_v37  ;;  %v6174_v29 = vpop.f32.mrf.mxu1 }
 0x5e6   : > { %v8509_v60 = vsel %vm837_vm1, -1e+30, %v6174_v29 }
 0x5e7   : > { %1964 = vmax.xlane.f32.xlu1 %v8504_v15  ;;  %v1903_v34 = vpop.f32.mrf.mxu1 }
 0x5e8   : > { %v8514_v10 = vsel %vm837_vm1, -1e+30, %v1903_v34 }
 0x5e9   : > { %v6175_v21 = vpop.f32.mrf.mxu1 }
 0x5ea   : > { %v8519_v14 = vsel %vm837_vm1, -1e+30, %v6175_v21 }
 0x5eb   : > { %1970 = vmax.xlane.f32.xlu1 %v8509_v60  ;;  %v1906_v13 = vpop.f32.mrf.mxu1 }
 0x5ec   : > { %v8524_v29 = vsel %vm837_vm1, -1e+30, %v1906_v13 }
 0x5ed   : > { %v6178_v34 = vpop.f32.mrf.mxu1 }
 0x5ee   : > { %v8533_v21 = vsel %vm837_vm1, -1e+30, %v6178_v34 }
 0x5ef   : > { %1966 = vmax.xlane.f32.xlu1 %v8514_v10  ;;  %v1919_v5 = vpop.f32.mrf.mxu1 }
 0x5f0   : > { %v8538_v13 = vsel %vm837_vm1, -1e+30, %v1919_v5  ;;  %v8587_v5 = vpop.permute.xlu1 %2257 }
 0x5f1   : > { %v6179_v8 = vpop.f32.mrf.mxu1 }
 0x5f2   : > { %v8543_v44 = vsel %vm837_vm1, -1e+30, %v6179_v8 }
 0x5f3   : > { %1972 = vmax.xlane.f32.xlu1 %v8519_v14  ;;  %v1922_v62 = vpop.f32.mrf.mxu1 }
 0x5f4   : > { %v8548_v34 = vsel %vm837_vm1, -1e+30, %v1922_v62  ;;  %v8581_v62 = vpop.permute.xlu0 %2259 }
 0x5f7   : > { %1968 = vmax.xlane.f32.xlu1 %v8524_v29 }
 0x5f8   : > { %v8593_v8 = vpop.permute.xlu0 %2255 }
 0x5fb   : > { %2251 = vrot.lane.b32.xlu0 %v7872_v24, %s7562_s9 }
 0x608   : > { %2253 = vrot.lane.b32.xlu1 %v7864_v12, %s7562_s9 }
 0x61a   : > { %1978 = vmax.xlane.f32.xlu0 %v8533_v21 }
 0x61e   : > { %1974 = vmax.xlane.f32.xlu0 %v8538_v13 }
 0x622   : > { %1980 = vmax.xlane.f32.xlu0 %v8543_v44 }
 0x62c   : > { %1976 = vmax.xlane.f32.xlu1 %v8548_v34 }
 0x638   : > { %2249 = vrot.lane.b32.xlu0 %v7798_v17, %s7562_s9 }
 0x63c   : > { %2231 = vrot.lane.b32.xlu0 %v7812_v35, %s7562_s9 }
 0x63d   : > { %2247 = vrot.lane.b32.xlu1 %v7894_v33, %s7562_s9 }
 0x640   : > { %2235 = vrot.lane.b32.xlu0 %v7919_v43, %s7562_s9 }
 0x641   : > { %2233 = vrot.lane.b32.xlu1 %v7810_v31, %s7562_s9 }
 0x644   : > { %2239 = vrot.lane.b32.xlu0 %v7933_v47, %s7562_s9 }
 0x645   : > { %2237 = vrot.lane.b32.xlu1 %v7824_v45, %s7562_s9 }
 0x648   : > { %2243 = vrot.lane.b32.xlu0 %v7942_v51, %s7562_s9 }
 0x649   : > { %2241 = vrot.lane.b32.xlu1 %v7844_v58, %s7562_s9 }
 0x64c   : > { %2558 = vrot.lane.b32.xlu0 %v7880_v30, %s7562_s9 }
 0x64d   : > { %2245 = vrot.lane.b32.xlu1 %v7854_v2, %s7562_s9 }
 0x650   : > { %2554 = vrot.lane.b32.xlu0 %v7888_v25, %s7562_s9 }
 0x651   : > { %2556 = vrot.lane.b32.xlu1 %v7885_v20, %s7562_s9 }
 0x654   : > { %2552 = vrot.lane.b32.xlu0 %v7898_v36, %s7562_s9 }
 0x655   : > { %2548 = vrot.lane.b32.xlu1 %v7910_v18, %s7562_s9 }
 0x658   : > { %2550 = vrot.lane.b32.xlu0 %v7904_v39, %s7562_s9 }
 0x659   : > { %2544 = vrot.lane.b32.xlu1 %v7922_v46, %s7562_s9 }
 0x65c   : > { %2546 = vrot.lane.b32.xlu0 %v7916_v42, %s7562_s9  ;;  %s10715_s9 = scalar_lea.vmem [#allocation12], %s5546_s17 }
 0x65d   : > { %2731 = vrot.lane.b32.xlu1 %v7816_v38, %s7563_s11 }
 0x660   : > { %2735 = vrot.lane.b32.xlu0 %v7828_v50, %s7563_s11  ;;  %v1955_v49 = vpop.xlane.xlu1 %1954 }
 0x661   : > { %v1984_v41 = vsub.f32 %v8469_v23, %v1955_v49 }
 0x662   : > { %v1951_v55 = vpop.xlane.xlu0 %1950 }
 0x663   : > { %v1982_v28 = vsub.f32 %v8474_v11, %v1951_v55  ;;  %v2002_v59 = vmul.f32 1.442695, %v1984_v41 }
 0x664   : > { %2733 = vrot.lane.b32.xlu0 %v7830_v54, %s7563_s11  ;;  %v1957_v52 = vpop.xlane.xlu1 %1956 }
 0x665   : > { %v1985_v27 = vsub.f32 %v8479_v32, %v1957_v52  ;;  %v1998_v7 = vmul.f32 1.442695, %v1982_v28 }
 0x667   : > { %v2004_v4 = vmul.f32 1.442695, %v1985_v27  ;;  %6853 = vpow2.f32 %v1998_v7 }
 0x668   : > { %2729 = vrot.lane.b32.xlu0 %v7856_v6, %s7563_s11  ;;  %v1953_v9 = vpop.xlane.xlu1 %1952  ;;  %v1963_v1 = vpop.xlane.xlu0 %1962 }
 0x669   : > { %v1983_v48 = vsub.f32 %v8488_v3, %v1953_v9  ;;  %v1988_v55 = vsub.f32 %v8484_v61, %v1963_v1  ;;  %6855 = vpow2.f32 %v2004_v4 }
 0x66b   : > { %v2000_v53 = vmul.f32 1.442695, %v1983_v48  ;;  %v2010_v32 = vmul.f32 1.442695, %v1988_v55 }
 0x66c   : > { %v1959_v11 = vpop.xlane.xlu1 %1958 }
 0x66d   : > { %v1986_v52 = vsub.f32 %v8494_v57, %v1959_v11  ;;  %6857 = vpow2.f32 %v2000_v53 }
 0x66e   : > { %v1961_v49 = vpop.xlane.xlu0 %1960  ;;  %6859 = vpow2.f32 %v2002_v59 }
 0x66f   : > { %v2006_v28 = vmul.f32 1.442695, %v1986_v52  ;;  %v1987_v23 = vsub.f32 %v8499_v37, %v1961_v49 }
 0x670   : > { %v1965_v27 = vpop.xlane.xlu1 %1964 }
 0x671   : > { %v2008_v63 = vmul.f32 1.442695, %v1987_v23  ;;  %v1989_v9 = vsub.f32 %v8504_v15, %v1965_v27  ;;  %6861 = vpow2.f32 %v2006_v28 }
 0x673   : > { %6863 = vpow2.f32 %v2008_v63  ;;  %v2012_v48 = vmul.f32 1.442695, %v1989_v9 }
 0x674   : > { %6865 = vpow2.f32 %v2010_v32  ;;  %v1971_v1 = vpop.xlane.xlu1 %1970  ;;  %v8609_v7 = vpop.eup %6853 }
 0x675   : > { %6867 = vpow2.f32 %v2012_v48  ;;  %11034 = vst [vmem:[#allocation89_spill] sm:$0xff] %v8609_v7  ;;  %v1992_v15 = vsub.f32 %v8509_v60, %v1971_v1  ;;  %v2306_v48 = vsel %vm838_vm0, %v8581_v62, 0 }
 0x676   : > { %v8611_v53 = vpop.eup %6855 }
 0x677   : > { %v2018_v27 = vmul.f32 1.442695, %v1992_v15 }
 0x678   : > { %v1967_v4 = vpop.xlane.xlu1 %1966 }
 0x679   : > { %v1990_v41 = vsub.f32 %v8514_v10, %v1967_v4  ;;  %v2309_v10 = vsel %vm838_vm0, %v8431_v40, 0 }
 0x67a   : > { %v8613_v59 = vpop.eup %6857 }
 0x67b   : > { %v8616_v3 = vpop.eup %6859  ;;  %v2062_v57 = vpack.c.bf16 %v8613_v59, %v8609_v7  ;;  %v2014_v11 = vmul.f32 1.442695, %v1990_v41 }
 0x67c   : > { %11035 = vst [vmem:[#allocation90_spill] sm:$0xff] %v8616_v3  ;;  %v1973_v61 = vpop.xlane.xlu1 %1972  ;;  %v2063_v37 = vpack.c.bf16 %v8611_v53, %v8616_v3 }
 0x67d   : > { %v1993_v63 = vsub.f32 %v8519_v14, %v1973_v61  ;;  %6196 = vmatprep.mubr.bf16.mxu0 %v2062_v57  ;;  %6869 = vpow2.f32 %v2014_v11 }
 0x67e   : > { %v8624_v55 = vpop.eup %6861  ;;  %6197 = vmatmul.mubr.bf16.vlgmr.msra.gmra.mxu0 %v2063_v37  ;;  %v2252_v37 = vpop.permute.xlu0 %2251 }
 0x67f   : > { %11036 = vst [vmem:[#allocation91_spill] sm:$0xff] %v8624_v55  ;;  %v2020_v49 = vmul.f32 1.442695, %v1993_v63  ;;  %6213 = vmatpush3.bf16.xpose.msra.mxu0 %v2309_v10  ;;  %v2294_v10 = vsel %vm838_vm0, %v2252_v37, 0 }
 0x680   : > { %v8628_v52 = vpop.eup %6863  ;;  %v1969_v28 = vpop.xlane.xlu1 %1968  ;;  %6609 = vmatprep.subr.msk.bf16.mxu0 %vm838_vm0, %v8581_v62 }
 0x681   : > { %11037 = vst [vmem:[#allocation92_spill] sm:$0xff] %v8628_v52  ;;  %v8630_v23 = vpop.eup %6865  ;;  %v1991_v60 = vsub.f32 %v8524_v29, %v1969_v28  ;;  %v2064_v14 = vpack.c.bf16 %v8628_v52, %v8624_v55  ;;  %6871 = vpow2.f32 %v2020_v49  ;;  %v2303_v29 = vsel %vm838_vm0, %v8587_v5, 0 }
 0x682   : > { %11038 = vst [vmem:[#allocation93_spill] sm:$0xff] %v8630_v23  ;;  %v8637_v32 = vpop.eup %6867 }
 0x683   : > { %11039 = vst [vmem:[#allocation94_spill] sm:$0xff] %v8637_v32  ;;  %v2016_v40 = vmul.f32 1.442695, %v1991_v60  ;;  %6200 = vmatprep.mubr.bf16.mxu0 %v2064_v14  ;;  %v2065_v9 = vpack.c.bf16 %v8637_v32, %v8630_v23 }
 0x684   : > { %v2254_v63 = vpop.permute.xlu1 %2253 }
 0x685   : > { %6873 = vpow2.f32 %v2016_v40  ;;  %v2297_v15 = vsel %vm838_vm0, %v2254_v63, 0 }
 0x686   : > { %6875 = vpow2.f32 %v2018_v27  ;;  %6201 = vmatmul.mubr.bf16.gmra.mxu0 %v2065_v9 }
 0x687   : > { %6215 = vmatpush3.bf16.xpose.msra.mxu0 %v2306_v48 }
 0x688   : > { %6610 = vmatprep.subr.msk.bf16.mxu0 %vm838_vm0, %v8587_v5  ;;  %v2300_v5 = vsel %vm838_vm0, %v8593_v8, 0 }
 0x68a   : > { %v8647_v1 = vpop.eup %6869 }
 0x68b   : > { %11040 = vst [vmem:[#allocation95_spill] sm:$0xff] %v8647_v1 }
 0x68e   : > { %v8649_v4 = vpop.eup %6871 }
 0x68f   : > { %6217 = vmatpush3.bf16.xpose.msra.mxu0 %v2303_v29  ;;  %11041 = vst [vmem:[#allocation96_spill] sm:$0xff] %v8649_v4 }
 0x690   : > { %6611 = vmatprep.subr.msk.bf16.mxu0 %vm838_vm0, %v8593_v8 }
 0x692   : > { %v8653_v41 = vpop.eup %6873 }
 0x693   : > { %11042 = vst [vmem:[#allocation97_spill] sm:$0xff] %v8653_v41  ;;  %v8655_v61 = vpop.eup %6875  ;;  %v2066_v62 = vpack.c.bf16 %v8653_v41, %v8647_v1 }
 0x694   : > { %11043 = vst [vmem:[#allocation98_spill] sm:$0xff] %v8655_v61  ;;  %v2067_v57 = vpack.c.bf16 %v8649_v4, %v8655_v61 }
 0x695   : > { %6204 = vmatprep.mubr.bf16.mxu0 %v2066_v62 }
 0x696   : > { %6205 = vmatmul.mubr.bf16.gmra.mxu0 %v2067_v57 }
 0x697   : > { %6219 = vmatpush3.bf16.xpose.msra.mxu0 %v2300_v5 }
 0x698   : > { %6612 = vmatprep.subr.msk.bf16.mxu0 %vm838_vm0, %v2254_v63 }
 0x69f   : > { %6221 = vmatpush3.bf16.xpose.msra.mxu0 %v2297_v15 }
 0x6a0   : > { %6613 = vmatprep.subr.msk.bf16.mxu0 %vm838_vm0, %v2252_v37 }
 0x6a3   : > { %v1979_v11 = vpop.xlane.xlu0 %1978 }
 0x6a4   : > { %v1996_v40 = vsub.f32 %v8533_v21, %v1979_v11 }
 0x6a6   : > { %v2026_v5 = vmul.f32 1.442695, %v1996_v40 }
 0x6a7   : > { %v1975_v49 = vpop.xlane.xlu0 %1974  ;;  %6223 = vmatpush3.bf16.xpose.msra.mxu0 %v2294_v10 }
 0x6a8   : > { %v1994_v14 = vsub.f32 %v8538_v13, %v1975_v49 }
 0x6aa   : > { %v2022_v48 = vmul.f32 1.442695, %v1994_v14 }
 0x6ab   : > { %v1981_v28 = vpop.xlane.xlu0 %1980 }
 0x6ac   : > { %v1997_v27 = vsub.f32 %v8543_v44, %v1981_v28  ;;  %6877 = vpow2.f32 %v2022_v48 }
 0x6ae   : > { %v2028_v29 = vmul.f32 1.442695, %v1997_v27 }
 0x6af   : > { %v2250_v60 = vpop.permute.xlu0 %2249 }
 0x6b0   : > { %6614 = vmatprep.subr.msk.bf16.mxu0 %vm838_vm0, %v2250_v60  ;;  %v2291_v8 = vsel %vm838_vm0, %v2250_v60, 0  ;;  %6879 = vpow2.f32 %v2028_v29 }
 0x6b1   : > { %6225 = vmatpush3.bf16.xpose.msra.mxu0 %v2291_v8 }
 0x6b3   : > { %v2232_v9 = vpop.permute.xlu0 %2231 }
 0x6b5   : > { %v1977_v62 = vpop.xlane.xlu1 %1976 }
 0x6b6   : > { %v1995_v57 = vsub.f32 %v8548_v34, %v1977_v62 }
 0x6b7   : > { %v2236_v63 = vpop.permute.xlu0 %2235 }
 0x6b8   : > { %v2024_v37 = vmul.f32 1.442695, %v1995_v57 }
 0x6b9   : > { %v2248_v13 = vpop.permute.xlu1 %2247  ;;  %v8675_v34 = vpop.eup %6877 }
 0x6ba   : > { %6881 = vpow2.f32 %v2024_v37  ;;  %6615 = vmatprep.subr.msk.bf16.mxu0 %vm838_vm0, %v2248_v13  ;;  %v2288_v44 = vsel %vm838_vm0, %v2248_v13, 0  ;;  %11044 = vst [vmem:[#allocation99_spill] sm:$0xff] %v8675_v34 }
 0x6bb   : > { %6883 = vpow2.f32 %v2026_v5  ;;  %v2240_v15 = vpop.permute.xlu0 %2239  ;;  %6227 = vmatpush3.bf16.xpose.msra.mxu0 %v2288_v44 }
 0x6bd   : > { %v2234_v21 = vpop.permute.xlu1 %2233  ;;  %v8677_v60 = vpop.eup %6879 }
 0x6be   : > { %11045 = vst [vmem:[#allocation100_spill] sm:$0xff] %v8677_v60 }
 0x6bf   : > { %v2244_v11 = vpop.permute.xlu0 %2243 }
 0x6c1   : > { %v2238_v10 = vpop.permute.xlu1 %2237 }
 0x6c3   : > { %v2559_v49 = vpop.permute.xlu0 %2558 }
 0x6c4   : > { %6244 = vmatprep.subr.bf16.mxu1 %v2559_v49 }
 0x6c5   : > { %6245 = vmatpush3.bf16.msra.mxu1 %v2559_v49  ;;  %v2242_v28 = vpop.permute.xlu1 %2241 }
 0x6c7   : > { %v8679_v14 = vpop.eup %6881  ;;  %v2555_v29 = vpop.permute.xlu0 %2554 }
 0x6c8   : > { %11046 = vst [vmem:[#allocation101_spill] sm:$0xff] %v8679_v14  ;;  %v8681_v8 = vpop.eup %6883  ;;  %v2068_v27 = vpack.c.bf16 %v8679_v14, %v8675_v34 }
 0x6c9   : > { %11047 = vst [vmem:[#allocation102_spill] sm:$0xff] %v8681_v8  ;;  %v2246_v40 = vpop.permute.xlu1 %2245  ;;  %v2069_v48 = vpack.c.bf16 %v8677_v60, %v8681_v8 }
 0x6ca   : > { %6208 = vmatprep.mubr.bf16.mxu0 %v2068_v27 }
 0x6cb   : > { %6209 = vmatmul.mubr.bf16.gmra.mxu0 %v2069_v48  ;;  %v2553_v57 = vpop.permute.xlu0 %2552 }
 0x6cc   : > { %6228 = vmatprep.mubr.msk.bf16.mxu0 %vm838_vm0, %v2232_v9 }
 0x6cd   : > { %v2557_v62 = vpop.permute.xlu1 %2556 }
 0x6ce   : > { %6246 = vmatprep.subr.bf16.mxu1 %v2557_v62 }
 0x6cf   : > { %6247 = vmatpush3.bf16.msra.mxu1 %v2557_v62  ;;  %v2551_v5 = vpop.permute.xlu0 %2550 }
 0x6d0   : > { %6248 = vmatprep.subr.bf16.mxu1 %v2555_v29 }
 0x6d1   : > { %v2549_v37 = vpop.permute.xlu1 %2548 }
 0x6d3   : > { %6229 = vmatmul.mubr.msk.bf16.vlgmr.msra.gmra.mxu0 %vm838_vm0, %v2234_v21  ;;  %6249 = vmatpush3.bf16.msra.mxu1 %v2555_v29  ;;  %v2547_v9 = vpop.permute.xlu0 %2546 }
 0x6d4   : > { %6232 = vmatprep.mubr.msk.bf16.mxu0 %vm838_vm0, %v2236_v63  ;;  %6250 = vmatprep.subr.bf16.mxu1 %v2553_v57 }
 0x6d5   : > { %v2545_v13 = vpop.permute.xlu1 %2544 }
 0x6d7   : > { %6251 = vmatpush3.bf16.msra.mxu1 %v2553_v57  ;;  %v8694_v63 = vpop.permute.xlu0 %2735 }
 0x6d8   : > { %6252 = vmatprep.subr.bf16.mxu1 %v2551_v5 }
 0x6db   : > { %6233 = vmatmul.mubr.msk.bf16.gmra.mxu0 %vm838_vm0, %v2238_v10  ;;  %6253 = vmatpush3.bf16.msra.mxu1 %v2551_v5 }
 0x6dc   : > { %6236 = vmatprep.mubr.msk.bf16.mxu0 %vm838_vm0, %v2240_v15  ;;  %6254 = vmatprep.subr.bf16.mxu1 %v2549_v37 }
 0x6df   : > { %6255 = vmatpush3.bf16.msra.mxu1 %v2549_v37 }
 0x6e0   : > { %6256 = vmatprep.subr.bf16.mxu1 %v2547_v9 }
 0x6e3   : > { %6237 = vmatmul.mubr.msk.bf16.gmra.mxu0 %vm838_vm0, %v2242_v28  ;;  %6257 = vmatpush3.bf16.msra.mxu1 %v2547_v9 }
 0x6e4   : > { %6240 = vmatprep.mubr.msk.bf16.mxu0 %vm838_vm0, %v2244_v11  ;;  %6258 = vmatprep.subr.bf16.mxu1 %v2545_v13 }
 0x6e7   : > { %6259 = vmatpush3.bf16.msra.mxu1 %v2545_v13 }
 0x6e8   : > { %6616 = vmatprep.subr.msk.bf16.mxu1 %vm838_vm0, %v8694_v63 }
 0x6eb   : > { %6241 = vmatmul.mubr.msk.bf16.gmra.mxu0 %vm838_vm0, %v2246_v40 }
 0x73e   : > { %v8699_v44 = vpop.f32.mrf.mxu0 }
 0x73f   : > { %11048 = vst [vmem:[#allocation103_spill] sm:$0xff] %v8699_v44 }
 0x740   : > { %v8701_v15 = vpop.f32.mrf.mxu0 }
 0x741   : > { %11049 = vst [vmem:[#allocation104_spill] sm:$0xff] %v8701_v15 }
 0x742   : > { %v8703_v21 = vpop.f32.mrf.mxu0 }
 0x743   : > { %11050 = vst [vmem:[#allocation105_spill] sm:$0xff] %v8703_v21 }
 0x744   : > { %v8705_v10 = vpop.f32.mrf.mxu0 }
 0x745   : > { %11051 = vst [vmem:[#allocation106_spill] sm:$0xff] %v8705_v10 }
 0x746   : > { %v8707_v49 = vpop.f32.mrf.mxu0 }
 0x747   : > { %11052 = vst [vmem:[#allocation107_spill] sm:$0xff] %v8707_v49 }
 0x748   : > { %v8709_v11 = vpop.f32.mrf.mxu0 }
 0x749   : > { %11053 = vst [vmem:[#allocation108_spill] sm:$0xff] %v8709_v11 }
 0x74a   : > { %v8711_v28 = vpop.f32.mrf.mxu0 }
 0x74b   : > { %11054 = vst [vmem:[#allocation109_spill] sm:$0xff] %v8711_v28 }
 0x74c   : > { %v8713_v27 = vpop.f32.mrf.mxu0 }
 0x74d   : > { %11055 = vst [vmem:[#allocation110_spill] sm:$0xff] %v8713_v27 }
 0x756   : > { %v8715_v48 = vpop.f32.mrf.mxu0 }
 0x757   : > { %11056 = vst [vmem:[#allocation111_spill] sm:$0xff] %v8715_v48 }
 0x758   : > { %v8717_v29 = vpop.f32.mrf.mxu0 }
 0x759   : > { %11057 = vst [vmem:[#allocation112_spill] sm:$0xff] %v8717_v29 }
 0x75a   : > { %v8719_v40 = vpop.f32.mrf.mxu0 }
 0x75b   : > { %11058 = vst [vmem:[#allocation113_spill] sm:$0xff] %v8719_v40 }
 0x75c   : > { %v8721_v62 = vpop.f32.mrf.mxu0 }
 0x75d   : > { %11059 = vst [vmem:[#allocation114_spill] sm:$0xff] %v8721_v62 }
 0x78b   : > { %v8723_v57 = vpop.f32.mrf.mxu0 }
 0x78c   : > { %11060 = vst [vmem:[#allocation115_spill] sm:$0xff] %v8723_v57 }
 0x78d   : > { %v8725_v5 = vpop.f32.mrf.mxu0 }
 0x78e   : > { %11061 = vst [vmem:[#allocation116_spill] sm:$0xff] %v8725_v5 }
 0x78f   : > { %v8727_v37 = vpop.f32.mrf.mxu0 }
 0x790   : > { %11062 = vst [vmem:[#allocation117_spill] sm:$0xff] %v8727_v37 }
 0x791   : > { %v8729_v9 = vpop.f32.mrf.mxu0 }
 0x792   : > { %11063 = vst [vmem:[#allocation118_spill] sm:$0xff] %v8729_v9 }
 0x793   : > { %v6230_v13 = vpop.f32.mrf.mxu0 }
 0x794   : > { %v8733_v27 = vsel %vm837_vm1, -1e+30, %v6230_v13 }
 0x795   : > { %2428 = vmax.xlane.f32.xlu1 %v8733_v27  ;;  %v2345_v29 = vpop.f32.mrf.mxu0 }
 0x796   : > { %v8738_v40 = vsel %vm837_vm1, -1e+30, %v2345_v29 }
 0x797   : > { %2424 = vmax.xlane.f32.xlu0 %v8738_v40  ;;  %v6231_v57 = vpop.f32.mrf.mxu0 }
 0x798   : > { %v8743_v5 = vsel %vm837_vm1, -1e+30, %v6231_v57 }
 0x799   : > { %2430 = vmax.xlane.f32.xlu1 %v8743_v5  ;;  %v2348_v9 = vpop.f32.mrf.mxu0 }
 0x79a   : > { %v8748_v13 = vsel %vm837_vm1, -1e+30, %v2348_v9 }
 0x79b   : > { %v6234_v37 = vpop.f32.mrf.mxu0 }
 0x79c   : > { %v8752_v62 = vsel %vm837_vm1, -1e+30, %v6234_v37 }
 0x79d   : > { %2426 = vmax.xlane.f32.xlu1 %v8748_v13  ;;  %2436 = vmax.xlane.f32.xlu0 %v8752_v62  ;;  %v2361_v29 = vpop.f32.mrf.mxu0 }
 0x79e   : > { %v8758_v57 = vsel %vm837_vm1, -1e+30, %v2361_v29 }
 0x79f   : > { %v6235_v48 = vpop.f32.mrf.mxu0 }
 0x7a0   : > { %v8768_v37 = vsel %vm837_vm1, -1e+30, %v6235_v48 }
 0x7a1   : > { %2432 = vmax.xlane.f32.xlu1 %v8758_v57  ;;  %v2364_v11 = vpop.f32.mrf.mxu0 }
 0x7a2   : > { %v8763_v9 = vsel %vm837_vm1, -1e+30, %v2364_v11 }
 0x7a3   : > { %2434 = vmax.xlane.f32.xlu0 %v8763_v9  ;;  %v6238_v28 = vpop.f32.mrf.mxu0 }
 0x7a4   : > { %v8773_v29 = vsel %vm837_vm1, -1e+30, %v6238_v28 }
 0x7a5   : > { %2438 = vmax.xlane.f32.xlu1 %v8768_v37  ;;  %v2377_v49 = vpop.f32.mrf.mxu0 }
 0x7a6   : > { %v8778_v11 = vsel %vm837_vm1, -1e+30, %v2377_v49 }
 0x7a7   : > { %v6239_v21 = vpop.f32.mrf.mxu0 }
 0x7a8   : > { %v8783_v48 = vsel %vm837_vm1, -1e+30, %v6239_v21 }
 0x7a9   : > { %2444 = vmax.xlane.f32.xlu1 %v8773_v29  ;;  %v2380_v44 = vpop.f32.mrf.mxu0 }
 0x7aa   : > { %v8788_v28 = vsel %vm837_vm1, -1e+30, %v2380_v44 }
 0x7ab   : > { %v6242_v49 = vpop.f32.mrf.mxu0 }
 0x7ac   : > { %v8797_v21 = vsel %vm837_vm1, -1e+30, %v6242_v49 }
 0x7ad   : > { %2440 = vmax.xlane.f32.xlu1 %v8778_v11  ;;  %v2393_v10 = vpop.f32.mrf.mxu0 }
 0x7ae   : > { %v8802_v44 = vsel %vm837_vm1, -1e+30, %v2393_v10 }
 0x7af   : > { %v6243_v15 = vpop.f32.mrf.mxu0 }
 0x7b0   : > { %v8807_v60 = vsel %vm837_vm1, -1e+30, %v6243_v15  ;;  %v8851_v15 = vpop.permute.xlu1 %2731 }
 0x7b1   : > { %2446 = vmax.xlane.f32.xlu1 %v8783_v48  ;;  %v2396_v14 = vpop.f32.mrf.mxu0 }
 0x7b2   : > { %v8812_v49 = vsel %vm837_vm1, -1e+30, %v2396_v14  ;;  %v8845_v14 = vpop.permute.xlu0 %2733 }
 0x7b5   : > { %2442 = vmax.xlane.f32.xlu1 %v8788_v28 }
 0x7b6   : > { %v8857_v10 = vpop.permute.xlu0 %2729 }
 0x7b9   : > { %2725 = vrot.lane.b32.xlu0 %v7872_v24, %s7563_s11 }
 0x7c6   : > { %2727 = vrot.lane.b32.xlu1 %v7864_v12, %s7563_s11 }
 0x7d8   : > { %2452 = vmax.xlane.f32.xlu0 %v8797_v21 }
 0x7dc   : > { %2448 = vmax.xlane.f32.xlu0 %v8802_v44 }
 0x7e0   : > { %2454 = vmax.xlane.f32.xlu0 %v8807_v60 }
 0x7ea   : > { %2450 = vmax.xlane.f32.xlu1 %v8812_v49 }
 0x7f6   : > { %2723 = vrot.lane.b32.xlu0 %v7798_v17, %s7563_s11 }
 0x7fa   : > { %2705 = vrot.lane.b32.xlu0 %v7812_v35, %s7563_s11 }
 0x7fb   : > { %2721 = vrot.lane.b32.xlu1 %v7894_v33, %s7563_s11 }
 0x7fe   : > { %2709 = vrot.lane.b32.xlu0 %v7919_v43, %s7563_s11 }
 0x7ff   : > { %2707 = vrot.lane.b32.xlu1 %v7810_v31, %s7563_s11 }
 0x802   : > { %2713 = vrot.lane.b32.xlu0 %v7933_v47, %s7563_s11 }
 0x803   : > { %2711 = vrot.lane.b32.xlu1 %v7824_v45, %s7563_s11 }
 0x806   : > { %2717 = vrot.lane.b32.xlu0 %v7942_v51, %s7563_s11 }
 0x807   : > { %2715 = vrot.lane.b32.xlu1 %v7844_v58, %s7563_s11 }
 0x80a   : > { %3032 = vrot.lane.b32.xlu0 %v7880_v30, %s7563_s11 }
 0x80b   : > { %2719 = vrot.lane.b32.xlu1 %v7854_v2, %s7563_s11 }
 0x80e   : > { %3028 = vrot.lane.b32.xlu0 %v7888_v25, %s7563_s11 }
 0x80f   : > { %3030 = vrot.lane.b32.xlu1 %v7885_v20, %s7563_s11 }
 0x812   : > { %3026 = vrot.lane.b32.xlu0 %v7898_v36, %s7563_s11 }
 0x813   : > { %3022 = vrot.lane.b32.xlu1 %v7910_v18, %s7563_s11 }
 0x816   : > { %3024 = vrot.lane.b32.xlu0 %v7904_v39, %s7563_s11 }
 0x817   : > { %3018 = vrot.lane.b32.xlu1 %v7922_v46, %s7563_s11 }
 0x81a   : > { %3020 = vrot.lane.b32.xlu0 %v7916_v42, %s7563_s11  ;;  %s5654_s11 = sshll.u32 %s7543_s27, 11 }
 0x81b   : > { %3205 = vrot.lane.b32.xlu1 %v7816_v38, %s7564_s13 }
 0x81e   : > { %3209 = vrot.lane.b32.xlu0 %v7828_v50, %s7564_s13  ;;  %v2429_v8 = vpop.xlane.xlu1 %2428 }
 0x81f   : > { %v2458_v41 = vsub.f32 %v8733_v27, %v2429_v8 }
 0x820   : > { %v2425_v34 = vpop.xlane.xlu0 %2424 }
 0x821   : > { %v2456_v61 = vsub.f32 %v8738_v40, %v2425_v34  ;;  %v2476_v3 = vmul.f32 1.442695, %v2458_v41 }
 0x822   : > { %3207 = vrot.lane.b32.xlu0 %v7830_v54, %s7564_s13  ;;  %v2431_v1 = vpop.xlane.xlu1 %2430 }
 0x823   : > { %v2459_v4 = vsub.f32 %v8743_v5, %v2431_v1  ;;  %v2472_v23 = vmul.f32 1.442695, %v2456_v61 }
 0x825   : > { %v2478_v32 = vmul.f32 1.442695, %v2459_v4  ;;  %6885 = vpow2.f32 %v2472_v23 }
 0x826   : > { %3203 = vrot.lane.b32.xlu0 %v7856_v6, %s7564_s13  ;;  %v2427_v55 = vpop.xlane.xlu1 %2426  ;;  %v2437_v52 = vpop.xlane.xlu0 %2436 }
 0x827   : > { %v2457_v0 = vsub.f32 %v8748_v13, %v2427_v55  ;;  %v2462_v34 = vsub.f32 %v8752_v62, %v2437_v52  ;;  %6887 = vpow2.f32 %v2478_v32 }
 0x829   : > { %v2474_v7 = vmul.f32 1.442695, %v2457_v0  ;;  %v2484_v5 = vmul.f32 1.442695, %v2462_v34 }
 0x82a   : > { %v2433_v40 = vpop.xlane.xlu1 %2432 }
 0x82b   : > { %v2460_v1 = vsub.f32 %v8758_v57, %v2433_v40  ;;  %6889 = vpow2.f32 %v2474_v7 }
 0x82c   : > { %v2435_v8 = vpop.xlane.xlu0 %2434  ;;  %6891 = vpow2.f32 %v2476_v3 }
 0x82d   : > { %v2480_v61 = vmul.f32 1.442695, %v2460_v1  ;;  %v2461_v27 = vsub.f32 %v8763_v9, %v2435_v8 }
 0x82e   : > { %v2439_v4 = vpop.xlane.xlu1 %2438 }
 0x82f   : > { %v2482_v22 = vmul.f32 1.442695, %v2461_v27  ;;  %v2463_v55 = vsub.f32 %v8768_v37, %v2439_v4  ;;  %6893 = vpow2.f32 %v2480_v61 }
 0x831   : > { %6895 = vpow2.f32 %v2482_v22  ;;  %v2486_v0 = vmul.f32 1.442695, %v2463_v55 }
 0x832   : > { %6897 = vpow2.f32 %v2484_v5  ;;  %v2445_v52 = vpop.xlane.xlu1 %2444  ;;  %v8873_v32 = vpop.eup %6885 }
 0x833   : > { %6899 = vpow2.f32 %v2486_v0  ;;  %11064 = vst [vmem:[#allocation119_spill] sm:$0xff] %v8873_v32  ;;  %v2466_v37 = vsub.f32 %v8773_v29, %v2445_v52  ;;  %v2780_v0 = vsel %vm838_vm0, %v8845_v14, 0 }
 0x834   : > { %v8875_v7 = vpop.eup %6887 }
 0x835   : > { %11065 = vst [vmem:[#allocation120_spill] sm:$0xff] %v8875_v7  ;;  %v2492_v4 = vmul.f32 1.442695, %v2466_v37 }
 0x836   : > { %v2441_v23 = vpop.xlane.xlu1 %2440 }
 0x837   : > { %v2464_v41 = vsub.f32 %v8778_v11, %v2441_v23  ;;  %v2783_v11 = vsel %vm838_vm0, %v8694_v63, 0 }
 0x838   : > { %v8877_v3 = vpop.eup %6889 }
 0x839   : > { %11066 = vst [vmem:[#allocation121_spill] sm:$0xff] %v8877_v3  ;;  %v8880_v62 = vpop.eup %6891  ;;  %v2536_v57 = vpack.c.bf16 %v8877_v3, %v8873_v32  ;;  %v2488_v40 = vmul.f32 1.442695, %v2464_v41 }
 0x83a   : > { %11067 = vst [vmem:[#allocation122_spill] sm:$0xff] %v8880_v62  ;;  %v2447_v13 = vpop.xlane.xlu1 %2446  ;;  %v2537_v9 = vpack.c.bf16 %v8875_v7, %v8880_v62 }
 0x83b   : > { %v2467_v22 = vsub.f32 %v8783_v48, %v2447_v13  ;;  %6260 = vmatprep.mubr.bf16.mxu1 %v2536_v57  ;;  %6901 = vpow2.f32 %v2488_v40 }
 0x83c   : > { %v8888_v34 = vpop.eup %6893  ;;  %6261 = vmatmul.mubr.bf16.vlgmr.msra.gmra.mxu1 %v2537_v9  ;;  %v2726_v9 = vpop.permute.xlu0 %2725 }
 0x83d   : > { %11068 = vst [vmem:[#allocation123_spill] sm:$0xff] %v8888_v34  ;;  %v2494_v8 = vmul.f32 1.442695, %v2467_v22  ;;  %6277 = vmatpush3.bf16.xpose.msra.mxu1 %v2783_v11  ;;  %v2768_v11 = vsel %vm838_vm0, %v2726_v9, 0 }
 0x83e   : > { %v8892_v1 = vpop.eup %6895  ;;  %v2443_v61 = vpop.xlane.xlu1 %2442  ;;  %6617 = vmatprep.subr.msk.bf16.mxu1 %vm838_vm0, %v8845_v14 }
 0x83f   : > { %11069 = vst [vmem:[#allocation124_spill] sm:$0xff] %v8892_v1  ;;  %v8894_v27 = vpop.eup %6897  ;;  %v2465_v29 = vsub.f32 %v8788_v28, %v2443_v61  ;;  %v2538_v48 = vpack.c.bf16 %v8892_v1, %v8888_v34  ;;  %6903 = vpow2.f32 %v2494_v8  ;;  %v2777_v28 = vsel %vm838_vm0, %v8851_v15, 0 }
 0x840   : > { %11070 = vst [vmem:[#allocation125_spill] sm:$0xff] %v8894_v27  ;;  %v8901_v5 = vpop.eup %6899 }
 0x841   : > { %11071 = vst [vmem:[#allocation126_spill] sm:$0xff] %v8901_v5  ;;  %v2490_v63 = vmul.f32 1.442695, %v2465_v29  ;;  %6264 = vmatprep.mubr.bf16.mxu1 %v2538_v48  ;;  %v2539_v55 = vpack.c.bf16 %v8901_v5, %v8894_v27 }
 0x842   : > { %v2728_v22 = vpop.permute.xlu1 %2727 }
 0x843   : > { %6905 = vpow2.f32 %v2490_v63  ;;  %v2771_v37 = vsel %vm838_vm0, %v2728_v22, 0 }
 0x844   : > { %6907 = vpow2.f32 %v2492_v4  ;;  %6265 = vmatmul.mubr.bf16.gmra.mxu1 %v2539_v55 }
 0x845   : > { %6279 = vmatpush3.bf16.xpose.msra.mxu1 %v2780_v0 }
 0x846   : > { %6618 = vmatprep.subr.msk.bf16.mxu1 %vm838_vm0, %v8851_v15  ;;  %v2774_v15 = vsel %vm838_vm0, %v8857_v10, 0 }
 0x848   : > { %v8911_v52 = vpop.eup %6901 }
 0x849   : > { %11072 = vst [vmem:[#allocation127_spill] sm:$0xff] %v8911_v52 }
 0x84c   : > { %v8913_v23 = vpop.eup %6903 }
 0x84d   : > { %6281 = vmatpush3.bf16.xpose.msra.mxu1 %v2777_v28  ;;  %11073 = vst [vmem:[#allocation128_spill] sm:$0xff] %v8913_v23 }
 0x84e   : > { %6619 = vmatprep.subr.msk.bf16.mxu1 %vm838_vm0, %v8857_v10 }
 0x850   : > { %v8917_v41 = vpop.eup %6905 }
 0x851   : > { %11074 = vst [vmem:[#allocation129_spill] sm:$0xff] %v8917_v41  ;;  %v8919_v13 = vpop.eup %6907  ;;  %v2540_v14 = vpack.c.bf16 %v8917_v41, %v8911_v52 }
 0x852   : > { %11075 = vst [vmem:[#allocation130_spill] sm:$0xff] %v8919_v13  ;;  %v2541_v57 = vpack.c.bf16 %v8913_v23, %v8919_v13 }
 0x853   : > { %6268 = vmatprep.mubr.bf16.mxu1 %v2540_v14 }
 0x854   : > { %6269 = vmatmul.mubr.bf16.gmra.mxu1 %v2541_v57 }
 0x855   : > { %6283 = vmatpush3.bf16.xpose.msra.mxu1 %v2774_v15 }
 0x856   : > { %6620 = vmatprep.subr.msk.bf16.mxu1 %vm838_vm0, %v2728_v22 }
 0x85d   : > { %6285 = vmatpush3.bf16.xpose.msra.mxu1 %v2771_v37 }
 0x85e   : > { %6621 = vmatprep.subr.msk.bf16.mxu1 %vm838_vm0, %v2726_v9 }
 0x861   : > { %v2453_v40 = vpop.xlane.xlu0 %2452 }
 0x862   : > { %v2470_v63 = vsub.f32 %v8797_v21, %v2453_v40 }
 0x864   : > { %v2500_v15 = vmul.f32 1.442695, %v2470_v63 }
 0x865   : > { %v2449_v8 = vpop.xlane.xlu0 %2448  ;;  %6287 = vmatpush3.bf16.xpose.msra.mxu1 %v2768_v11 }
 0x866   : > { %v2468_v48 = vsub.f32 %v8802_v44, %v2449_v8 }
 0x868   : > { %v2496_v0 = vmul.f32 1.442695, %v2468_v48 }
 0x869   : > { %v2455_v61 = vpop.xlane.xlu0 %2454 }
 0x86a   : > { %v2471_v4 = vsub.f32 %v8807_v60, %v2455_v61  ;;  %6909 = vpow2.f32 %v2496_v0 }
 0x86c   : > { %v2502_v28 = vmul.f32 1.442695, %v2471_v4 }
 0x86d   : > { %v2724_v29 = vpop.permute.xlu0 %2723 }
 0x86e   : > { %6622 = vmatprep.subr.msk.bf16.mxu1 %vm838_vm0, %v2724_v29  ;;  %v2765_v10 = vsel %vm838_vm0, %v2724_v29, 0  ;;  %6911 = vpow2.f32 %v2502_v28 }
 0x86f   : > { %6289 = vmatpush3.bf16.xpose.msra.mxu1 %v2765_v10 }
 0x871   : > { %v2706_v55 = vpop.permute.xlu0 %2705 }
 0x873   : > { %v2451_v14 = vpop.xlane.xlu1 %2450 }
 0x874   : > { %v2469_v57 = vsub.f32 %v8812_v49, %v2451_v14 }
 0x875   : > { %v2710_v22 = vpop.permute.xlu0 %2709 }
 0x876   : > { %v2498_v9 = vmul.f32 1.442695, %v2469_v57 }
 0x877   : > { %v2722_v44 = vpop.permute.xlu1 %2721  ;;  %v8939_v49 = vpop.eup %6909 }
 0x878   : > { %6913 = vpow2.f32 %v2498_v9  ;;  %6623 = vmatprep.subr.msk.bf16.mxu1 %vm838_vm0, %v2722_v44  ;;  %v2762_v60 = vsel %vm838_vm0, %v2722_v44, 0  ;;  %11076 = vst [vmem:[#allocation131_spill] sm:$0xff] %v8939_v49 }
 0x879   : > { %6915 = vpow2.f32 %v2500_v15  ;;  %v2714_v37 = vpop.permute.xlu0 %2713  ;;  %6291 = vmatpush3.bf16.xpose.msra.mxu1 %v2762_v60 }
 0x87b   : > { %v2708_v21 = vpop.permute.xlu1 %2707  ;;  %v8941_v29 = vpop.eup %6911 }
 0x87c   : > { %11077 = vst [vmem:[#allocation132_spill] sm:$0xff] %v8941_v29 }
 0x87d   : > { %v2718_v40 = vpop.permute.xlu0 %2717 }
 0x87f   : > { %v2712_v11 = vpop.permute.xlu1 %2711 }
 0x881   : > { %v3033_v8 = vpop.permute.xlu0 %3032 }
 0x882   : > { %6308 = vmatprep.subr.bf16.mxu0 %v3033_v8 }
 0x883   : > { %6309 = vmatpush3.bf16.msra.mxu0 %v3033_v8  ;;  %v2716_v61 = vpop.permute.xlu1 %2715 }
 0x885   : > { %v8943_v48 = vpop.eup %6913  ;;  %v3029_v28 = vpop.permute.xlu0 %3028 }
 0x886   : > { %11078 = vst [vmem:[#allocation133_spill] sm:$0xff] %v8943_v48  ;;  %v8945_v10 = vpop.eup %6915  ;;  %v2542_v4 = vpack.c.bf16 %v8943_v48, %v8939_v49 }
 0x887   : > { %11079 = vst [vmem:[#allocation134_spill] sm:$0xff] %v8945_v10  ;;  %v2720_v63 = vpop.permute.xlu1 %2719  ;;  %v2543_v0 = vpack.c.bf16 %v8941_v29, %v8945_v10 }
 0x888   : > { %6272 = vmatprep.mubr.bf16.mxu1 %v2542_v4 }
 0x889   : > { %6273 = vmatmul.mubr.bf16.gmra.mxu1 %v2543_v0  ;;  %v3027_v57 = vpop.permute.xlu0 %3026 }
 0x88a   : > { %6292 = vmatprep.mubr.msk.bf16.mxu1 %vm838_vm0, %v2706_v55 }
 0x88b   : > { %v3031_v14 = vpop.permute.xlu1 %3030 }
 0x88c   : > { %6310 = vmatprep.subr.bf16.mxu0 %v3031_v14 }
 0x88d   : > { %6311 = vmatpush3.bf16.msra.mxu0 %v3031_v14  ;;  %v3025_v15 = vpop.permute.xlu0 %3024 }
 0x88e   : > { %6312 = vmatprep.subr.bf16.mxu0 %v3029_v28 }
 0x88f   : > { %v3023_v9 = vpop.permute.xlu1 %3022 }
 0x891   : > { %6293 = vmatmul.mubr.msk.bf16.vlgmr.msra.gmra.mxu1 %vm838_vm0, %v2708_v21  ;;  %6313 = vmatpush3.bf16.msra.mxu0 %v3029_v28  ;;  %v3021_v55 = vpop.permute.xlu0 %3020 }
 0x892   : > { %6296 = vmatprep.mubr.msk.bf16.mxu1 %vm838_vm0, %v2710_v22  ;;  %6314 = vmatprep.subr.bf16.mxu0 %v3027_v57 }
 0x893   : > { %v3019_v44 = vpop.permute.xlu1 %3018 }
 0x895   : > { %6315 = vmatpush3.bf16.msra.mxu0 %v3027_v57  ;;  %v8958_v22 = vpop.permute.xlu0 %3209 }
 0x896   : > { %6316 = vmatprep.subr.bf16.mxu0 %v3025_v15 }
 0x899   : > { %6297 = vmatmul.mubr.msk.bf16.gmra.mxu1 %vm838_vm0, %v2712_v11  ;;  %6317 = vmatpush3.bf16.msra.mxu0 %v3025_v15 }
 0x89a   : > { %6300 = vmatprep.mubr.msk.bf16.mxu1 %vm838_vm0, %v2714_v37  ;;  %6318 = vmatprep.subr.bf16.mxu0 %v3023_v9 }
 0x89d   : > { %6319 = vmatpush3.bf16.msra.mxu0 %v3023_v9 }
 0x89e   : > { %6320 = vmatprep.subr.bf16.mxu0 %v3021_v55 }
 0x8a1   : > { %6301 = vmatmul.mubr.msk.bf16.gmra.mxu1 %vm838_vm0, %v2716_v61  ;;  %6321 = vmatpush3.bf16.msra.mxu0 %v3021_v55 }
 0x8a2   : > { %6304 = vmatprep.mubr.msk.bf16.mxu1 %vm838_vm0, %v2718_v40  ;;  %6322 = vmatprep.subr.bf16.mxu0 %v3019_v44 }
 0x8a5   : > { %6323 = vmatpush3.bf16.msra.mxu0 %v3019_v44 }
 0x8a6   : > { %6624 = vmatprep.subr.msk.bf16.mxu0 %vm838_vm0, %v8958_v22 }
 0x8a9   : > { %6305 = vmatmul.mubr.msk.bf16.gmra.mxu1 %vm838_vm0, %v2720_v63 }
 0x8fc   : > { %v8963_v60 = vpop.f32.mrf.mxu1 }
 0x8fd   : > { %11080 = vst [vmem:[#allocation135_spill] sm:$0xff] %v8963_v60 }
 0x8fe   : > { %v8965_v37 = vpop.f32.mrf.mxu1 }
 0x8ff   : > { %11081 = vst [vmem:[#allocation136_spill] sm:$0xff] %v8965_v37 }
 0x900   : > { %v8967_v21 = vpop.f32.mrf.mxu1 }
 0x901   : > { %11082 = vst [vmem:[#allocation137_spill] sm:$0xff] %v8967_v21 }
 0x902   : > { %v8969_v11 = vpop.f32.mrf.mxu1 }
 0x903   : > { %11083 = vst [vmem:[#allocation138_spill] sm:$0xff] %v8969_v11 }
 0x904   : > { %v8971_v8 = vpop.f32.mrf.mxu1 }
 0x905   : > { %11084 = vst [vmem:[#allocation139_spill] sm:$0xff] %v8971_v8 }
 0x906   : > { %v8973_v40 = vpop.f32.mrf.mxu1 }
 0x907   : > { %11085 = vst [vmem:[#allocation140_spill] sm:$0xff] %v8973_v40 }
 0x908   : > { %v8975_v61 = vpop.f32.mrf.mxu1 }
 0x909   : > { %11086 = vst [vmem:[#allocation141_spill] sm:$0xff] %v8975_v61 }
 0x90a   : > { %v8977_v4 = vpop.f32.mrf.mxu1 }
 0x90b   : > { %11087 = vst [vmem:[#allocation142_spill] sm:$0xff] %v8977_v4 }
 0x914   : > { %v8979_v0 = vpop.f32.mrf.mxu1 }
 0x915   : > { %11088 = vst [vmem:[#allocation143_spill] sm:$0xff] %v8979_v0 }
 0x916   : > { %v8981_v28 = vpop.f32.mrf.mxu1 }
 0x917   : > { %11089 = vst [vmem:[#allocation144_spill] sm:$0xff] %v8981_v28 }
 0x918   : > { %v8983_v63 = vpop.f32.mrf.mxu1 }
 0x919   : > { %11090 = vst [vmem:[#allocation145_spill] sm:$0xff] %v8983_v63 }
 0x91a   : > { %v8985_v14 = vpop.f32.mrf.mxu1 }
 0x91b   : > { %11091 = vst [vmem:[#allocation146_spill] sm:$0xff] %v8985_v14 }
 0x949   : > { %v8987_v57 = vpop.f32.mrf.mxu1 }
 0x94a   : > { %11092 = vst [vmem:[#allocation147_spill] sm:$0xff] %v8987_v57 }
 0x94b   : > { %v8989_v15 = vpop.f32.mrf.mxu1 }
 0x94c   : > { %11093 = vst [vmem:[#allocation148_spill] sm:$0xff] %v8989_v15 }
 0x94d   : > { %v8991_v9 = vpop.f32.mrf.mxu1 }
 0x94e   : > { %11094 = vst [vmem:[#allocation149_spill] sm:$0xff] %v8991_v9 }
 0x94f   : > { %v8993_v55 = vpop.f32.mrf.mxu1 }
 0x950   : > { %11095 = vst [vmem:[#allocation150_spill] sm:$0xff] %v8993_v55 }
 0x951   : > { %v6294_v44 = vpop.f32.mrf.mxu1 }
 0x952   : > { %v8997_v4 = vsel %vm837_vm1, -1e+30, %v6294_v44 }
 0x953   : > { %2902 = vmax.xlane.f32.xlu1 %v8997_v4  ;;  %v2819_v28 = vpop.f32.mrf.mxu1 }
 0x954   : > { %v9002_v63 = vsel %vm837_vm1, -1e+30, %v2819_v28 }
 0x955   : > { %2898 = vmax.xlane.f32.xlu0 %v9002_v63  ;;  %v6295_v57 = vpop.f32.mrf.mxu1 }
 0x956   : > { %v9007_v15 = vsel %vm837_vm1, -1e+30, %v6295_v57 }
 0x957   : > { %2904 = vmax.xlane.f32.xlu1 %v9007_v15  ;;  %v2822_v55 = vpop.f32.mrf.mxu1 }
 0x958   : > { %v9012_v44 = vsel %vm837_vm1, -1e+30, %v2822_v55 }
 0x959   : > { %v6298_v9 = vpop.f32.mrf.mxu1 }
 0x95a   : > { %v9016_v14 = vsel %vm837_vm1, -1e+30, %v6298_v9 }
 0x95b   : > { %2900 = vmax.xlane.f32.xlu1 %v9012_v44  ;;  %2910 = vmax.xlane.f32.xlu0 %v9016_v14  ;;  %v2835_v28 = vpop.f32.mrf.mxu1 }
 0x95c   : > { %v9022_v57 = vsel %vm837_vm1, -1e+30, %v2835_v28 }
 0x95d   : > { %v6299_v0 = vpop.f32.mrf.mxu1 }
 0x95e   : > { %v9032_v9 = vsel %vm837_vm1, -1e+30, %v6299_v0 }
 0x95f   : > { %2906 = vmax.xlane.f32.xlu1 %v9022_v57  ;;  %v2838_v40 = vpop.f32.mrf.mxu1 }
 0x960   : > { %v9027_v55 = vsel %vm837_vm1, -1e+30, %v2838_v40 }
 0x961   : > { %2908 = vmax.xlane.f32.xlu0 %v9027_v55  ;;  %v6302_v61 = vpop.f32.mrf.mxu1 }
 0x962   : > { %v9037_v28 = vsel %vm837_vm1, -1e+30, %v6302_v61 }
 0x963   : > { %2912 = vmax.xlane.f32.xlu1 %v9032_v9  ;;  %v2851_v8 = vpop.f32.mrf.mxu1 }
 0x964   : > { %v9042_v40 = vsel %vm837_vm1, -1e+30, %v2851_v8 }
 0x965   : > { %v6303_v11 = vpop.f32.mrf.mxu1 }
 0x966   : > { %v9047_v0 = vsel %vm837_vm1, -1e+30, %v6303_v11 }
 0x967   : > { %2918 = vmax.xlane.f32.xlu1 %v9037_v28  ;;  %v2854_v37 = vpop.f32.mrf.mxu1 }
 0x968   : > { %v9052_v61 = vsel %vm837_vm1, -1e+30, %v2854_v37 }
 0x969   : > { %v6306_v8 = vpop.f32.mrf.mxu1 }
 0x96a   : > { %v9061_v11 = vsel %vm837_vm1, -1e+30, %v6306_v8 }
 0x96b   : > { %2914 = vmax.xlane.f32.xlu1 %v9042_v40  ;;  %v2867_v21 = vpop.f32.mrf.mxu1 }
 0x96c   : > { %v9066_v37 = vsel %vm837_vm1, -1e+30, %v2867_v21 }
 0x96d   : > { %v6307_v60 = vpop.f32.mrf.mxu1 }
 0x96e   : > { %v9071_v29 = vsel %vm837_vm1, -1e+30, %v6307_v60  ;;  %v9115_v60 = vpop.permute.xlu1 %3205 }
 0x96f   : > { %2920 = vmax.xlane.f32.xlu1 %v9047_v0  ;;  %v2870_v48 = vpop.f32.mrf.mxu1 }
 0x970   : > { %v9076_v8 = vsel %vm837_vm1, -1e+30, %v2870_v48  ;;  %v9109_v48 = vpop.permute.xlu0 %3207 }
 0x973   : > { %2916 = vmax.xlane.f32.xlu1 %v9052_v61 }
 0x974   : > { %v9121_v21 = vpop.permute.xlu0 %3203 }
 0x977   : > { %3199 = vrot.lane.b32.xlu0 %v7872_v24, %s7564_s13 }
 0x984   : > { %3201 = vrot.lane.b32.xlu1 %v7864_v12, %s7564_s13 }
 0x996   : > { %2926 = vmax.xlane.f32.xlu0 %v9061_v11 }
 0x99a   : > { %2922 = vmax.xlane.f32.xlu0 %v9066_v37 }
 0x99e   : > { %2928 = vmax.xlane.f32.xlu0 %v9071_v29 }
 0x9a8   : > { %2924 = vmax.xlane.f32.xlu1 %v9076_v8 }
 0x9b4   : > { %3197 = vrot.lane.b32.xlu0 %v7798_v17, %s7564_s13 }
 0x9b8   : > { %3179 = vrot.lane.b32.xlu0 %v7812_v35, %s7564_s13 }
 0x9b9   : > { %3195 = vrot.lane.b32.xlu1 %v7894_v33, %s7564_s13 }
 0x9bc   : > { %3183 = vrot.lane.b32.xlu0 %v7919_v43, %s7564_s13 }
 0x9bd   : > { %3181 = vrot.lane.b32.xlu1 %v7810_v31, %s7564_s13 }
 0x9c0   : > { %3187 = vrot.lane.b32.xlu0 %v7933_v47, %s7564_s13 }
 0x9c1   : > { %3185 = vrot.lane.b32.xlu1 %v7824_v45, %s7564_s13 }
 0x9c4   : > { %3191 = vrot.lane.b32.xlu0 %v7942_v51, %s7564_s13 }
 0x9c5   : > { %3189 = vrot.lane.b32.xlu1 %v7844_v58, %s7564_s13 }
 0x9c8   : > { %3506 = vrot.lane.b32.xlu0 %v7880_v30, %s7564_s13 }
 0x9c9   : > { %3193 = vrot.lane.b32.xlu1 %v7854_v2, %s7564_s13 }
 0x9cc   : > { %3502 = vrot.lane.b32.xlu0 %v7888_v25, %s7564_s13 }
 0x9cd   : > { %3504 = vrot.lane.b32.xlu1 %v7885_v20, %s7564_s13 }
 0x9d0   : > { %3500 = vrot.lane.b32.xlu0 %v7898_v36, %s7564_s13 }
 0x9d1   : > { %3496 = vrot.lane.b32.xlu1 %v7910_v18, %s7564_s13 }
 0x9d4   : > { %3498 = vrot.lane.b32.xlu0 %v7904_v39, %s7564_s13 }
 0x9d5   : > { %3492 = vrot.lane.b32.xlu1 %v7922_v46, %s7564_s13 }
 0x9d8   : > { %3494 = vrot.lane.b32.xlu0 %v7916_v42, %s7564_s13  ;;  %s5354_s13 = sshll.u32 %s10715_s9, 4  ;;  %s10741_s13 = int_to_ptr.vmem [resolvable:$true] %s5354_s13 }
 0x9d9   : > { %3679 = vrot.lane.b32.xlu1 %v7816_v38, %s7565_s22 }
 0x9dc   : > { %3683 = vrot.lane.b32.xlu0 %v7828_v50, %s7565_s22  ;;  %v2903_v10 = vpop.xlane.xlu1 %2902 }
 0x9dd   : > { %v2932_v41 = vsub.f32 %v8997_v4, %v2903_v10 }
 0x9de   : > { %v2899_v49 = vpop.xlane.xlu0 %2898 }
 0x9df   : > { %v2930_v13 = vsub.f32 %v9002_v63, %v2899_v49  ;;  %v2950_v32 = vmul.f32 1.442695, %v2932_v41 }
 0x9e0   : > { %3681 = vrot.lane.b32.xlu0 %v7830_v54, %s7565_s22  ;;  %v2905_v52 = vpop.xlane.xlu1 %2904 }
 0x9e1   : > { %v2933_v23 = vsub.f32 %v9007_v15, %v2905_v52  ;;  %v2946_v27 = vmul.f32 1.442695, %v2930_v13 }
 0x9e3   : > { %v2952_v5 = vmul.f32 1.442695, %v2933_v23  ;;  %6917 = vpow2.f32 %v2946_v27 }
 0x9e4   : > { %3677 = vrot.lane.b32.xlu0 %v7856_v6, %s7565_s22  ;;  %v2901_v34 = vpop.xlane.xlu1 %2900  ;;  %v2911_v1 = vpop.xlane.xlu0 %2910 }
 0x9e5   : > { %v2931_v62 = vsub.f32 %v9012_v44, %v2901_v34  ;;  %v2936_v49 = vsub.f32 %v9016_v14, %v2911_v1  ;;  %6919 = vpow2.f32 %v2952_v5 }
 0x9e7   : > { %v2948_v7 = vmul.f32 1.442695, %v2931_v62  ;;  %v2958_v15 = vmul.f32 1.442695, %v2936_v49 }
 0x9e8   : > { %v2907_v63 = vpop.xlane.xlu1 %2906 }
 0x9e9   : > { %v2934_v52 = vsub.f32 %v9022_v57, %v2907_v63  ;;  %6921 = vpow2.f32 %v2948_v7 }
 0x9ea   : > { %v2909_v10 = vpop.xlane.xlu0 %2908  ;;  %6923 = vpow2.f32 %v2950_v32 }
 0x9eb   : > { %v2954_v13 = vmul.f32 1.442695, %v2934_v52  ;;  %v2935_v4 = vsub.f32 %v9027_v55, %v2909_v10 }
 0x9ec   : > { %v2913_v23 = vpop.xlane.xlu1 %2912 }
 0x9ed   : > { %v2956_v3 = vmul.f32 1.442695, %v2935_v4  ;;  %v2937_v34 = vsub.f32 %v9032_v9, %v2913_v23  ;;  %6925 = vpow2.f32 %v2954_v13 }
 0x9ef   : > { %6927 = vpow2.f32 %v2956_v3  ;;  %v2960_v62 = vmul.f32 1.442695, %v2937_v34 }
 0x9f0   : > { %6929 = vpow2.f32 %v2958_v15  ;;  %v2919_v1 = vpop.xlane.xlu1 %2918  ;;  %v9137_v5 = vpop.eup %6917 }
 0x9f1   : > { %6931 = vpow2.f32 %v2960_v62  ;;  %v2940_v9 = vsub.f32 %v9037_v28, %v2919_v1  ;;  %v3254_v62 = vsel %vm838_vm0, %v9109_v48, 0 }
 0x9f2   : > { %v9139_v7 = vpop.eup %6919 }
 0x9f3   : > { %v2966_v23 = vmul.f32 1.442695, %v2940_v9 }
 0x9f4   : > { %v2915_v27 = vpop.xlane.xlu1 %2914 }
 0x9f5   : > { %v2938_v41 = vsub.f32 %v9042_v40, %v2915_v27  ;;  %v3257_v40 = vsel %vm838_vm0, %v8958_v22, 0 }
 0x9f6   : > { %v9141_v32 = vpop.eup %6921 }
 0x9f7   : > { %v9144_v14 = vpop.eup %6923  ;;  %v3010_v57 = vpack.c.bf16 %v9141_v32, %v9137_v5  ;;  %v2962_v63 = vmul.f32 1.442695, %v2938_v41 }
 0x9f8   : > { %11096 = vst [vmem:[#allocation151_spill] sm:$0xff] %v9144_v14  ;;  %v2921_v44 = vpop.xlane.xlu1 %2920  ;;  %v3011_v55 = vpack.c.bf16 %v9139_v7, %v9144_v14 }
 0x9f9   : > { %v2941_v3 = vsub.f32 %v9047_v0, %v2921_v44  ;;  %6324 = vmatprep.mubr.bf16.mxu0 %v3010_v57  ;;  %6933 = vpow2.f32 %v2962_v63 }
 0x9fa   : > { %v9152_v49 = vpop.eup %6925  ;;  %6325 = vmatmul.mubr.bf16.vlgmr.msra.gmra.mxu0 %v3011_v55  ;;  %v3200_v55 = vpop.permute.xlu0 %3199 }
 0x9fb   : > { %11097 = vst [vmem:[#allocation152_spill] sm:$0xff] %v9152_v49  ;;  %v2968_v10 = vmul.f32 1.442695, %v2941_v3  ;;  %6341 = vmatpush3.bf16.xpose.msra.mxu0 %v3257_v40  ;;  %v3242_v40 = vsel %vm838_vm0, %v3200_v55, 0 }
 0x9fc   : > { %v9156_v52 = vpop.eup %6927  ;;  %v2917_v13 = vpop.xlane.xlu1 %2916  ;;  %6625 = vmatprep.subr.msk.bf16.mxu0 %vm838_vm0, %v9109_v48 }
 0x9fd   : > { %11098 = vst [vmem:[#allocation153_spill] sm:$0xff] %v9156_v52  ;;  %v9158_v4 = vpop.eup %6929  ;;  %v2939_v28 = vsub.f32 %v9052_v61, %v2917_v13  ;;  %v3012_v0 = vpack.c.bf16 %v9156_v52, %v9152_v49  ;;  %6935 = vpow2.f32 %v2968_v10  ;;  %v3251_v61 = vsel %vm838_vm0, %v9115_v60, 0 }
 0x9fe   : > { %11099 = vst [vmem:[#allocation154_spill] sm:$0xff] %v9158_v4  ;;  %v9165_v15 = vpop.eup %6931 }
 0x9ff   : > { %11100 = vst [vmem:[#allocation155_spill] sm:$0xff] %v9165_v15  ;;  %v2964_v22 = vmul.f32 1.442695, %v2939_v28  ;;  %6328 = vmatprep.mubr.bf16.mxu0 %v3012_v0  ;;  %v3013_v34 = vpack.c.bf16 %v9165_v15, %v9158_v4 }
 0xa00   : > { %v3202_v3 = vpop.permute.xlu1 %3201 }
 0xa01   : > { %6937 = vpow2.f32 %v2964_v22  ;;  %v3245_v9 = vsel %vm838_vm0, %v3202_v3, 0 }
 0xa02   : > { %6939 = vpow2.f32 %v2966_v23  ;;  %6329 = vmatmul.mubr.bf16.gmra.mxu0 %v3013_v34 }
 0xa03   : > { %6343 = vmatpush3.bf16.xpose.msra.mxu0 %v3254_v62 }
 0xa04   : > { %6626 = vmatprep.subr.msk.bf16.mxu0 %vm838_vm0, %v9115_v60  ;;  %v3248_v60 = vsel %vm838_vm0, %v9121_v21, 0 }
 0xa06   : > { %v9175_v1 = vpop.eup %6933 }
 0xa07   : > { %11101 = vst [vmem:[#allocation156_spill] sm:$0xff] %v9175_v1 }
 0xa0a   : > { %v9177_v27 = vpop.eup %6935 }
 0xa0b   : > { %6345 = vmatpush3.bf16.xpose.msra.mxu0 %v3251_v61  ;;  %11102 = vst [vmem:[#allocation157_spill] sm:$0xff] %v9177_v27 }
 0xa0c   : > { %6627 = vmatprep.subr.msk.bf16.mxu0 %vm838_vm0, %v9121_v21 }
 0xa0e   : > { %v9181_v41 = vpop.eup %6937 }
 0xa0f   : > { %11103 = vst [vmem:[#allocation158_spill] sm:$0xff] %v9181_v41  ;;  %v9183_v44 = vpop.eup %6939  ;;  %v3014_v48 = vpack.c.bf16 %v9181_v41, %v9175_v1 }
 0xa10   : > { %11104 = vst [vmem:[#allocation159_spill] sm:$0xff] %v9183_v44  ;;  %v3015_v57 = vpack.c.bf16 %v9177_v27, %v9183_v44 }
 0xa11   : > { %6332 = vmatprep.mubr.bf16.mxu0 %v3014_v48 }
 0xa12   : > { %6333 = vmatmul.mubr.bf16.gmra.mxu0 %v3015_v57 }
 0xa13   : > { %6347 = vmatpush3.bf16.xpose.msra.mxu0 %v3248_v60 }
 0xa14   : > { %6628 = vmatprep.subr.msk.bf16.mxu0 %vm838_vm0, %v3202_v3 }
 0xa1b   : > { %6349 = vmatpush3.bf16.xpose.msra.mxu0 %v3245_v9 }
 0xa1c   : > { %6629 = vmatprep.subr.msk.bf16.mxu0 %vm838_vm0, %v3200_v55 }
 0xa1f   : > { %v2927_v63 = vpop.xlane.xlu0 %2926 }
 0xa20   : > { %v2944_v22 = vsub.f32 %v9061_v11, %v2927_v63 }
 0xa22   : > { %v2974_v60 = vmul.f32 1.442695, %v2944_v22 }
 0xa23   : > { %v2923_v10 = vpop.xlane.xlu0 %2922  ;;  %6351 = vmatpush3.bf16.xpose.msra.mxu0 %v3242_v40 }
 0xa24   : > { %v2942_v0 = vsub.f32 %v9066_v37, %v2923_v10 }
 0xa26   : > { %v2970_v62 = vmul.f32 1.442695, %v2942_v0 }
 0xa27   : > { %v2929_v13 = vpop.xlane.xlu0 %2928 }
 0xa28   : > { %v2945_v23 = vsub.f32 %v9071_v29, %v2929_v13  ;;  %6941 = vpow2.f32 %v2970_v62 }
 0xa2a   : > { %v2976_v61 = vmul.f32 1.442695, %v2945_v23 }
 0xa2b   : > { %v3198_v28 = vpop.permute.xlu0 %3197 }
 0xa2c   : > { %6630 = vmatprep.subr.msk.bf16.mxu0 %vm838_vm0, %v3198_v28  ;;  %v3239_v21 = vsel %vm838_vm0, %v3198_v28, 0  ;;  %6943 = vpow2.f32 %v2976_v61 }
 0xa2d   : > { %6353 = vmatpush3.bf16.xpose.msra.mxu0 %v3239_v21 }
 0xa2f   : > { %v3180_v34 = vpop.permute.xlu0 %3179 }
 0xa31   : > { %v2925_v48 = vpop.xlane.xlu1 %2924 }
 0xa32   : > { %v2943_v57 = vsub.f32 %v9076_v8, %v2925_v48 }
 0xa33   : > { %v3184_v3 = vpop.permute.xlu0 %3183 }
 0xa34   : > { %v2972_v55 = vmul.f32 1.442695, %v2943_v57 }
 0xa35   : > { %v3196_v37 = vpop.permute.xlu1 %3195  ;;  %v9203_v8 = vpop.eup %6941 }
 0xa36   : > { %6945 = vpow2.f32 %v2972_v55  ;;  %6631 = vmatprep.subr.msk.bf16.mxu0 %vm838_vm0, %v3196_v37  ;;  %v3236_v29 = vsel %vm838_vm0, %v3196_v37, 0  ;;  %11105 = vst [vmem:[#allocation160_spill] sm:$0xff] %v9203_v8 }
 0xa37   : > { %6947 = vpow2.f32 %v2974_v60  ;;  %v3188_v9 = vpop.permute.xlu0 %3187  ;;  %6355 = vmatpush3.bf16.xpose.msra.mxu0 %v3236_v29 }
 0xa39   : > { %v3182_v11 = vpop.permute.xlu1 %3181  ;;  %v9205_v28 = vpop.eup %6943 }
 0xa3a   : > { %11106 = vst [vmem:[#allocation161_spill] sm:$0xff] %v9205_v28 }
 0xa3b   : > { %v3192_v63 = vpop.permute.xlu0 %3191 }
 0xa3d   : > { %v3186_v40 = vpop.permute.xlu1 %3185 }
 0xa3f   : > { %v3507_v10 = vpop.permute.xlu0 %3506 }
 0xa40   : > { %6372 = vmatprep.subr.bf16.mxu1 %v3507_v10 }
 0xa41   : > { %6373 = vmatpush3.bf16.msra.mxu1 %v3507_v10  ;;  %v3190_v13 = vpop.permute.xlu1 %3189 }
 0xa43   : > { %v9207_v0 = vpop.eup %6945  ;;  %v3503_v61 = vpop.permute.xlu0 %3502 }
 0xa44   : > { %11107 = vst [vmem:[#allocation162_spill] sm:$0xff] %v9207_v0  ;;  %v9209_v21 = vpop.eup %6947  ;;  %v3016_v23 = vpack.c.bf16 %v9207_v0, %v9203_v8 }
 0xa45   : > { %11108 = vst [vmem:[#allocation163_spill] sm:$0xff] %v9209_v21  ;;  %v3194_v22 = vpop.permute.xlu1 %3193  ;;  %v3017_v62 = vpack.c.bf16 %v9205_v28, %v9209_v21 }
 0xa46   : > { %6336 = vmatprep.mubr.bf16.mxu0 %v3016_v23 }
 0xa47   : > { %6337 = vmatmul.mubr.bf16.gmra.mxu0 %v3017_v62  ;;  %v3501_v57 = vpop.permute.xlu0 %3500 }
 0xa48   : > { %6356 = vmatprep.mubr.msk.bf16.mxu0 %vm838_vm0, %v3180_v34 }
 0xa49   : > { %v3505_v48 = vpop.permute.xlu1 %3504 }
 0xa4a   : > { %6374 = vmatprep.subr.bf16.mxu1 %v3505_v48 }
 0xa4b   : > { %6375 = vmatpush3.bf16.msra.mxu1 %v3505_v48  ;;  %v3499_v60 = vpop.permute.xlu0 %3498 }
 0xa4c   : > { %6376 = vmatprep.subr.bf16.mxu1 %v3503_v61 }
 0xa4d   : > { %v3497_v55 = vpop.permute.xlu1 %3496 }
 0xa4f   : > { %6357 = vmatmul.mubr.msk.bf16.vlgmr.msra.gmra.mxu0 %vm838_vm0, %v3182_v11  ;;  %6377 = vmatpush3.bf16.msra.mxu1 %v3503_v61  ;;  %v3495_v34 = vpop.permute.xlu0 %3494 }
 0xa50   : > { %6360 = vmatprep.mubr.msk.bf16.mxu0 %vm838_vm0, %v3184_v3  ;;  %6378 = vmatprep.subr.bf16.mxu1 %v3501_v57 }
 0xa51   : > { %v3493_v37 = vpop.permute.xlu1 %3492 }
 0xa53   : > { %6379 = vmatpush3.bf16.msra.mxu1 %v3501_v57  ;;  %v9222_v3 = vpop.permute.xlu0 %3683 }
 0xa54   : > { %6380 = vmatprep.subr.bf16.mxu1 %v3499_v60 }
 0xa57   : > { %6361 = vmatmul.mubr.msk.bf16.gmra.mxu0 %vm838_vm0, %v3186_v40  ;;  %6381 = vmatpush3.bf16.msra.mxu1 %v3499_v60 }
 0xa58   : > { %6364 = vmatprep.mubr.msk.bf16.mxu0 %vm838_vm0, %v3188_v9  ;;  %6382 = vmatprep.subr.bf16.mxu1 %v3497_v55 }
 0xa5b   : > { %6383 = vmatpush3.bf16.msra.mxu1 %v3497_v55 }
 0xa5c   : > { %6384 = vmatprep.subr.bf16.mxu1 %v3495_v34 }
 0xa5f   : > { %6365 = vmatmul.mubr.msk.bf16.gmra.mxu0 %vm838_vm0, %v3190_v13  ;;  %6385 = vmatpush3.bf16.msra.mxu1 %v3495_v34 }
 0xa60   : > { %6368 = vmatprep.mubr.msk.bf16.mxu0 %vm838_vm0, %v3192_v63  ;;  %6386 = vmatprep.subr.bf16.mxu1 %v3493_v37 }
 0xa63   : > { %6387 = vmatpush3.bf16.msra.mxu1 %v3493_v37 }
 0xa64   : > { %6632 = vmatprep.subr.msk.bf16.mxu1 %vm838_vm0, %v9222_v3 }
 0xa67   : > { %6369 = vmatmul.mubr.msk.bf16.gmra.mxu0 %vm838_vm0, %v3194_v22 }
 0xaba   : > { %v9227_v29 = vpop.f32.mrf.mxu0 }
 0xabb   : > { %11109 = vst [vmem:[#allocation164_spill] sm:$0xff] %v9227_v29 }
 0xabc   : > { %v9229_v9 = vpop.f32.mrf.mxu0 }
 0xabd   : > { %11110 = vst [vmem:[#allocation165_spill] sm:$0xff] %v9229_v9 }
 0xabe   : > { %v9231_v11 = vpop.f32.mrf.mxu0 }
 0xabf   : > { %11111 = vst [vmem:[#allocation166_spill] sm:$0xff] %v9231_v11 }
 0xac0   : > { %v9233_v40 = vpop.f32.mrf.mxu0 }
 0xac1   : > { %11112 = vst [vmem:[#allocation167_spill] sm:$0xff] %v9233_v40 }
 0xac2   : > { %v9235_v10 = vpop.f32.mrf.mxu0 }
 0xac3   : > { %11113 = vst [vmem:[#allocation168_spill] sm:$0xff] %v9235_v10 }
 0xac4   : > { %v9237_v63 = vpop.f32.mrf.mxu0 }
 0xac5   : > { %11114 = vst [vmem:[#allocation169_spill] sm:$0xff] %v9237_v63 }
 0xac6   : > { %v9239_v13 = vpop.f32.mrf.mxu0 }
 0xac7   : > { %11115 = vst [vmem:[#allocation170_spill] sm:$0xff] %v9239_v13 }
 0xac8   : > { %v9241_v23 = vpop.f32.mrf.mxu0 }
 0xac9   : > { %11116 = vst [vmem:[#allocation171_spill] sm:$0xff] %v9241_v23 }
 0xad2   : > { %v9243_v62 = vpop.f32.mrf.mxu0 }
 0xad3   : > { %11117 = vst [vmem:[#allocation172_spill] sm:$0xff] %v9243_v62 }
 0xad4   : > { %v9245_v61 = vpop.f32.mrf.mxu0 }
 0xad5   : > { %11118 = vst [vmem:[#allocation173_spill] sm:$0xff] %v9245_v61 }
 0xad6   : > { %v9247_v22 = vpop.f32.mrf.mxu0 }
 0xad7   : > { %11119 = vst [vmem:[#allocation174_spill] sm:$0xff] %v9247_v22 }
 0xad8   : > { %v9249_v48 = vpop.f32.mrf.mxu0 }
 0xad9   : > { %11120 = vst [vmem:[#allocation175_spill] sm:$0xff] %v9249_v48 }
 0xb07   : > { %v9251_v57 = vpop.f32.mrf.mxu0 }
 0xb08   : > { %11121 = vst [vmem:[#allocation176_spill] sm:$0xff] %v9251_v57 }
 0xb09   : > { %v9253_v60 = vpop.f32.mrf.mxu0 }
 0xb0a   : > { %11122 = vst [vmem:[#allocation177_spill] sm:$0xff] %v9253_v60 }
 0xb0b   : > { %v9255_v55 = vpop.f32.mrf.mxu0 }
 0xb0c   : > { %11123 = vst [vmem:[#allocation178_spill] sm:$0xff] %v9255_v55 }
 0xb0d   : > { %v9257_v34 = vpop.f32.mrf.mxu0 }
 0xb0e   : > { %11124 = vst [vmem:[#allocation179_spill] sm:$0xff] %v9257_v34 }
 0xb0f   : > { %v6358_v37 = vpop.f32.mrf.mxu0 }
 0xb10   : > { %v9261_v23 = vsel %vm837_vm1, -1e+30, %v6358_v37 }
 0xb11   : > { %3376 = vmax.xlane.f32.xlu1 %v9261_v23  ;;  %v3293_v61 = vpop.f32.mrf.mxu0 }
 0xb12   : > { %v9266_v22 = vsel %vm837_vm1, -1e+30, %v3293_v61 }
 0xb13   : > { %3372 = vmax.xlane.f32.xlu0 %v9266_v22  ;;  %v6359_v57 = vpop.f32.mrf.mxu0 }
 0xb14   : > { %v9271_v60 = vsel %vm837_vm1, -1e+30, %v6359_v57 }
 0xb15   : > { %3378 = vmax.xlane.f32.xlu1 %v9271_v60  ;;  %v3296_v34 = vpop.f32.mrf.mxu0 }
 0xb16   : > { %v9276_v37 = vsel %vm837_vm1, -1e+30, %v3296_v34 }
 0xb17   : > { %v6362_v55 = vpop.f32.mrf.mxu0 }
 0xb18   : > { %v9280_v48 = vsel %vm837_vm1, -1e+30, %v6362_v55 }
 0xb19   : > { %3374 = vmax.xlane.f32.xlu1 %v9276_v37  ;;  %3384 = vmax.xlane.f32.xlu0 %v9280_v48  ;;  %v3309_v61 = vpop.f32.mrf.mxu0 }
 0xb1a   : > { %v9286_v57 = vsel %vm837_vm1, -1e+30, %v3309_v61 }
 0xb1b   : > { %v6363_v62 = vpop.f32.mrf.mxu0 }
 0xb1c   : > { %v9296_v55 = vsel %vm837_vm1, -1e+30, %v6363_v62 }
 0xb1d   : > { %3380 = vmax.xlane.f32.xlu1 %v9286_v57  ;;  %v3312_v63 = vpop.f32.mrf.mxu0 }
 0xb1e   : > { %v9291_v34 = vsel %vm837_vm1, -1e+30, %v3312_v63 }
 0xb1f   : > { %3382 = vmax.xlane.f32.xlu0 %v9291_v34  ;;  %v6366_v13 = vpop.f32.mrf.mxu0 }
 0xb20   : > { %v9301_v61 = vsel %vm837_vm1, -1e+30, %v6366_v13 }
 0xb21   : > { %3386 = vmax.xlane.f32.xlu1 %v9296_v55  ;;  %v3325_v10 = vpop.f32.mrf.mxu0 }
 0xb22   : > { %v9306_v63 = vsel %vm837_vm1, -1e+30, %v3325_v10 }
 0xb23   : > { %v6367_v40 = vpop.f32.mrf.mxu0 }
 0xb24   : > { %v9311_v62 = vsel %vm837_vm1, -1e+30, %v6367_v40 }
 0xb25   : > { %3392 = vmax.xlane.f32.xlu1 %v9301_v61  ;;  %v3328_v9 = vpop.f32.mrf.mxu0 }
 0xb26   : > { %v9316_v13 = vsel %vm837_vm1, -1e+30, %v3328_v9 }
 0xb27   : > { %v6370_v10 = vpop.f32.mrf.mxu0 }
 0xb28   : > { %v9325_v40 = vsel %vm837_vm1, -1e+30, %v6370_v10 }
 0xb29   : > { %3388 = vmax.xlane.f32.xlu1 %v9306_v63  ;;  %v3341_v11 = vpop.f32.mrf.mxu0 }
 0xb2a   : > { %v9330_v9 = vsel %vm837_vm1, -1e+30, %v3341_v11 }
 0xb2b   : > { %v6371_v29 = vpop.f32.mrf.mxu0 }
 0xb2c   : > { %v9335_v28 = vsel %vm837_vm1, -1e+30, %v6371_v29  ;;  %v9379_v29 = vpop.permute.xlu1 %3679 }
 0xb2d   : > { %3394 = vmax.xlane.f32.xlu1 %v9311_v62  ;;  %v3344_v0 = vpop.f32.mrf.mxu0 }
 0xb2e   : > { %v9340_v10 = vsel %vm837_vm1, -1e+30, %v3344_v0  ;;  %v9373_v0 = vpop.permute.xlu0 %3681 }
 0xb31   : > { %3390 = vmax.xlane.f32.xlu1 %v9316_v13 }
 0xb32   : > { %v9385_v11 = vpop.permute.xlu0 %3677 }
 0xb35   : > { %3673 = vrot.lane.b32.xlu0 %v7872_v24, %s7565_s22 }
 0xb42   : > { %3675 = vrot.lane.b32.xlu1 %v7864_v12, %s7565_s22 }
 0xb54   : > { %3400 = vmax.xlane.f32.xlu0 %v9325_v40 }
 0xb58   : > { %3396 = vmax.xlane.f32.xlu0 %v9330_v9 }
 0xb5c   : > { %3402 = vmax.xlane.f32.xlu0 %v9335_v28 }
 0xb66   : > { %3398 = vmax.xlane.f32.xlu1 %v9340_v10 }
 0xb72   : > { %3671 = vrot.lane.b32.xlu0 %v7798_v17, %s7565_s22 }
 0xb76   : > { %3653 = vrot.lane.b32.xlu0 %v7812_v35, %s7565_s22 }
 0xb77   : > { %3669 = vrot.lane.b32.xlu1 %v7894_v33, %s7565_s22 }
 0xb7a   : > { %3657 = vrot.lane.b32.xlu0 %v7919_v43, %s7565_s22 }
 0xb7b   : > { %3655 = vrot.lane.b32.xlu1 %v7810_v31, %s7565_s22 }
 0xb7e   : > { %3661 = vrot.lane.b32.xlu0 %v7933_v47, %s7565_s22 }
 0xb7f   : > { %3659 = vrot.lane.b32.xlu1 %v7824_v45, %s7565_s22 }
 0xb82   : > { %3665 = vrot.lane.b32.xlu0 %v7942_v51, %s7565_s22 }
 0xb83   : > { %3663 = vrot.lane.b32.xlu1 %v7844_v58, %s7565_s22 }
 0xb86   : > { %3980 = vrot.lane.b32.xlu0 %v7880_v30, %s7565_s22 }
 0xb87   : > { %3667 = vrot.lane.b32.xlu1 %v7854_v2, %s7565_s22 }
 0xb8a   : > { %3976 = vrot.lane.b32.xlu0 %v7888_v25, %s7565_s22 }
 0xb8b   : > { %3978 = vrot.lane.b32.xlu1 %v7885_v20, %s7565_s22 }
 0xb8e   : > { %3974 = vrot.lane.b32.xlu0 %v7898_v36, %s7565_s22 }
 0xb8f   : > { %3970 = vrot.lane.b32.xlu1 %v7910_v18, %s7565_s22 }
 0xb92   : > { %3972 = vrot.lane.b32.xlu0 %v7904_v39, %s7565_s22 }
 0xb93   : > { %3966 = vrot.lane.b32.xlu1 %v7922_v46, %s7565_s22 }
 0xb96   : > { %3968 = vrot.lane.b32.xlu0 %v7916_v42, %s7565_s22 }
 0xb97   : > { %4153 = vrot.lane.b32.xlu1 %v7816_v38, %s7566_s10 }
 0xb9a   : > { %4157 = vrot.lane.b32.xlu0 %v7828_v50, %s7566_s10  ;;  %v3377_v21 = vpop.xlane.xlu1 %3376 }
 0xb9b   : > { %v3406_v41 = vsub.f32 %v9261_v23, %v3377_v21 }
 0xb9c   : > { %v3373_v8 = vpop.xlane.xlu0 %3372 }
 0xb9d   : > { %v3404_v44 = vsub.f32 %v9266_v22, %v3373_v8  ;;  %v3424_v52 = vmul.f32 1.442695, %v3406_v41 }
 0xb9e   : > { %4155 = vrot.lane.b32.xlu0 %v7830_v54, %s7566_s10  ;;  %v3379_v1 = vpop.xlane.xlu1 %3378 }
 0xb9f   : > { %v3407_v27 = vsub.f32 %v9271_v60, %v3379_v1  ;;  %v3420_v4 = vmul.f32 1.442695, %v3404_v44 }
 0xba1   : > { %v3426_v49 = vmul.f32 1.442695, %v3407_v27  ;;  %6949 = vpow2.f32 %v3420_v4 }
 0xba2   : > { %4151 = vrot.lane.b32.xlu0 %v7856_v6, %s7566_s10  ;;  %v3375_v38 = vpop.xlane.xlu1 %3374  ;;  %v3385_v15 = vpop.xlane.xlu0 %3384 }
 0xba3   : > { %v3405_v50 = vsub.f32 %v9276_v37, %v3375_v38  ;;  %v3410_v8 = vsub.f32 %v9280_v48, %v3385_v15  ;;  %6951 = vpow2.f32 %v3426_v49 }
 0xba5   : > { %v3422_v14 = vmul.f32 1.442695, %v3405_v50  ;;  %v3432_v23 = vmul.f32 1.442695, %v3410_v8 }
 0xba6   : > { %v3381_v54 = vpop.xlane.xlu1 %3380 }
 0xba7   : > { %v3408_v1 = vsub.f32 %v9286_v57, %v3381_v54  ;;  %6953 = vpow2.f32 %v3422_v14 }
 0xba8   : > { %v3383_v21 = vpop.xlane.xlu0 %3382  ;;  %6955 = vpow2.f32 %v3424_v52 }
 0xba9   : > { %v3428_v44 = vmul.f32 1.442695, %v3408_v1  ;;  %v3409_v6 = vsub.f32 %v9291_v34, %v3383_v21 }
 0xbaa   : > { %v3387_v27 = vpop.xlane.xlu1 %3386 }
 0xbab   : > { %v3430_v22 = vmul.f32 1.442695, %v3409_v6  ;;  %v3411_v60 = vsub.f32 %v9296_v55, %v3387_v27  ;;  %6957 = vpow2.f32 %v3428_v44 }
 0xbad   : > { %6959 = vpow2.f32 %v3430_v22  ;;  %v3434_v4 = vmul.f32 1.442695, %v3411_v60  ;;  %v3728_v60 = vsel %vm838_vm0, %v9373_v0, 0 }
 0xbae   : > { %6961 = vpow2.f32 %v3432_v23  ;;  %v3393_v15 = vpop.xlane.xlu1 %3392  ;;  %v9401_v41 = vpop.eup %6949 }
 0xbaf   : > { %6963 = vpow2.f32 %v3434_v4  ;;  %v3414_v50 = vsub.f32 %v9301_v61, %v3393_v15 }
 0xbb0   : > { %v9403_v14 = vpop.eup %6951 }
 0xbb1   : > { %v3440_v27 = vmul.f32 1.442695, %v3414_v50 }
 0xbb2   : > { %v3389_v49 = vpop.xlane.xlu1 %3388 }
 0xbb3   : > { %v3412_v48 = vsub.f32 %v9306_v63, %v3389_v49  ;;  %v3731_v63 = vsel %vm838_vm0, %v9222_v3, 0 }
 0xbb4   : > { %v9405_v52 = vpop.eup %6953 }
 0xbb5   : > { %v9408_v37 = vpop.eup %6955  ;;  %v3484_v34 = vpack.c.bf16 %v9405_v52, %v9401_v41  ;;  %v3436_v54 = vmul.f32 1.442695, %v3412_v48 }
 0xbb6   : > { %v3395_v57 = vpop.xlane.xlu1 %3394  ;;  %v3485_v38 = vpack.c.bf16 %v9403_v14, %v9408_v37 }
 0xbb7   : > { %v3415_v55 = vsub.f32 %v9311_v62, %v3395_v57  ;;  %6388 = vmatprep.mubr.bf16.mxu1 %v3484_v34  ;;  %6965 = vpow2.f32 %v3436_v54 }
 0xbb8   : > { %v9416_v8 = vpop.eup %6957  ;;  %6389 = vmatmul.mubr.bf16.vlgmr.msra.gmra.mxu1 %v3485_v38 }
 0xbb9   : > { %v3442_v21 = vmul.f32 1.442695, %v3415_v55  ;;  %6405 = vmatpush3.bf16.xpose.msra.mxu1 %v3731_v63  ;;  %v3674_v55 = vpop.permute.xlu0 %3673 }
 0xbba   : > { %v9420_v1 = vpop.eup %6959  ;;  %v3391_v44 = vpop.xlane.xlu1 %3390  ;;  %6633 = vmatprep.subr.msk.bf16.mxu1 %vm838_vm0, %v9373_v0  ;;  %v3716_v54 = vsel %vm838_vm0, %v3674_v55, 0 }
 0xbbb   : > { %v9422_v6 = vpop.eup %6961  ;;  %v3413_v61 = vsub.f32 %v9316_v13, %v3391_v44  ;;  %v3486_v62 = vpack.c.bf16 %v9420_v1, %v9416_v8  ;;  %6967 = vpow2.f32 %v3442_v21  ;;  %v3725_v13 = vsel %vm838_vm0, %v9379_v29, 0 }
 0xbbc   : > { %v9429_v23 = vpop.eup %6963 }
 0xbbd   : > { %v3438_v3 = vmul.f32 1.442695, %v3413_v61  ;;  %6392 = vmatprep.mubr.bf16.mxu1 %v3486_v62  ;;  %v3487_v22 = vpack.c.bf16 %v9429_v23, %v9422_v6 }
 0xbbe   : > { %v3676_v34 = vpop.permute.xlu1 %3675 }
 0xbbf   : > { %6969 = vpow2.f32 %v3438_v3  ;;  %v3719_v38 = vsel %vm838_vm0, %v3676_v34, 0 }
 0xbc0   : > { %6971 = vpow2.f32 %v3440_v27  ;;  %6393 = vmatmul.mubr.bf16.gmra.mxu1 %v3487_v22 }
 0xbc1   : > { %6407 = vmatpush3.bf16.xpose.msra.mxu1 %v3728_v60 }
 0xbc2   : > { %6634 = vmatprep.subr.msk.bf16.mxu1 %vm838_vm0, %v9379_v29  ;;  %v3722_v29 = vsel %vm838_vm0, %v9385_v11, 0 }
 0xbc4   : > { %v9439_v4 = vpop.eup %6965 }
 0xbc8   : > { %v9441_v15 = vpop.eup %6967 }
 0xbc9   : > { %6409 = vmatpush3.bf16.xpose.msra.mxu1 %v3725_v13 }
 0xbca   : > { %6635 = vmatprep.subr.msk.bf16.mxu1 %vm838_vm0, %v9385_v11 }
 0xbcc   : > { %v9445_v49 = vpop.eup %6969 }
 0xbcd   : > { %v9447_v48 = vpop.eup %6971  ;;  %v3488_v0 = vpack.c.bf16 %v9445_v49, %v9439_v4 }
 0xbce   : > { %v3489_v57 = vpack.c.bf16 %v9441_v15, %v9447_v48 }
 0xbcf   : > { %6396 = vmatprep.mubr.bf16.mxu1 %v3488_v0 }
 0xbd0   : > { %6397 = vmatmul.mubr.bf16.gmra.mxu1 %v3489_v57 }
 0xbd1   : > { %6411 = vmatpush3.bf16.xpose.msra.mxu1 %v3722_v29 }
 0xbd2   : > { %6636 = vmatprep.subr.msk.bf16.mxu1 %vm838_vm0, %v3676_v34 }
 0xbd9   : > { %6413 = vmatpush3.bf16.xpose.msra.mxu1 %v3719_v38 }
 0xbda   : > { %6637 = vmatprep.subr.msk.bf16.mxu1 %vm838_vm0, %v3674_v55 }
 0xbdd   : > { %v3401_v50 = vpop.xlane.xlu0 %3400 }
 0xbde   : > { %v3418_v27 = vsub.f32 %v9325_v40, %v3401_v50 }
 0xbe0   : > { %v3448_v57 = vmul.f32 1.442695, %v3418_v27 }
 0xbe1   : > { %v3397_v63 = vpop.xlane.xlu0 %3396  ;;  %6415 = vmatpush3.bf16.xpose.msra.mxu1 %v3716_v54 }
 0xbe2   : > { %v3416_v61 = vsub.f32 %v9330_v9, %v3397_v63 }
 0xbe4   : > { %v3444_v22 = vmul.f32 1.442695, %v3416_v61 }
 0xbe5   : > { %v3403_v21 = vpop.xlane.xlu0 %3402 }
 0xbe6   : > { %v3419_v62 = vsub.f32 %v9335_v28, %v3403_v21  ;;  %6973 = vpow2.f32 %v3444_v22 }
 0xbe8   : > { %v3450_v60 = vmul.f32 1.442695, %v3419_v62 }
 0xbe9   : > { %v3672_v44 = vpop.permute.xlu0 %3671 }
 0xbea   : > { %6638 = vmatprep.subr.msk.bf16.mxu1 %vm838_vm0, %v3672_v44  ;;  %v3713_v11 = vsel %vm838_vm0, %v3672_v44, 0  ;;  %6975 = vpow2.f32 %v3450_v60 }
 0xbeb   : > { %6417 = vmatpush3.bf16.xpose.msra.mxu1 %v3713_v11 }
 0xbed   : > { %v3654_v3 = vpop.permute.xlu0 %3653 }
 0xbef   : > { %v3399_v13 = vpop.xlane.xlu1 %3398 }
 0xbf0   : > { %v3417_v0 = vsub.f32 %v9340_v10, %v3399_v13 }
 0xbf1   : > { %v3658_v29 = vpop.permute.xlu0 %3657 }
 0xbf2   : > { %v3446_v34 = vmul.f32 1.442695, %v3417_v0 }
 0xbf3   : > { %v3670_v9 = vpop.permute.xlu1 %3669  ;;  %v9467_v10 = vpop.eup %6973 }
 0xbf4   : > { %6977 = vpow2.f32 %v3446_v34  ;;  %6639 = vmatprep.subr.msk.bf16.mxu1 %vm838_vm0, %v3670_v9  ;;  %v3710_v28 = vsel %vm838_vm0, %v3670_v9, 0 }
 0xbf5   : > { %6979 = vpow2.f32 %v3448_v57  ;;  %v3662_v55 = vpop.permute.xlu0 %3661  ;;  %6419 = vmatpush3.bf16.xpose.msra.mxu1 %v3710_v28 }
 0xbf7   : > { %v3656_v40 = vpop.permute.xlu1 %3655  ;;  %v9469_v21 = vpop.eup %6975 }
 0xbf9   : > { %v3666_v38 = vpop.permute.xlu0 %3665 }
 0xbfb   : > { %v3660_v50 = vpop.permute.xlu1 %3659 }
 0xbfd   : > { %v3981_v54 = vpop.permute.xlu0 %3980 }
 0xbfe   : > { %6436 = vmatprep.subr.bf16.mxu0 %v3981_v54 }
 0xbff   : > { %6437 = vmatpush3.bf16.msra.mxu0 %v3981_v54  ;;  %v3664_v63 = vpop.permute.xlu1 %3663 }
 0xc01   : > { %v9471_v44 = vpop.eup %6977  ;;  %v3977_v22 = vpop.permute.xlu0 %3976 }
 0xc02   : > { %v9473_v61 = vpop.eup %6979  ;;  %v3490_v11 = vpack.c.bf16 %v9471_v44, %v9467_v10 }
 0xc03   : > { %v3668_v62 = vpop.permute.xlu1 %3667  ;;  %v3491_v27 = vpack.c.bf16 %v9469_v21, %v9473_v61 }
 0xc04   : > { %6400 = vmatprep.mubr.bf16.mxu1 %v3490_v11 }
 0xc05   : > { %6401 = vmatmul.mubr.bf16.gmra.mxu1 %v3491_v27  ;;  %v3975_v13 = vpop.permute.xlu0 %3974 }
 0xc06   : > { %6420 = vmatprep.mubr.msk.bf16.mxu1 %vm838_vm0, %v3654_v3 }
 0xc07   : > { %v3979_v60 = vpop.permute.xlu1 %3978 }
 0xc08   : > { %6438 = vmatprep.subr.bf16.mxu0 %v3979_v60 }
 0xc09   : > { %6439 = vmatpush3.bf16.msra.mxu0 %v3979_v60  ;;  %v3973_v0 = vpop.permute.xlu0 %3972 }
 0xc0a   : > { %6440 = vmatprep.subr.bf16.mxu0 %v3977_v22 }
 0xc0b   : > { %v3971_v57 = vpop.permute.xlu1 %3970 }
 0xc0d   : > { %6421 = vmatmul.mubr.msk.bf16.vlgmr.msra.gmra.mxu1 %vm838_vm0, %v3656_v40  ;;  %6441 = vmatpush3.bf16.msra.mxu0 %v3977_v22  ;;  %v3969_v3 = vpop.permute.xlu0 %3968 }
 0xc0e   : > { %6424 = vmatprep.mubr.msk.bf16.mxu1 %vm838_vm0, %v3658_v29  ;;  %6442 = vmatprep.subr.bf16.mxu0 %v3975_v13 }
 0xc0f   : > { %v3967_v34 = vpop.permute.xlu1 %3966 }
 0xc11   : > { %6443 = vmatpush3.bf16.msra.mxu0 %v3975_v13  ;;  %v9486_v29 = vpop.permute.xlu0 %4157 }
 0xc12   : > { %6444 = vmatprep.subr.bf16.mxu0 %v3973_v0 }
 0xc15   : > { %6425 = vmatmul.mubr.msk.bf16.gmra.mxu1 %vm838_vm0, %v3660_v50  ;;  %6445 = vmatpush3.bf16.msra.mxu0 %v3973_v0 }
 0xc16   : > { %6428 = vmatprep.mubr.msk.bf16.mxu1 %vm838_vm0, %v3662_v55  ;;  %6446 = vmatprep.subr.bf16.mxu0 %v3971_v57 }
 0xc19   : > { %6447 = vmatpush3.bf16.msra.mxu0 %v3971_v57 }
 0xc1a   : > { %6448 = vmatprep.subr.bf16.mxu0 %v3969_v3 }
 0xc1d   : > { %6429 = vmatmul.mubr.msk.bf16.gmra.mxu1 %vm838_vm0, %v3664_v63  ;;  %6449 = vmatpush3.bf16.msra.mxu0 %v3969_v3 }
 0xc1e   : > { %6432 = vmatprep.mubr.msk.bf16.mxu1 %vm838_vm0, %v3666_v38  ;;  %6450 = vmatprep.subr.bf16.mxu0 %v3967_v34 }
 0xc21   : > { %6451 = vmatpush3.bf16.msra.mxu0 %v3967_v34 }
 0xc22   : > { %6640 = vmatprep.subr.msk.bf16.mxu0 %vm838_vm0, %v9486_v29 }
 0xc25   : > { %6433 = vmatmul.mubr.msk.bf16.gmra.mxu1 %vm838_vm0, %v3668_v62 }
 0xc78   : > { %v9491_v9 = vpop.f32.mrf.mxu1 }
 0xc7a   : > { %v9493_v28 = vpop.f32.mrf.mxu1 }
 0xc7b   : > { %11125 = vst [vmem:[#allocation180_spill] sm:$0xff] %v9493_v28 }
 0xc7c   : > { %v9495_v55 = vpop.f32.mrf.mxu1 }
 0xc7d   : > { %11126 = vst [vmem:[#allocation181_spill] sm:$0xff] %v9495_v55 }
 0xc7e   : > { %v9497_v40 = vpop.f32.mrf.mxu1 }
 0xc7f   : > { %11127 = vst [vmem:[#allocation182_spill] sm:$0xff] %v9497_v40 }
 0xc80   : > { %v9499_v50 = vpop.f32.mrf.mxu1 }
 0xc81   : > { %11128 = vst [vmem:[#allocation183_spill] sm:$0xff] %v9499_v50 }
 0xc82   : > { %v9501_v38 = vpop.f32.mrf.mxu1 }
 0xc83   : > { %11129 = vst [vmem:[#allocation184_spill] sm:$0xff] %v9501_v38 }
 0xc84   : > { %v9503_v54 = vpop.f32.mrf.mxu1 }
 0xc85   : > { %11130 = vst [vmem:[#allocation185_spill] sm:$0xff] %v9503_v54 }
 0xc86   : > { %v9505_v63 = vpop.f32.mrf.mxu1 }
 0xc87   : > { %11131 = vst [vmem:[#allocation186_spill] sm:$0xff] %v9505_v63 }
 0xc90   : > { %v9507_v11 = vpop.f32.mrf.mxu1 }
 0xc91   : > { %11132 = vst [vmem:[#allocation187_spill] sm:$0xff] %v9507_v11 }
 0xc92   : > { %v9509_v27 = vpop.f32.mrf.mxu1 }
 0xc93   : > { %11133 = vst [vmem:[#allocation188_spill] sm:$0xff] %v9509_v27 }
 0xc94   : > { %v9511_v62 = vpop.f32.mrf.mxu1 }
 0xc95   : > { %11134 = vst [vmem:[#allocation189_spill] sm:$0xff] %v9511_v62 }
 0xc96   : > { %v9513_v22 = vpop.f32.mrf.mxu1 }
 0xc97   : > { %11135 = vst [vmem:[#allocation190_spill] sm:$0xff] %v9513_v22 }
 0xcc5   : > { %v9515_v60 = vpop.f32.mrf.mxu1 }
 0xcc6   : > { %11136 = vst [vmem:[#allocation191_spill] sm:$0xff] %v9515_v60 }
 0xcc7   : > { %v9517_v13 = vpop.f32.mrf.mxu1 }
 0xcc8   : > { %11137 = vst [vmem:[#allocation192_spill] sm:$0xff] %v9517_v13 }
 0xcc9   : > { %v9519_v0 = vpop.f32.mrf.mxu1 }
 0xcca   : > { %11138 = vst [vmem:[#allocation193_spill] sm:$0xff] %v9519_v0 }
 0xccb   : > { %v9521_v57 = vpop.f32.mrf.mxu1 }
 0xccc   : > { %11139 = vst [vmem:[#allocation194_spill] sm:$0xff] %v9521_v57 }
 0xccd   : > { %v6422_v3 = vpop.f32.mrf.mxu1 }
 0xcce   : > { %v9525_v34 = vsel %vm837_vm1, -1e+30, %v6422_v3 }
 0xccf   : > { %3850 = vmax.xlane.f32.xlu1 %v9525_v34  ;;  %v3767_v27 = vpop.f32.mrf.mxu1 }
 0xcd0   : > { %v9530_v62 = vsel %vm837_vm1, -1e+30, %v3767_v27 }
 0xcd1   : > { %3846 = vmax.xlane.f32.xlu0 %v9530_v62  ;;  %v6423_v22 = vpop.f32.mrf.mxu1 }
 0xcd2   : > { %v9535_v11 = vsel %vm837_vm1, -1e+30, %v6423_v22 }
 0xcd3   : > { %3852 = vmax.xlane.f32.xlu1 %v9535_v11  ;;  %v3770_v0 = vpop.f32.mrf.mxu1 }
 0xcd4   : > { %v9540_v3 = vsel %vm837_vm1, -1e+30, %v3770_v0 }
 0xcd5   : > { %v6426_v60 = vpop.f32.mrf.mxu1 }
 0xcd6   : > { %v9544_v57 = vsel %vm837_vm1, -1e+30, %v6426_v60 }
 0xcd7   : > { %3848 = vmax.xlane.f32.xlu1 %v9540_v3  ;;  %3858 = vmax.xlane.f32.xlu0 %v9544_v57  ;;  %v3783_v27 = vpop.f32.mrf.mxu1 }
 0xcd8   : > { %v9550_v22 = vsel %vm837_vm1, -1e+30, %v3783_v27 }
 0xcd9   : > { %v6427_v13 = vpop.f32.mrf.mxu1 }
 0xcda   : > { %v9560_v60 = vsel %vm837_vm1, -1e+30, %v6427_v13 }
 0xcdb   : > { %3854 = vmax.xlane.f32.xlu1 %v9550_v22  ;;  %v3786_v63 = vpop.f32.mrf.mxu1 }
 0xcdc   : > { %v9555_v0 = vsel %vm837_vm1, -1e+30, %v3786_v63 }
 0xcdd   : > { %3856 = vmax.xlane.f32.xlu0 %v9555_v0  ;;  %v6430_v38 = vpop.f32.mrf.mxu1 }
 0xcde   : > { %v9565_v27 = vsel %vm837_vm1, -1e+30, %v6430_v38 }
 0xcdf   : > { %3860 = vmax.xlane.f32.xlu1 %v9560_v60  ;;  %v3799_v54 = vpop.f32.mrf.mxu1 }
 0xce0   : > { %v9570_v63 = vsel %vm837_vm1, -1e+30, %v3799_v54 }
 0xce1   : > { %v6431_v50 = vpop.f32.mrf.mxu1 }
 0xce2   : > { %v9575_v13 = vsel %vm837_vm1, -1e+30, %v6431_v50 }
 0xce3   : > { %3866 = vmax.xlane.f32.xlu1 %v9565_v27  ;;  %v3802_v40 = vpop.f32.mrf.mxu1 }
 0xce4   : > { %v9580_v38 = vsel %vm837_vm1, -1e+30, %v3802_v40 }
 0xce5   : > { %v6434_v54 = vpop.f32.mrf.mxu1 }
 0xce6   : > { %v9589_v50 = vsel %vm837_vm1, -1e+30, %v6434_v54 }
 0xce7   : > { %3862 = vmax.xlane.f32.xlu1 %v9570_v63  ;;  %v3815_v28 = vpop.f32.mrf.mxu1 }
 0xce8   : > { %v9594_v40 = vsel %vm837_vm1, -1e+30, %v3815_v28 }
 0xce9   : > { %v6435_v55 = vpop.f32.mrf.mxu1 }
 0xceb   : > { %3868 = vmax.xlane.f32.xlu1 %v9575_v13 }
 0xcef   : > { %3864 = vmax.xlane.f32.xlu1 %v9580_v38 }
 0xcf3   : > { %4147 = vrot.lane.b32.xlu0 %v7872_v24, %s7566_s10  ;;  %v9599_v24 = vsel %vm837_vm1, -1e+30, %v6435_v55 }
 0xd00   : > { %4149 = vrot.lane.b32.xlu1 %v7864_v12, %s7566_s10  ;;  %v3818_v12 = vpop.f32.mrf.mxu1 }
 0xd01   : > { %v9604_v54 = vsel %vm837_vm1, -1e+30, %v3818_v12 }
 0xd12   : > { %3874 = vmax.xlane.f32.xlu0 %v9589_v50 }
 0xd16   : > { %3870 = vmax.xlane.f32.xlu0 %v9594_v40 }
 0xd1a   : > { %3876 = vmax.xlane.f32.xlu0 %v9599_v24 }
 0xd24   : > { %3872 = vmax.xlane.f32.xlu1 %v9604_v54 }
 0xd30   : > { %4145 = vrot.lane.b32.xlu0 %v7798_v17, %s7566_s10  ;;  %v9637_v17 = vpop.permute.xlu0 %4155 }
 0xd34   : > { %4127 = vrot.lane.b32.xlu0 %v7812_v35, %s7566_s10  ;;  %v9647_v35 = vpop.permute.xlu0 %4151 }
 0xd35   : > { %4143 = vrot.lane.b32.xlu1 %v7894_v33, %s7566_s10 }
 0xd38   : > { %4131 = vrot.lane.b32.xlu0 %v7919_v43, %s7566_s10 }
 0xd39   : > { %4129 = vrot.lane.b32.xlu1 %v7810_v31, %s7566_s10  ;;  %v9643_v31 = vpop.permute.xlu1 %4153 }
 0xd3c   : > { %4135 = vrot.lane.b32.xlu0 %v7933_v47, %s7566_s10 }
 0xd3d   : > { %4133 = vrot.lane.b32.xlu1 %v7824_v45, %s7566_s10 }
 0xd40   : > { %4139 = vrot.lane.b32.xlu0 %v7942_v51, %s7566_s10 }
 0xd41   : > { %4137 = vrot.lane.b32.xlu1 %v7844_v58, %s7566_s10 }
 0xd44   : > { %4452 = vrot.lane.b32.xlu0 %v7885_v20, %s7566_s10 }
 0xd45   : > { %4141 = vrot.lane.b32.xlu1 %v7854_v2, %s7566_s10 }
 0xd48   : > { %4448 = vrot.lane.b32.xlu0 %v7898_v36, %s7566_s10 }
 0xd49   : > { %4454 = vrot.lane.b32.xlu1 %v7880_v30, %s7566_s10 }
 0xd4c   : > { %4444 = vrot.lane.b32.xlu0 %v7910_v18, %s7566_s10 }
 0xd4d   : > { %4450 = vrot.lane.b32.xlu1 %v7888_v25, %s7566_s10 }
 0xd50   : > { %4440 = vrot.lane.b32.xlu0 %v7922_v46, %s7566_s10 }
 0xd51   : > { %4446 = vrot.lane.b32.xlu1 %v7904_v39, %s7566_s10 }
 0xd55   : > { %4442 = vrot.lane.b32.xlu1 %v7916_v42, %s7566_s10 }
 0xd58   : > { %v3851_v45 = vpop.xlane.xlu1 %3850 }
 0xd59   : > { %v3880_v47 = vsub.f32 %v9525_v34, %v3851_v45 }
 0xd5a   : > { %v3847_v58 = vpop.xlane.xlu0 %3846 }
 0xd5b   : > { %v3878_v2 = vsub.f32 %v9530_v62, %v3847_v58  ;;  %v3898_v20 = vmul.f32 1.442695, %v3880_v47 }
 0xd5c   : > { %v3853_v33 = vpop.xlane.xlu1 %3852 }
 0xd5d   : > { %v3881_v43 = vsub.f32 %v9535_v11, %v3853_v33  ;;  %v3894_v51 = vmul.f32 1.442695, %v3878_v2 }
 0xd5f   : > { %v3900_v55 = vmul.f32 1.442695, %v3881_v43  ;;  %6981 = vpow2.f32 %v3894_v51 }
 0xd60   : > { %v3849_v28 = vpop.xlane.xlu1 %3848  ;;  %v3859_v12 = vpop.xlane.xlu0 %3858 }
 0xd61   : > { %v3879_v30 = vsub.f32 %v9540_v3, %v3849_v28  ;;  %v3884_v36 = vsub.f32 %v9544_v57, %v3859_v12  ;;  %6983 = vpow2.f32 %v3900_v55 }
 0xd63   : > { %v3896_v25 = vmul.f32 1.442695, %v3879_v30  ;;  %v3906_v45 = vmul.f32 1.442695, %v3884_v36 }
 0xd64   : > { %v3855_v39 = vpop.xlane.xlu1 %3854 }
 0xd65   : > { %v3882_v62 = vsub.f32 %v9550_v22, %v3855_v39  ;;  %6985 = vpow2.f32 %v3896_v25 }
 0xd66   : > { %v3857_v58 = vpop.xlane.xlu0 %3856  ;;  %6987 = vpow2.f32 %v3898_v20 }
 0xd67   : > { %v3902_v11 = vmul.f32 1.442695, %v3882_v62  ;;  %v3883_v34 = vsub.f32 %v9555_v0, %v3857_v58 }
 0xd68   : > { %v3861_v2 = vpop.xlane.xlu1 %3860 }
 0xd69   : > { %v3904_v33 = vmul.f32 1.442695, %v3883_v34  ;;  %v3885_v3 = vsub.f32 %v9560_v60, %v3861_v2  ;;  %6989 = vpow2.f32 %v3902_v11  ;;  %v11143_v2 = vld [vmem:[#allocation120_spill] sm:$0xff] }
 0xd6b   : > { %6991 = vpow2.f32 %v3904_v33  ;;  %v3908_v30 = vmul.f32 1.442695, %v3885_v3  ;;  %v11144_v33 = vld [vmem:[#allocation90_spill] sm:$0xff]  ;;  %v4199_v3 = vsel %vm838_vm0, %v9643_v31, 0 }
 0xd6c   : > { %6993 = vpow2.f32 %v3906_v45  ;;  %v3867_v57 = vpop.xlane.xlu1 %3866  ;;  %v9658_v25 = vpop.eup %6981  ;;  %v11140_v45 = vld [vmem:[#allocation60_spill] sm:$0xff] }
 0xd6d   : > { %6995 = vpow2.f32 %v3908_v30  ;;  %v3888_v51 = vsub.f32 %v9565_v27, %v3867_v57  ;;  %v11145_v57 = vld [vmem:[#allocation119_spill] sm:$0xff] }
 0xd6e   : > { %v9660_v20 = vpop.eup %6983 }
 0xd6f   : > { %1550 = vadd.xlane.f32.xlu0 %v8345_v16 }
 0xd70   : > { %v3863_v39 = vpop.xlane.xlu1 %3862 }
 0xd71   : > { %v3886_v36 = vsub.f32 %v9570_v63, %v3863_v39 }
 0xd72   : > { %v9662_v22 = vpop.eup %6985 }
 0xd73   : > { %1554 = vadd.xlane.f32.xlu0 %v8343_v26  ;;  %v9666_v0 = vpop.eup %6987  ;;  %v3958_v43 = vpack.c.bf16 %v9662_v22, %v9658_v25  ;;  %v3910_v55 = vmul.f32 1.442695, %v3886_v36  ;;  %v4205_v26 = vsel %vm838_vm0, %v9486_v29, 0 }
 0xd74   : > { %v3869_v60 = vpop.xlane.xlu1 %3868  ;;  %v3959_v16 = vpack.c.bf16 %v9660_v20, %v9666_v0 }
 0xd75   : > { %v3889_v47 = vsub.f32 %v9575_v13, %v3869_v60  ;;  %6452 = vmatprep.mubr.bf16.mxu0 %v3958_v43  ;;  %6997 = vpow2.f32 %v3910_v55  ;;  %v11146_v60 = vld [vmem:[#allocation122_spill] sm:$0xff]  ;;  %v4196_v43 = vsel %vm838_vm0, %v9647_v35, 0  ;;  %v11148_v55 = vld [vmem:[#allocation63_spill] sm:$0xff] }
 0xd76   : > { %v9674_v28 = vpop.eup %6989  ;;  %6453 = vmatmul.mubr.bf16.vlgmr.msra.gmra.mxu0 %v3959_v16 }
 0xd77   : > { %2032 = vadd.xlane.f32.xlu0 %v8613_v59  ;;  %v3916_v12 = vmul.f32 1.442695, %v3889_v47  ;;  %6469 = vmatpush3.bf16.xpose.msra.mxu0 %v4205_v26  ;;  %v3914_v59 = vmul.f32 1.442695, %v3888_v51  ;;  %v4148_v47 = vpop.permute.xlu0 %4147  ;;  %v11150_v26 = vld [vmem:[#allocation92_spill] sm:$0xff] }
 0xd78   : > { %v9679_v63 = vpop.eup %6991  ;;  %v3865_v62 = vpop.xlane.xlu1 %3864  ;;  %6641 = vmatprep.subr.msk.bf16.mxu0 %vm838_vm0, %v9637_v17 }
 0xd79   : > { %v9681_v58 = vpop.eup %6993  ;;  %v3887_v27 = vsub.f32 %v9580_v38, %v3865_v62  ;;  %1548 = vadd.xlane.f32.xlu1 %v8339_v19  ;;  %v3960_v13 = vpack.c.bf16 %v9679_v63, %v9674_v28  ;;  %6999 = vpow2.f32 %v3916_v12  ;;  %v4202_v19 = vsel %vm838_vm0, %v9637_v17, 0  ;;  %v11141_v38 = vld [vmem:[#allocation121_spill] sm:$0xff]  ;;  %v11152_v62 = vld [vmem:[#allocation94_spill] sm:$0xff] }
 0xd7a   : > { %v9689_v29 = vpop.eup %6995  ;;  %v11151_v12 = vld [vmem:[#allocation61_spill] sm:$0xff] }
 0xd7b   : > { %v3912_v11 = vmul.f32 1.442695, %v3887_v27  ;;  %2036 = vadd.xlane.f32.xlu0 %v8611_v53  ;;  %6456 = vmatprep.mubr.bf16.mxu0 %v3960_v13  ;;  %v3961_v34 = vpack.c.bf16 %v9689_v29, %v9681_v58  ;;  %v11142_v53 = vld [vmem:[#allocation89_spill] sm:$0xff]  ;;  %v11153_v13 = vld [vmem:[#allocation64_spill] sm:$0xff] }
 0xd7c   : > { %v4150_v16 = vpop.permute.xlu1 %4149 }
 0xd7d   : > { %7001 = vpow2.f32 %v3912_v11  ;;  %1552 = vadd.xlane.f32.xlu1 %v11140_v45  ;;  %v4193_v51 = vsel %vm838_vm0, %v4150_v16, 0  ;;  %v11155_v45 = vld [vmem:[#allocation91_spill] sm:$0xff] }
 0xd7e   : > { %7003 = vpow2.f32 %v3914_v59  ;;  %6457 = vmatmul.mubr.bf16.gmra.mxu0 %v3961_v34  ;;  %v11154_v59 = vld [vmem:[#allocation124_spill] sm:$0xff] }
 0xd7f   : > { %2506 = vadd.xlane.f32.xlu0 %v11141_v38  ;;  %6471 = vmatpush3.bf16.xpose.msra.mxu0 %v4202_v19  ;;  %v11156_v38 = vld [vmem:[#allocation126_spill] sm:$0xff] }
 0xd80   : > { %6642 = vmatprep.subr.msk.bf16.mxu0 %vm838_vm0, %v9643_v31 }
 0xd81   : > { %2030 = vadd.xlane.f32.xlu1 %v11142_v53 }
 0xd82   : > { %v9706_v30 = vpop.eup %6997 }
 0xd83   : > { %2510 = vadd.xlane.f32.xlu0 %v11143_v2 }
 0xd85   : > { %2034 = vadd.xlane.f32.xlu1 %v11144_v33  ;;  %v11157_v33 = vld [vmem:[#allocation93_spill] sm:$0xff] }
 0xd86   : > { %v9708_v17 = vpop.eup %6999 }
 0xd87   : > { %2980 = vadd.xlane.f32.xlu0 %v9141_v32  ;;  %6473 = vmatpush3.bf16.xpose.msra.mxu0 %v4199_v3 }
 0xd88   : > { %6643 = vmatprep.subr.msk.bf16.mxu0 %vm838_vm0, %v9647_v35  ;;  %v11149_v35 = vld [vmem:[#allocation62_spill] sm:$0xff] }
 0xd89   : > { %2504 = vadd.xlane.f32.xlu1 %v11145_v57 }
 0xd8a   : > { %v9713_v39 = vpop.eup %7001 }
 0xd8b   : > { %v9715_v36 = vpop.eup %7003  ;;  %2984 = vadd.xlane.f32.xlu0 %v9139_v7  ;;  %v3962_v31 = vpack.c.bf16 %v9713_v39, %v9706_v30  ;;  %v11147_v7 = vld [vmem:[#allocation151_spill] sm:$0xff] }
 0xd8c   : > { %v3963_v32 = vpack.c.bf16 %v9708_v17, %v9715_v36 }
 0xd8d   : > { %2508 = vadd.xlane.f32.xlu1 %v11146_v60  ;;  %6460 = vmatprep.mubr.bf16.mxu0 %v3962_v31  ;;  %v11159_v60 = vld [vmem:[#allocation123_spill] sm:$0xff] }
 0xd8e   : > { %6461 = vmatmul.mubr.bf16.gmra.mxu0 %v3963_v32  ;;  %v11158_v32 = vld [vmem:[#allocation153_spill] sm:$0xff] }
 0xd8f   : > { %3454 = vadd.xlane.f32.xlu0 %v9405_v52  ;;  %6475 = vmatpush3.bf16.xpose.msra.mxu0 %v4196_v43 }
 0xd90   : > { %6644 = vmatprep.subr.msk.bf16.mxu0 %vm838_vm0, %v4150_v16  ;;  %v11160_v16 = vld [vmem:[#allocation155_spill] sm:$0xff] }
 0xd91   : > { %2978 = vadd.xlane.f32.xlu1 %v9137_v5  ;;  %v4190_v5 = vsel %vm838_vm0, %v4148_v47, 0 }
 0xd93   : > { %3458 = vadd.xlane.f32.xlu0 %v9403_v14 }
 0xd95   : > { %2982 = vadd.xlane.f32.xlu1 %v11147_v7  ;;  %v11161_v7 = vld [vmem:[#allocation125_spill] sm:$0xff] }
 0xd97   : > { %1558 = vadd.xlane.f32.xlu0 %v11148_v55  ;;  %6477 = vmatpush3.bf16.xpose.msra.mxu0 %v4193_v51  ;;  %v11162_v51 = vld [vmem:[#allocation152_spill] sm:$0xff] }
 0xd98   : > { %6645 = vmatprep.subr.msk.bf16.mxu0 %vm838_vm0, %v4148_v47 }
 0xd99   : > { %3452 = vadd.xlane.f32.xlu1 %v9401_v41 }
 0xd9b   : > { %v3875_v52 = vpop.xlane.xlu0 %3874  ;;  %1562 = vadd.xlane.f32.xlu0 %v11149_v35 }
 0xd9c   : > { %v3892_v19 = vsub.f32 %v9589_v50, %v3875_v52 }
 0xd9d   : > { %3456 = vadd.xlane.f32.xlu1 %v9408_v37 }
 0xd9e   : > { %v3922_v57 = vmul.f32 1.442695, %v3892_v19 }
 0xd9f   : > { %v3871_v14 = vpop.xlane.xlu0 %3870  ;;  %2040 = vadd.xlane.f32.xlu0 %v11150_v26  ;;  %6479 = vmatpush3.bf16.xpose.msra.mxu0 %v4190_v5  ;;  %v11163_v5 = vld [vmem:[#allocation154_spill] sm:$0xff] }
 0xda0   : > { %v3890_v11 = vsub.f32 %v9594_v40, %v3871_v14 }
 0xda1   : > { %1556 = vadd.xlane.f32.xlu1 %v11151_v12 }
 0xda2   : > { %v3918_v53 = vmul.f32 1.442695, %v3890_v11 }
 0xda3   : > { %2044 = vadd.xlane.f32.xlu0 %v11152_v62  ;;  %v3877_v27 = vpop.xlane.xlu0 %3876  ;;  %v11164_v62 = vld [vmem:[#allocation67_spill] sm:$0xff] }
 0xda4   : > { %v3893_v34 = vsub.f32 %v9599_v24, %v3877_v27  ;;  %7005 = vpow2.f32 %v3918_v53 }
 0xda5   : > { %1560 = vadd.xlane.f32.xlu1 %v11153_v13 }
 0xda6   : > { %v3924_v2 = vmul.f32 1.442695, %v3893_v34  ;;  %v11166_v34 = vld [vmem:[#allocation97_spill] sm:$0xff] }
 0xda7   : > { %2514 = vadd.xlane.f32.xlu0 %v11154_v59  ;;  %v4146_v41 = vpop.permute.xlu0 %4145 }
 0xda8   : > { %6646 = vmatprep.subr.msk.bf16.mxu0 %vm838_vm0, %v4146_v41  ;;  %v4187_v37 = vsel %vm838_vm0, %v4146_v41, 0  ;;  %7007 = vpow2.f32 %v3924_v2  ;;  %v11165_v41 = vld [vmem:[#allocation66_spill] sm:$0xff]  ;;  %v11171_v2 = vld [vmem:[#allocation95_spill] sm:$0xff] }
 0xda9   : > { %2038 = vadd.xlane.f32.xlu1 %v11155_v45  ;;  %6481 = vmatpush3.bf16.xpose.msra.mxu0 %v4187_v37  ;;  %v11168_v45 = vld [vmem:[#allocation96_spill] sm:$0xff] }
 0xdab   : > { %2518 = vadd.xlane.f32.xlu0 %v11156_v38  ;;  %v4128_v31 = vpop.permute.xlu0 %4127  ;;  %v11170_v38 = vld [vmem:[#allocation129_spill] sm:$0xff] }
 0xdad   : > { %2042 = vadd.xlane.f32.xlu1 %v11157_v33  ;;  %v3873_v3 = vpop.xlane.xlu1 %3872  ;;  %v11172_v33 = vld [vmem:[#allocation128_spill] sm:$0xff] }
 0xdae   : > { %v3891_v40 = vsub.f32 %v9604_v54, %v3873_v3 }
 0xdaf   : > { %2988 = vadd.xlane.f32.xlu0 %v11158_v32  ;;  %v4132_v54 = vpop.permute.xlu0 %4131  ;;  %v11175_v32 = vld [vmem:[#allocation127_spill] sm:$0xff] }
 0xdb0   : > { %v3920_v24 = vmul.f32 1.442695, %v3891_v40  ;;  %v11173_v40 = vld [vmem:[#allocation98_spill] sm:$0xff] }
 0xdb1   : > { %2512 = vadd.xlane.f32.xlu1 %v11159_v60  ;;  %v4144_v43 = vpop.permute.xlu1 %4143  ;;  %v9760_v35 = vpop.eup %7005 }
 0xdb2   : > { %7009 = vpow2.f32 %v3920_v24  ;;  %6647 = vmatprep.subr.msk.bf16.mxu0 %vm838_vm0, %v4144_v43  ;;  %v4184_v50 = vsel %vm838_vm0, %v4144_v43, 0  ;;  %v11176_v24 = vld [vmem:[#allocation157_spill] sm:$0xff]  ;;  %v11177_v43 = vld [vmem:[#allocation130_spill] sm:$0xff] }
 0xdb3   : > { %7011 = vpow2.f32 %v3922_v57  ;;  %2992 = vadd.xlane.f32.xlu0 %v11160_v16  ;;  %6483 = vmatpush3.bf16.xpose.msra.mxu0 %v4184_v50  ;;  %v4136_v52 = vpop.permute.xlu0 %4135  ;;  %v11174_v57 = vld [vmem:[#allocation158_spill] sm:$0xff]  ;;  %v11178_v16 = vld [vmem:[#allocation156_spill] sm:$0xff] }
 0xdb5   : > { %2516 = vadd.xlane.f32.xlu1 %v11161_v7  ;;  %v4130_v47 = vpop.permute.xlu1 %4129  ;;  %v9763_v26 = vpop.eup %7007 }
 0xdb7   : > { %3462 = vadd.xlane.f32.xlu0 %v9420_v1  ;;  %v4140_v13 = vpop.permute.xlu0 %4139 }
 0xdb9   : > { %2986 = vadd.xlane.f32.xlu1 %v11162_v51  ;;  %v4134_v55 = vpop.permute.xlu1 %4133 }
 0xdbb   : > { %3466 = vadd.xlane.f32.xlu0 %v9429_v23  ;;  %v4453_v37 = vpop.permute.xlu0 %4452 }
 0xdbd   : > { %2990 = vadd.xlane.f32.xlu1 %v11163_v5  ;;  %v4138_v14 = vpop.permute.xlu1 %4137 }
 0xdbf   : > { %v9765_v12 = vpop.eup %7009  ;;  %1566 = vadd.xlane.f32.xlu0 %v11164_v62  ;;  %v4449_v53 = vpop.permute.xlu0 %4448 }
 0xdc0   : > { %v9768_v27 = vpop.eup %7011  ;;  %v3964_v1 = vpack.c.bf16 %v9765_v12, %v9760_v35 }
 0xdc1   : > { %3460 = vadd.xlane.f32.xlu1 %v9416_v8  ;;  %v9773_v23 = vpop.permute.xlu1 %4141  ;;  %v3965_v59 = vpack.c.bf16 %v9763_v26, %v9768_v27  ;;  %v11167_v8 = vld [vmem:[#allocation65_spill] sm:$0xff] }
 0xdc2   : > { %6464 = vmatprep.mubr.bf16.mxu0 %v3964_v1 }
 0xdc3   : > { %1570 = vadd.xlane.f32.xlu0 %v11165_v41  ;;  %6465 = vmatmul.mubr.bf16.gmra.mxu0 %v3965_v59 }
 0xdc4   : > { %6484 = vmatprep.mubr.msk.bf16.mxu0 %vm838_vm0, %v4128_v31  ;;  %v4445_v31 = vpop.permute.xlu0 %4444 }
 0xdc5   : > { %3464 = vadd.xlane.f32.xlu1 %v9422_v6  ;;  %v4455_v11 = vpop.permute.xlu1 %4454  ;;  %v11169_v6 = vld [vmem:[#allocation68_spill] sm:$0xff] }
 0xdc6   : > { %6500 = vmatprep.subr.bf16.mxu0 %v4455_v11  ;;  %6568 = vmatprep.subr.bf16.mxu1 %v4455_v11 }
 0xdc7   : > { %2048 = vadd.xlane.f32.xlu0 %v11166_v34  ;;  %6576 = vmatpush3.bf16.msra.mxu1 %v4455_v11 }
 0xdc8   : > { %6569 = vmatprep.subr.bf16.mxu1 %v4453_v37  ;;  %v4441_v50 = vpop.permute.xlu0 %4440 }
 0xdc9   : > { %1564 = vadd.xlane.f32.xlu1 %v11167_v8  ;;  %v4451_v19 = vpop.permute.xlu1 %4450 }
 0xdcb   : > { %2052 = vadd.xlane.f32.xlu0 %v11168_v45  ;;  %6485 = vmatmul.mubr.msk.bf16.vlgmr.msra.gmra.mxu0 %vm838_vm0, %v4130_v47 }
 0xdcc   : > { %6501 = vmatpush3.bf16.msra.mxu0 %v4455_v11  ;;  %6577 = vmatpush3.bf16.msra.mxu1 %v4453_v37 }
 0xdcd   : > { %6488 = vmatprep.mubr.msk.bf16.mxu0 %vm838_vm0, %v4132_v54  ;;  %6502 = vmatprep.subr.bf16.mxu0 %v4453_v37  ;;  %v4447_v3 = vpop.permute.xlu1 %4446  ;;  %v11179_v54 = vld [vmem:[#allocation159_spill] sm:$0xff] }
 0xdce   : > { %6570 = vmatprep.subr.bf16.mxu1 %v4451_v19  ;;  %1568 = vadd.xlane.f32.xlu1 %v11169_v6 }
 0xdcf   : > { %2522 = vadd.xlane.f32.xlu0 %v11170_v38 }
 0xdd0   : > { %6503 = vmatpush3.bf16.msra.mxu0 %v4453_v37  ;;  %6578 = vmatpush3.bf16.msra.mxu1 %v4451_v19 }
 0xdd1   : > { %6504 = vmatprep.subr.bf16.mxu0 %v4451_v19  ;;  %6571 = vmatprep.subr.bf16.mxu1 %v4449_v53  ;;  %v4443_v60 = vpop.permute.xlu1 %4442 }
 0xdd2   : > { %2046 = vadd.xlane.f32.xlu1 %v11171_v2 }
 0xdd3   : > { %2526 = vadd.xlane.f32.xlu0 %v11172_v33  ;;  %6489 = vmatmul.mubr.msk.bf16.gmra.mxu0 %vm838_vm0, %v4134_v55 }
 0xdd4   : > { %6505 = vmatpush3.bf16.msra.mxu0 %v4451_v19  ;;  %6579 = vmatpush3.bf16.msra.mxu1 %v4449_v53 }
 0xdd5   : > { %6492 = vmatprep.mubr.msk.bf16.mxu0 %vm838_vm0, %v4136_v52  ;;  %6506 = vmatprep.subr.bf16.mxu0 %v4449_v53 }
 0xdd6   : > { %6572 = vmatprep.subr.bf16.mxu1 %v4447_v3  ;;  %2050 = vadd.xlane.f32.xlu1 %v11173_v40 }
 0xdd7   : > { %2996 = vadd.xlane.f32.xlu0 %v11174_v57 }
 0xdd8   : > { %6507 = vmatpush3.bf16.msra.mxu0 %v4449_v53  ;;  %6580 = vmatpush3.bf16.msra.mxu1 %v4447_v3 }
 0xdd9   : > { %6508 = vmatprep.subr.bf16.mxu0 %v4447_v3  ;;  %6573 = vmatprep.subr.bf16.mxu1 %v4445_v31 }
 0xdda   : > { %2520 = vadd.xlane.f32.xlu1 %v11175_v32 }
 0xddb   : > { %3000 = vadd.xlane.f32.xlu0 %v11176_v24  ;;  %6493 = vmatmul.mubr.msk.bf16.gmra.mxu0 %vm838_vm0, %v4138_v14 }
 0xddc   : > { %6509 = vmatpush3.bf16.msra.mxu0 %v4447_v3  ;;  %6581 = vmatpush3.bf16.msra.mxu1 %v4445_v31 }
 0xddd   : > { %6496 = vmatprep.mubr.msk.bf16.mxu0 %vm838_vm0, %v4140_v13  ;;  %6510 = vmatprep.subr.bf16.mxu0 %v4445_v31 }
 0xdde   : > { %6574 = vmatprep.subr.bf16.mxu1 %v4443_v60  ;;  %2524 = vadd.xlane.f32.xlu1 %v11177_v43 }
 0xddf   : > { %3470 = vadd.xlane.f32.xlu0 %v9445_v49 }
 0xde0   : > { %6511 = vmatpush3.bf16.msra.mxu0 %v4445_v31  ;;  %6582 = vmatpush3.bf16.msra.mxu1 %v4443_v60 }
 0xde1   : > { %6512 = vmatprep.subr.bf16.mxu0 %v4443_v60  ;;  %6575 = vmatprep.subr.bf16.mxu1 %v4441_v50 }
 0xde2   : > { %2994 = vadd.xlane.f32.xlu1 %v11178_v16 }
 0xde3   : > { %3474 = vadd.xlane.f32.xlu0 %v9441_v15  ;;  %6497 = vmatmul.mubr.msk.bf16.gmra.mxu0 %vm838_vm0, %v9773_v23 }
 0xde4   : > { %6513 = vmatpush3.bf16.msra.mxu0 %v4443_v60  ;;  %6583 = vmatpush3.bf16.msra.mxu1 %v4441_v50 }
 0xde5   : > { %6514 = vmatprep.subr.bf16.mxu0 %v4441_v50 }
 0xde6   : > { %2998 = vadd.xlane.f32.xlu1 %v11179_v54 }
 0xde7   : > { %3932 = vadd.xlane.f32.xlu0 %v9660_v20 }
 0xde8   : > { %6515 = vmatpush3.bf16.msra.mxu0 %v4441_v50 }
 0xdea   : > { %3468 = vadd.xlane.f32.xlu1 %v9439_v4 }
 0xdeb   : > { %3928 = vadd.xlane.f32.xlu0 %v9662_v22 }
 0xdee   : > { %3472 = vadd.xlane.f32.xlu1 %v9447_v48 }
 0xdef   : > { %3940 = vadd.xlane.f32.xlu0 %v9689_v29 }
 0xdf2   : > { %3930 = vadd.xlane.f32.xlu1 %v9666_v0 }
 0xdf3   : > { %3936 = vadd.xlane.f32.xlu0 %v9679_v63 }
 0xdf6   : > { %3926 = vadd.xlane.f32.xlu1 %v9658_v25 }
 0xdf7   : > { %3944 = vadd.xlane.f32.xlu0 %v9713_v39 }
 0xdf8   : > { %v9817_v4 = vpop.xlane.xlu0 %1550 }
 0xdf9   : > { %7013 = vrcp.f32 %v9817_v4  ;;  %v11244_v4 = vld [vmem:[#allocation43_spill] sm:$0xff] }
 0xdfa   : > { %3938 = vadd.xlane.f32.xlu1 %v9681_v58 }
 0xdfc   : > { %v9821_v49 = vpop.xlane.xlu0 %1554 }
 0xdfe   : > { %3934 = vadd.xlane.f32.xlu1 %v9674_v28 }
 0xe00   : > { %v9825_v20 = vpop.xlane.xlu0 %2032 }
 0xe02   : > { %3946 = vadd.xlane.f32.xlu1 %v9715_v36  ;;  %v9819_v15 = vpop.xlane.xlu1 %1548 }
 0xe03   : > { %7015 = vrcp.f32 %v9819_v15  ;;  %v11245_v15 = vld [vmem:[#allocation38_spill] sm:$0xff] }
 0xe04   : > { %v9831_v0 = vpop.xlane.xlu0 %2036  ;;  %7017 = vrcp.f32 %v9821_v49 }
 0xe05   : > { %7019 = vrcp.f32 %v9825_v20 }
 0xe06   : > { %3942 = vadd.xlane.f32.xlu1 %v9706_v30  ;;  %v9823_v48 = vpop.xlane.xlu1 %1552  ;;  %7021 = vrcp.f32 %v9831_v0 }
 0xe08   : > { %v9837_v58 = vpop.xlane.xlu0 %2506 }
 0xe0a   : > { %v9827_v25 = vpop.xlane.xlu1 %2030 }
 0xe0b   : > { %7023 = vrcp.f32 %v9827_v25  ;;  %v11246_v25 = vld [vmem:[#allocation42_spill] sm:$0xff] }
 0xe0c   : > { %v9845_v36 = vpop.xlane.xlu0 %2510  ;;  %7025 = vrcp.f32 %v9823_v48  ;;  %v7014_v48 = vpop.eup %7013 }
 0xe0d   : > { %7027 = vrcp.f32 %v9837_v58 }
 0xe0e   : > { %v9833_v28 = vpop.xlane.xlu1 %2034  ;;  %7029 = vrcp.f32 %v9845_v36 }
 0xe0f   : > { %7031 = vrcp.f32 %v9833_v28 }
 0xe10   : > { %v9851_v51 = vpop.xlane.xlu0 %2980  ;;  %v7016_v0 = vpop.eup %7015 }
 0xe11   : > { %7033 = vrcp.f32 %v9851_v51  ;;  %v7018_v58 = vpop.eup %7017 }
 0xe12   : > { %v9839_v29 = vpop.xlane.xlu1 %2504  ;;  %v7020_v28 = vpop.eup %7019 }
 0xe13   : > { %7035 = vrcp.f32 %v9839_v29  ;;  %v7022_v36 = vpop.eup %7021 }
 0xe14   : > { %v9859_v14 = vpop.xlane.xlu0 %2984 }
 0xe15   : > { %7037 = vrcp.f32 %v9859_v14  ;;  %v11247_v14 = vld [vmem:[#allocation74_spill] sm:$0xff] }
 0xe16   : > { %v9847_v7 = vpop.xlane.xlu1 %2508 }
 0xe17   : > { %7039 = vrcp.f32 %v9847_v7 }
 0xe18   : > { %v9867_v23 = vpop.xlane.xlu0 %3454 }
 0xe19   : > { %7041 = vrcp.f32 %v9867_v23  ;;  %v11248_v23 = vld [vmem:[#allocation76_spill] sm:$0xff] }
 0xe1a   : > { %v9853_v55 = vpop.xlane.xlu1 %2978 }
 0xe1b   : > { %7043 = vrcp.f32 %v9853_v55  ;;  %v1734_v55 = vmul.f32 %v7014_v48, %v11248_v23  ;;  %v11252_v23 = vld [vmem:[#allocation105_spill] sm:$0xff] }
 0xe1c   : > { %v9873_v11 = vpop.xlane.xlu0 %3458 }
 0xe1d   : > { %7045 = vrcp.f32 %v9873_v11 }
 0xe1e   : > { %v9861_v62 = vpop.xlane.xlu1 %2982 }
 0xe1f   : > { %7047 = vrcp.f32 %v9861_v62 }
 0xe20   : > { %v9881_v45 = vpop.xlane.xlu0 %1558 }
 0xe21   : > { %7049 = vrcp.f32 %v9881_v45 }
 0xe22   : > { %v9869_v59 = vpop.xlane.xlu1 %3452 }
 0xe23   : > { %7051 = vrcp.f32 %v9869_v59 }
 0xe24   : > { %v9891_v2 = vpop.xlane.xlu0 %1562 }
 0xe25   : > { %7053 = vrcp.f32 %v9891_v2  ;;  %v11250_v2 = vld [vmem:[#allocation106_spill] sm:$0xff] }
 0xe26   : > { %v9875_v37 = vpop.xlane.xlu1 %3456  ;;  %v2208_v48 = vmul.f32 %v7020_v28, %v11250_v2 }
 0xe28   : > { %v9902_v32 = vpop.xlane.xlu0 %2040 }
 0xe2a   : > { %v9883_v19 = vpop.xlane.xlu1 %1556 }
 0xe2e   : > { %v9893_v33 = vpop.xlane.xlu1 %1560 }
 0xe32   : > { %v9904_v24 = vpop.xlane.xlu1 %2038 }
 0xe36   : > { %v9829_v22 = vpop.f32.mrf.mxu0  ;;  %v9918_v18 = vpop.xlane.xlu1 %2042 }
 0xe38   : > { %v9835_v63 = vpop.f32.mrf.mxu0 }
 0xe39   : > { %11180 = vst [vmem:[#allocation60_spill] sm:$0xff] %v9835_v63 }
 0xe3a   : > { %v9841_v30 = vpop.f32.mrf.mxu0 }
 0xe3b   : > { %11181 = vst [vmem:[#allocation121_spill] sm:$0xff] %v9841_v30  ;;  %v11221_v30 = vld [vmem:[#allocation133_spill] sm:$0xff] }
 0xe3c   : > { %v9843_v39 = vpop.f32.mrf.mxu0 }
 0xe3d   : > { %11182 = vst [vmem:[#allocation89_spill] sm:$0xff] %v9843_v39 }
 0xe3e   : > { %v9849_v47 = vpop.f32.mrf.mxu0 }
 0xe3f   : > { %11183 = vst [vmem:[#allocation120_spill] sm:$0xff] %v9849_v47 }
 0xe40   : > { %v9855_v52 = vpop.f32.mrf.mxu0 }
 0xe41   : > { %11184 = vst [vmem:[#allocation90_spill] sm:$0xff] %v9855_v52 }
 0xe42   : > { %v9857_v5 = vpop.f32.mrf.mxu0 }
 0xe43   : > { %11185 = vst [vmem:[#allocation119_spill] sm:$0xff] %v9857_v5 }
 0xe44   : > { %v9863_v1 = vpop.f32.mrf.mxu0 }
 0xe45   : > { %11186 = vst [vmem:[#allocation122_spill] sm:$0xff] %v9863_v1 }
 0xe4e   : > { %v9865_v13 = vpop.f32.mrf.mxu0 }
 0xe4f   : > { %11187 = vst [vmem:[#allocation151_spill] sm:$0xff] %v9865_v13 }
 0xe50   : > { %v9871_v41 = vpop.f32.mrf.mxu0 }
 0xe51   : > { %11188 = vst [vmem:[#allocation63_spill] sm:$0xff] %v9871_v41 }
 0xe52   : > { %v9877_v34 = vpop.f32.mrf.mxu0 }
 0xe53   : > { %11189 = vst [vmem:[#allocation62_spill] sm:$0xff] %v9877_v34 }
 0xe54   : > { %v9879_v8 = vpop.f32.mrf.mxu0 }
 0xe55   : > { %11190 = vst [vmem:[#allocation92_spill] sm:$0xff] %v9879_v8 }
 0xe83   : > { %v9885_v6 = vpop.f32.mrf.mxu0 }
 0xe84   : > { %11191 = vst [vmem:[#allocation61_spill] sm:$0xff] %v9885_v6 }
 0xe85   : > { %v9887_v38 = vpop.f32.mrf.mxu0 }
 0xe86   : > { %11192 = vst [vmem:[#allocation94_spill] sm:$0xff] %v9887_v38 }
 0xe87   : > { %v9889_v53 = vpop.f32.mrf.mxu0 }
 0xe88   : > { %11193 = vst [vmem:[#allocation64_spill] sm:$0xff] %v9889_v53 }
 0xe89   : > { %v9895_v3 = vpop.f32.mrf.mxu0 }
 0xe8a   : > { %11194 = vst [vmem:[#allocation124_spill] sm:$0xff] %v9895_v3 }
 0xe8b   : > { %v6486_v40 = vpop.f32.mrf.mxu0 }
 0xe8c   : > { %v9899_v57 = vsel %vm837_vm1, -1e+30, %v6486_v40  ;;  %v9916_v40 = vpop.xlane.xlu0 %2044 }
 0xe8d   : > { %4324 = vmax.xlane.f32.xlu0 %v9899_v57  ;;  %v4241_v31 = vpop.f32.mrf.mxu0 }
 0xe8e   : > { %v9908_v43 = vsel %vm837_vm1, -1e+30, %v4241_v31 }
 0xe8f   : > { %v6487_v60 = vpop.f32.mrf.mxu0 }
 0xe90   : > { %v9922_v42 = vsel %vm837_vm1, -1e+30, %v6487_v60  ;;  %v9935_v13 = vpop.xlane.xlu0 %2514  ;;  %v9937_v60 = vpop.xlane.xlu1 %2512 }
 0xe91   : > { %4320 = vmax.xlane.f32.xlu0 %v9908_v43  ;;  %v4244_v50 = vpop.f32.mrf.mxu0 }
 0xe92   : > { %v9913_v16 = vsel %vm837_vm1, -1e+30, %v4244_v50 }
 0xe93   : > { %4322 = vmax.xlane.f32.xlu1 %v9913_v16  ;;  %v6490_v54 = vpop.f32.mrf.mxu0 }
 0xe94   : > { %v9927_v46 = vsel %vm837_vm1, -1e+30, %v6490_v54  ;;  %v9954_v38 = vpop.xlane.xlu0 %2518 }
 0xe95   : > { %4326 = vmax.xlane.f32.xlu0 %v9922_v42  ;;  %v4257_v31 = vpop.f32.mrf.mxu0  ;;  %11195 = vst [vmem:[#allocation91_spill] sm:$0xff] %v9927_v46 }
 0xe96   : > { %v9941_v34 = vsel %vm837_vm1, -1e+30, %v4257_v31  ;;  %v9956_v31 = vpop.xlane.xlu1 %2516 }
 0xe97   : > { %4332 = vmax.xlane.f32.xlu1 %v9927_v46  ;;  %v6491_v50 = vpop.f32.mrf.mxu0  ;;  %11197 = vst [vmem:[#allocation93_spill] sm:$0xff] %v9941_v34  ;;  %v11211_v46 = vld [vmem:[#allocation99_spill] sm:$0xff] }
 0xe98   : > { %v9932_v8 = vsel %vm837_vm1, -1e+30, %v6491_v50 }
 0xe99   : > { %11196 = vst [vmem:[#allocation126_spill] sm:$0xff] %v9932_v8  ;;  %4334 = vmax.xlane.f32.xlu0 %v9932_v8  ;;  %v4260_v41 = vpop.f32.mrf.mxu0 }
 0xe9a   : > { %v9946_v53 = vsel %vm837_vm1, -1e+30, %v4260_v41 }
 0xe9b   : > { %4328 = vmax.xlane.f32.xlu1 %v9941_v34  ;;  %v6494_v54 = vpop.f32.mrf.mxu0  ;;  %11198 = vst [vmem:[#allocation153_spill] sm:$0xff] %v9946_v53  ;;  %v11209_v34 = vld [vmem:[#allocation71_spill] sm:$0xff] }
 0xe9c   : > { %v9951_v6 = vsel %vm837_vm1, -1e+30, %v6494_v54 }
 0xe9d   : > { %4330 = vmax.xlane.f32.xlu0 %v9946_v53  ;;  %v4273_v50 = vpop.f32.mrf.mxu0  ;;  %11199 = vst [vmem:[#allocation123_spill] sm:$0xff] %v9951_v6 }
 0xe9e   : > { %v9965_v52 = vsel %vm837_vm1, -1e+30, %v4273_v50 }
 0xe9f   : > { %4340 = vmax.xlane.f32.xlu1 %v9951_v6  ;;  %v6495_v3 = vpop.f32.mrf.mxu0  ;;  %11201 = vst [vmem:[#allocation125_spill] sm:$0xff] %v9965_v52  ;;  %v9973_v6 = vpop.xlane.xlu0 %2988 }
 0xea0   : > { %v9960_v1 = vsel %vm837_vm1, -1e+30, %v6495_v3  ;;  %v9975_v3 = vpop.xlane.xlu1 %2986 }
 0xea1   : > { %11200 = vst [vmem:[#allocation155_spill] sm:$0xff] %v9960_v1  ;;  %4342 = vmax.xlane.f32.xlu0 %v9960_v1  ;;  %v4276_v41 = vpop.f32.mrf.mxu0 }
 0xea2   : > { %v9970_v5 = vsel %vm837_vm1, -1e+30, %v4276_v41 }
 0xea3   : > { %4336 = vmax.xlane.f32.xlu1 %v9965_v52  ;;  %v6498_v54 = vpop.f32.mrf.mxu0  ;;  %11202 = vst [vmem:[#allocation152_spill] sm:$0xff] %v9970_v5  ;;  %v9992_v53 = vpop.xlane.xlu0 %2992 }
 0xea4   : > { %v9979_v1 = vsel %vm837_vm1, -1e+30, %v6498_v54  ;;  %v9994_v54 = vpop.xlane.xlu1 %2990 }
 0xea5   : > { %4338 = vmax.xlane.f32.xlu0 %v9970_v5  ;;  %v4289_v47 = vpop.f32.mrf.mxu0  ;;  %11203 = vst [vmem:[#allocation154_spill] sm:$0xff] %v9979_v1 }
 0xea6   : > { %v9989_v5 = vsel %vm837_vm1, -1e+30, %v4289_v47 }
 0xea7   : > { %4348 = vmax.xlane.f32.xlu1 %v9979_v1  ;;  %v6499_v50 = vpop.f32.mrf.mxu0  ;;  %11205 = vst [vmem:[#allocation66_spill] sm:$0xff] %v9989_v5 }
 0xea8   : > { %v9984_v52 = vsel %vm837_vm1, -1e+30, %v6499_v50  ;;  %v11207_v50 = vld [vmem:[#allocation70_spill] sm:$0xff]  ;;  %v10005_v47 = vpop.xlane.xlu1 %3460 }
 0xea9   : > { %11204 = vst [vmem:[#allocation67_spill] sm:$0xff] %v9984_v52  ;;  %4350 = vmax.xlane.f32.xlu0 %v9984_v52  ;;  %v4292_v41 = vpop.f32.mrf.mxu0  ;;  %v10003_v52 = vpop.xlane.xlu0 %3462  ;;  %11208 = vst [vmem:[#allocation65_spill] sm:$0xff] %v10005_v47  ;;  %v11217_v47 = vld [vmem:[#allocation131_spill] sm:$0xff] }
 0xeaa   : > { %v9998_v1 = vsel %vm837_vm1, -1e+30, %v4292_v41  ;;  %v11212_v41 = vld [vmem:[#allocation72_spill] sm:$0xff] }
 0xeab   : > { %4344 = vmax.xlane.f32.xlu1 %v9989_v5  ;;  %11206 = vst [vmem:[#allocation97_spill] sm:$0xff] %v9998_v1  ;;  %v11210_v5 = vld [vmem:[#allocation69_spill] sm:$0xff] }
 0xeac   : > { %v10012_v56 = vpop.xlane.xlu1 %3464 }
 0xead   : > { %4346 = vmax.xlane.f32.xlu0 %v9998_v1  ;;  %v10010_v39 = vpop.xlane.xlu0 %3466  ;;  %v11213_v1 = vld [vmem:[#allocation102_spill] sm:$0xff] }
 0xeaf   : > { %1572 = vadd.xlane.f32.xlu1 %v11207_v50  ;;  %v11214_v50 = vld [vmem:[#allocation101_spill] sm:$0xff] }
 0xeb0   : > { %v10019_v8 = vpop.xlane.xlu1 %1564 }
 0xeb1   : > { %3948 = vadd.xlane.f32.xlu0 %v9708_v17  ;;  %v10017_v17 = vpop.xlane.xlu0 %1566  ;;  %11216 = vst [vmem:[#allocation68_spill] sm:$0xff] %v10019_v8  ;;  %v11224_v8 = vld [vmem:[#allocation163_spill] sm:$0xff] }
 0xeb2   : > { %11215 = vst [vmem:[#allocation96_spill] sm:$0xff] %v10017_v17 }
 0xeb3   : > { %1576 = vadd.xlane.f32.xlu1 %v11209_v34  ;;  %v11218_v34 = vld [vmem:[#allocation100_spill] sm:$0xff] }
 0xeb4   : > { %v10026_v63 = vpop.xlane.xlu1 %1568 }
 0xeb5   : > { %1574 = vadd.xlane.f32.xlu0 %v11210_v5  ;;  %v11219_v5 = vld [vmem:[#allocation134_spill] sm:$0xff]  ;;  %11220 = vst [vmem:[#allocation129_spill] sm:$0xff] %v10026_v63  ;;  %v11226_v63 = vld [vmem:[#allocation161_spill] sm:$0xff] }
 0xeb7   : > { %2054 = vadd.xlane.f32.xlu1 %v11211_v46  ;;  %v10024_v46 = vpop.xlane.xlu0 %1570 }
 0xeb8   : > { %v10033_v17 = vpop.xlane.xlu1 %2046 }
 0xeb9   : > { %1578 = vadd.xlane.f32.xlu0 %v11212_v41  ;;  %v11222_v41 = vld [vmem:[#allocation160_spill] sm:$0xff] }
 0xebb   : > { %2058 = vadd.xlane.f32.xlu1 %v11213_v1  ;;  %v11223_v1 = vld [vmem:[#allocation132_spill] sm:$0xff] }
 0xebd   : > { %2056 = vadd.xlane.f32.xlu0 %v11214_v50  ;;  %v10031_v50 = vpop.xlane.xlu0 %2048 }
 0xebf   : > { %2528 = vadd.xlane.f32.xlu1 %v11217_v47  ;;  %v11225_v47 = vld [vmem:[#allocation162_spill] sm:$0xff] }
 0xec1   : > { %2060 = vadd.xlane.f32.xlu0 %v11218_v34  ;;  %v10038_v34 = vpop.xlane.xlu0 %2052 }
 0xec3   : > { %2532 = vadd.xlane.f32.xlu1 %v11219_v5  ;;  %v10040_v5 = vpop.xlane.xlu1 %2050 }
 0xec5   : > { %2530 = vadd.xlane.f32.xlu0 %v11221_v30  ;;  %v10045_v30 = vpop.xlane.xlu0 %2522 }
 0xec7   : > { %3002 = vadd.xlane.f32.xlu1 %v11222_v41  ;;  %v10047_v41 = vpop.xlane.xlu1 %2520 }
 0xec8   : > { %11227 = vst [vmem:[#allocation95_spill] sm:$0xff] %v10047_v41 }
 0xec9   : > { %2534 = vadd.xlane.f32.xlu0 %v11223_v1  ;;  %v11231_v1 = vld [vmem:[#allocation31_spill] sm:$0xff] }
 0xecb   : > { %3006 = vadd.xlane.f32.xlu1 %v11224_v8  ;;  %v10054_v8 = vpop.xlane.xlu1 %2524 }
 0xecc   : > { %11228 = vst [vmem:[#allocation128_spill] sm:$0xff] %v10054_v8  ;;  %v11235_v8 = vld [vmem:[#allocation29_spill] sm:$0xff] }
 0xecd   : > { %3004 = vadd.xlane.f32.xlu0 %v11225_v47 }
 0xecf   : > { %3476 = vadd.xlane.f32.xlu1 %v9467_v10  ;;  %v10052_v10 = vpop.xlane.xlu0 %2526 }
 0xed1   : > { %3008 = vadd.xlane.f32.xlu0 %v11226_v63  ;;  %v11229_v63 = vld [vmem:[#allocation28_spill] sm:$0xff] }
 0xed3   : > { %3480 = vadd.xlane.f32.xlu1 %v9473_v61  ;;  %v10061_v61 = vpop.xlane.xlu1 %2994 }
 0xed4   : > { %11230 = vst [vmem:[#allocation98_spill] sm:$0xff] %v10061_v61  ;;  %v11238_v61 = vld [vmem:[#allocation37_spill] sm:$0xff] }
 0xed5   : > { %3478 = vadd.xlane.f32.xlu0 %v9471_v44  ;;  %v10059_v44 = vpop.xlane.xlu0 %2996 }
 0xed7   : > { %3950 = vadd.xlane.f32.xlu1 %v9760_v35  ;;  %v11232_v35 = vld [vmem:[#allocation30_spill] sm:$0xff]  ;;  %v10068_v47 = vpop.xlane.xlu1 %2998 }
 0xed9   : > { %3482 = vadd.xlane.f32.xlu0 %v9469_v21  ;;  %v11233_v21 = vld [vmem:[#allocation32_spill] sm:$0xff] }
 0xedb   : > { %3954 = vadd.xlane.f32.xlu1 %v9768_v27  ;;  %v10066_v27 = vpop.xlane.xlu0 %3000  ;;  %v10075_v41 = vpop.xlane.xlu1 %3468 }
 0xedc   : > { %11234 = vst [vmem:[#allocation158_spill] sm:$0xff] %v10066_v27 }
 0xedd   : > { %3952 = vadd.xlane.f32.xlu0 %v9765_v12  ;;  %v11236_v12 = vld [vmem:[#allocation35_spill] sm:$0xff] }
 0xedf   : > { %1082 = vadd.xlane.f32.xlu1 %v11229_v63  ;;  %v11237_v63 = vld [vmem:[#allocation34_spill] sm:$0xff]  ;;  %v10082_v27 = vpop.xlane.xlu1 %3472 }
 0xee1   : > { %3956 = vadd.xlane.f32.xlu0 %v9763_v26  ;;  %v10073_v26 = vpop.xlane.xlu0 %3470 }
 0xee3   : > { %1086 = vadd.xlane.f32.xlu1 %v11231_v1  ;;  %v11239_v1 = vld [vmem:[#allocation33_spill] sm:$0xff] }
 0xee5   : > { %1084 = vadd.xlane.f32.xlu0 %v11232_v35  ;;  %v11240_v35 = vld [vmem:[#allocation39_spill] sm:$0xff] }
 0xee7   : > { %1090 = vadd.xlane.f32.xlu1 %v11233_v21  ;;  %v10080_v21 = vpop.xlane.xlu0 %3474 }
 0xee9   : > { %1088 = vadd.xlane.f32.xlu0 %v11235_v8  ;;  %v11241_v8 = vld [vmem:[#allocation36_spill] sm:$0xff] }
 0xeeb   : > { %1094 = vadd.xlane.f32.xlu1 %v11236_v12  ;;  %v11242_v12 = vld [vmem:[#allocation41_spill] sm:$0xff] }
 0xeed   : > { %1092 = vadd.xlane.f32.xlu0 %v11237_v63  ;;  %v3933_v63 = vpop.xlane.xlu0 %3932 }
 0xeef   : > { %1098 = vadd.xlane.f32.xlu1 %v11238_v61  ;;  %v11243_v61 = vld [vmem:[#allocation40_spill] sm:$0xff] }
 0xef1   : > { %1096 = vadd.xlane.f32.xlu0 %v11239_v1  ;;  %v3931_v1 = vpop.xlane.xlu1 %3930  ;;  %v3929_v49 = vpop.xlane.xlu0 %3928 }
 0xef3   : > { %1102 = vadd.xlane.f32.xlu1 %v11240_v35  ;;  %v1733_v35 = vmul.f32 %v7016_v0, %v11247_v14 }
 0xef5   : > { %1100 = vadd.xlane.f32.xlu0 %v11241_v8  ;;  %v3927_v20 = vpop.xlane.xlu1 %3926  ;;  %v10108_v29 = vpop.xlane.xlu0 %3940  ;;  %v1749_v62 = vpack.c.bf16 %v1734_v55, %v1733_v35  ;;  %v11251_v35 = vld [vmem:[#allocation103_spill] sm:$0xff]  ;;  %v2210_v55 = vmul.f32 %v7022_v36, %v11252_v23  ;;  %v11257_v23 = vld [vmem:[#allocation136_spill] sm:$0xff] }
 0xef6   : > { %v7024_v8 = vpop.eup %7023  ;;  %7055 = vrcp.f32 %v9875_v37 }
 0xef7   : > { %1106 = vadd.xlane.f32.xlu1 %v11242_v12  ;;  %v7026_v7 = vpop.eup %7025  ;;  %7057 = vrcp.f32 %v9902_v32 }
 0xef8   : > { %v7028_v12 = vpop.eup %7027  ;;  %7059 = vrcp.f32 %v9883_v19 }
 0xef9   : > { %1104 = vadd.xlane.f32.xlu0 %v11243_v61  ;;  %v10110_v51 = vpop.xlane.xlu1 %3938  ;;  %v7030_v11 = vpop.eup %7029  ;;  %v11249_v61 = vld [vmem:[#allocation104_spill] sm:$0xff]  ;;  %7061 = vrcp.f32 %v9916_v40 }
 0xefa   : > { %v10121_v45 = vpop.xlane.xlu0 %3936 }
 0xefb   : > { %1110 = vadd.xlane.f32.xlu1 %v11244_v4  ;;  %v2207_v4 = vmul.f32 %v7024_v8, %v11249_v61 }
 0xefd   : > { %1108 = vadd.xlane.f32.xlu0 %v11245_v15  ;;  %v7032_v15 = vpop.eup %7031  ;;  %v10123_v59 = vpop.xlane.xlu1 %3934  ;;  %7063 = vrcp.f32 %v3931_v1  ;;  %v2223_v14 = vpack.c.bf16 %v2208_v48, %v2207_v4  ;;  %v11255_v48 = vld [vmem:[#allocation75_spill] sm:$0xff] }
 0xefe   : > { %v2209_v32 = vmul.f32 %v7032_v15, %v11251_v35  ;;  %v10136_v1 = vpop.xlane.xlu0 %3944  ;;  %v11254_v15 = vld [vmem:[#allocation135_spill] sm:$0xff] }
 0xf01   : > { %1112 = vadd.xlane.f32.xlu0 %v11246_v25  ;;  %v7034_v25 = vpop.eup %7033  ;;  %7065 = vrcp.f32 %v9893_v33  ;;  %v10138_v4 = vpop.xlane.xlu1 %3946  ;;  %v2224_v33 = vpack.c.bf16 %v2210_v55, %v2209_v32 }
 0xf02   : > { %v7036_v0 = vpop.eup %7035  ;;  %7067 = vrcp.f32 %v3933_v63 }
 0xf03   : > { %v7038_v37 = vpop.eup %7037  ;;  %7069 = vrcp.f32 %v3927_v20  ;;  %v11256_v20 = vld [vmem:[#allocation137_spill] sm:$0xff]  ;;  %v2681_v32 = vmul.f32 %v7036_v0, %v11257_v23 }
 0xf04   : > { %v7040_v8 = vpop.eup %7039  ;;  %7071 = vrcp.f32 %v9935_v13  ;;  %v2684_v36 = vmul.f32 %v7030_v11, %v11256_v20 }
 0xf05   : > { %v10130_v19 = vpop.eup %7041  ;;  %v2683_v2 = vmul.f32 %v7040_v8, %v11254_v15  ;;  %7073 = vrcp.f32 %v3929_v49  ;;  %v11258_v8 = vld [vmem:[#allocation164_spill] sm:$0xff] }
 0xf06   : > { %v7044_v28 = vpop.eup %7043  ;;  %7075 = vrcp.f32 %v9904_v24  ;;  %v11259_v24 = vld [vmem:[#allocation138_spill] sm:$0xff] }
 0xf07   : > { %v7046_v61 = vpop.eup %7045  ;;  %7077 = vrcp.f32 %v9954_v38  ;;  %v2682_v11 = vmul.f32 %v7028_v12, %v11259_v24  ;;  %v10159_v38 = vpop.xlane.xlu1 %3942 }
 0xf08   : > { %v7048_v63 = vpop.eup %7047  ;;  %7079 = vrcp.f32 %v9918_v18  ;;  %v11260_v18 = vld [vmem:[#allocation166_spill] sm:$0xff] }
 0xf09   : > { %v10142_v35 = vpop.eup %7049  ;;  %7081 = vrcp.f32 %v9973_v6  ;;  %v3158_v0 = vmul.f32 %v7038_v37, %v11260_v18  ;;  %v2697_v6 = vpack.c.bf16 %v2682_v11, %v2681_v32  ;;  %v11266_v18 = vld [vmem:[#allocation121_spill] sm:$0xff] }
 0xf0a   : > { %v7052_v13 = vpop.eup %7051  ;;  %7083 = vrcp.f32 %v9937_v60 }
 0xf0b   : > { %v10149_v55 = vpop.eup %7053  ;;  %7085 = vrcp.f32 %v9992_v53 }
 0xf0c   : > { %4609 = vrot.lane.b32.xlu1 %v1749_v62, %s7567_s21  ;;  %v11253_v62 = vld [vmem:[#allocation73_spill] sm:$0xff]  ;;  %v7056_v15 = vpop.eup %7055  ;;  %7087 = vrcp.f32 %v9956_v31 }
 0xf0d   : > { %v1735_v40 = vmul.f32 %v7026_v7, %v11253_v62  ;;  %v3157_v62 = vmul.f32 %v7048_v63, %v11258_v8 }
 0xf10   : > { %4633 = vrot.lane.b32.xlu1 %v2223_v14, %s7568_s16  ;;  %v1736_v14 = vmul.f32 %v7018_v58, %v11255_v48  ;;  %v2698_v58 = vpack.c.bf16 %v2684_v36, %v2683_v2  ;;  %v11262_v48 = vld [vmem:[#allocation167_spill] sm:$0xff]  ;;  %v3172_v36 = vpack.c.bf16 %v3158_v0, %v3157_v62 }
 0xf11   : > { %v3156_v12 = vmul.f32 %v7034_v25, %v11262_v48 }
 0xf12   : > { %v1750_v7 = vpack.c.bf16 %v1736_v14, %v1735_v40  ;;  %v11261_v40 = vld [vmem:[#allocation165_spill] sm:$0xff] }
 0xf13   : > { %v3155_v2 = vmul.f32 %v7044_v28, %v11261_v40 }
 0xf14   : > { %4635 = vrot.lane.b32.xlu1 %v2224_v33, %s7568_s16  ;;  %v10156_v33 = vpop.eup %7057  ;;  %7089 = vrcp.f32 %v10003_v52 }
 0xf15   : > { %v10164_v63 = vpop.eup %7059  ;;  %7091 = vrcp.f32 %v9975_v3  ;;  %v3171_v25 = vpack.c.bf16 %v3156_v12, %v3155_v2  ;;  %v11267_v2 = vld [vmem:[#allocation60_spill] sm:$0xff] }
 0xf16   : > { %v4325_v49 = vpop.xlane.xlu0 %4324  ;;  %v10168_v14 = vpop.eup %7061  ;;  %7093 = vrcp.f32 %v10010_v39 }
 0xf17   : > { %4611 = vrot.lane.b32.xlu0 %v1750_v7, %s7567_s21  ;;  %v4354_v60 = vsub.f32 %v9899_v57, %v4325_v49  ;;  %v3631_v7 = vmul.f32 %v7056_v15, %v9491_v9  ;;  %v7064_v37 = vpop.eup %7063  ;;  %v11263_v57 = vld [vmem:[#allocation181_spill] sm:$0xff]  ;;  %v11264_v49 = vld [vmem:[#allocation180_spill] sm:$0xff]  ;;  %7095 = vrcp.f32 %v9994_v54 }
 0xf18   : > { %4659 = vrot.lane.b32.xlu1 %v2698_v58, %s7569_s8  ;;  %v7066_v53 = vpop.eup %7065  ;;  %v3632_v23 = vmul.f32 %v7046_v61, %v11263_v57  ;;  %v4105_v15 = vmul.f32 %v7064_v37, %v9829_v22  ;;  %7097 = vrcp.f32 %v10012_v56  ;;  %v11270_v37 = vld [vmem:[#allocation89_spill] sm:$0xff]  ;;  %v11272_v57 = vld [vmem:[#allocation91_spill] sm:$0xff] }
 0xf19   : > { %v7068_v32 = vpop.eup %7067  ;;  %v4372_v8 = vmul.f32 1.442695, %v4354_v60  ;;  %v11268_v60 = vld [vmem:[#allocation77_spill] sm:$0xff] }
 0xf1a   : > { %v4321_v20 = vpop.xlane.xlu0 %4320  ;;  %v7070_v58 = vpop.eup %7069  ;;  %v3646_v62 = vpack.c.bf16 %v3632_v23, %v3631_v7  ;;  %v4106_v22 = vmul.f32 %v7068_v32, %v11266_v18 }
 0xf1b   : > { %v4352_v28 = vsub.f32 %v9908_v43, %v4321_v20  ;;  %4657 = vrot.lane.b32.xlu0 %v2697_v6, %s7569_s8  ;;  %v3629_v43 = vmul.f32 %v7052_v13, %v11264_v49  ;;  %v10184_v24 = vpop.eup %7071  ;;  %v4103_v6 = vmul.f32 %v7070_v58, %v11267_v2 }
 0xf1c   : > { %4683 = vrot.lane.b32.xlu1 %v3172_v36, %s7570_s23  ;;  %v4323_v31 = vpop.xlane.xlu1 %4322  ;;  %v7074_v11 = vpop.eup %7073  ;;  %v4120_v12 = vpack.c.bf16 %v4106_v22, %v4105_v15  ;;  %v11269_v36 = vld [vmem:[#allocation126_spill] sm:$0xff] }
 0xf1d   : > { %v4368_v9 = vmul.f32 1.442695, %v4352_v28  ;;  %v4353_v52 = vsub.f32 %v9913_v16, %v4323_v31  ;;  %v11265_v16 = vld [vmem:[#allocation182_spill] sm:$0xff]  ;;  %v7076_v0 = vpop.eup %7075  ;;  %v4104_v28 = vmul.f32 %v7074_v11, %v11270_v37  ;;  %v11282_v37 = vld [vmem:[#allocation155_spill] sm:$0xff] }
 0xf1e   : > { %v4327_v3 = vpop.xlane.xlu0 %4326  ;;  %v3630_v13 = vmul.f32 %v10130_v19, %v11265_v16  ;;  %v1739_v19 = vmul.f32 %v7066_v53, %v11268_v60  ;;  %v11276_v16 = vld [vmem:[#allocation107_spill] sm:$0xff] }
 0xf1f   : > { %v4370_v61 = vmul.f32 1.442695, %v4353_v52  ;;  %v4355_v39 = vsub.f32 %v9922_v42, %v4327_v3  ;;  %4681 = vrot.lane.b32.xlu0 %v3171_v25, %s7570_s23  ;;  %7099 = vpow2.f32 %v4368_v9  ;;  %v7078_v42 = vpop.eup %7077  ;;  %v11271_v25 = vld [vmem:[#allocation65_spill] sm:$0xff]  ;;  %v11273_v9 = vld [vmem:[#allocation79_spill] sm:$0xff]  ;;  %v11274_v52 = vld [vmem:[#allocation78_spill] sm:$0xff] }
 0xf20   : > { %4707 = vrot.lane.b32.xlu1 %v3646_v62, %s7571_s18  ;;  %v4333_v54 = vpop.xlane.xlu1 %4332  ;;  %v3645_v56 = vpack.c.bf16 %v3630_v13, %v3629_v43  ;;  %v7080_v20 = vpop.eup %7079  ;;  %v1740_v53 = vmul.f32 %v10149_v55, %v11273_v9  ;;  %v1737_v49 = vmul.f32 %v10164_v63, %v11274_v52  ;;  %v4119_v62 = vpack.c.bf16 %v4104_v28, %v4103_v6  ;;  %v11285_v9 = vld [vmem:[#allocation141_spill] sm:$0xff]  ;;  %v11286_v52 = vld [vmem:[#allocation140_spill] sm:$0xff] }
 0xf21   : > { %7101 = vpow2.f32 %v4370_v61  ;;  %v4374_v40 = vmul.f32 1.442695, %v4355_v39  ;;  %v10198_v31 = vpop.eup %7081  ;;  %v4358_v23 = vsub.f32 %v11272_v57, %v4333_v54  ;;  %v2213_v13 = vmul.f32 %v7080_v20, %v11276_v16  ;;  %v11277_v54 = vld [vmem:[#allocation153_spill] sm:$0xff] }
 0xf22   : > { %7103 = vpow2.f32 %v4372_v8  ;;  %v4335_v48 = vpop.xlane.xlu0 %4334  ;;  %v7084_v43 = vpop.eup %7083  ;;  %v11275_v8 = vld [vmem:[#allocation93_spill] sm:$0xff]  ;;  %v1752_v39 = vpack.c.bf16 %v1740_v53, %v1739_v19  ;;  %v2688_v53 = vmul.f32 %v7078_v42, %v11285_v9  ;;  %v11296_v9 = vld [vmem:[#allocation154_spill] sm:$0xff] }
 0xf23   : > { %7105 = vpow2.f32 %v4374_v40  ;;  %v4359_v7 = vsub.f32 %v11269_v36, %v4335_v48  ;;  %4705 = vrot.lane.b32.xlu0 %v3645_v56, %s7571_s18  ;;  %v7086_v15 = vpop.eup %7085  ;;  %v11279_v56 = vld [vmem:[#allocation109_spill] sm:$0xff]  ;;  %v11281_v36 = vld [vmem:[#allocation139_spill] sm:$0xff] }
 0xf24   : > { %7107 = vrcp.f32 %v11271_v25  ;;  %4731 = vrot.lane.b32.xlu1 %v4120_v12, %s7572_s3  ;;  %v4329_v32 = vpop.xlane.xlu1 %4328  ;;  %v7088_v11 = vpop.eup %7087  ;;  %v2214_v2 = vmul.f32 %v10168_v14, %v11279_v56  ;;  %v11280_v12 = vld [vmem:[#allocation108_spill] sm:$0xff]  ;;  %v11283_v25 = vld [vmem:[#allocation110_spill] sm:$0xff] }
 0xf25   : > { %7109 = vrcp.f32 %v10108_v29  ;;  %v4382_v58 = vmul.f32 1.442695, %v4359_v7  ;;  %v4356_v3 = vsub.f32 %v11275_v8, %v4329_v32  ;;  %v11278_v29 = vld [vmem:[#allocation80_spill] sm:$0xff]  ;;  %v10216_v22 = vpop.eup %7089  ;;  %v2211_v60 = vmul.f32 %v7076_v0, %v11280_v12 }
 0xf26   : > { %7111 = vrcp.f32 %v10110_v51  ;;  %v4331_v61 = vpop.xlane.xlu0 %4330  ;;  %v1738_v18 = vmul.f32 %v10142_v35, %v11278_v29  ;;  %v4380_v51 = vmul.f32 1.442695, %v4358_v23  ;;  %v2226_v20 = vpack.c.bf16 %v2214_v2, %v2213_v13  ;;  %v11284_v23 = vld [vmem:[#allocation123_spill] sm:$0xff]  ;;  %v11288_v13 = vld [vmem:[#allocation142_spill] sm:$0xff]  ;;  %v11290_v29 = vld [vmem:[#allocation152_spill] sm:$0xff] }
 0xf27   : > { %7113 = vrcp.f32 %v10121_v45  ;;  %v4376_v55 = vmul.f32 1.442695, %v4356_v3  ;;  %v4357_v63 = vsub.f32 %v11277_v54, %v4331_v61  ;;  %4729 = vrot.lane.b32.xlu0 %v4119_v62, %s7572_s3  ;;  %v7092_v45 = vpop.eup %7091  ;;  %v2687_v7 = vmul.f32 %v7088_v11, %v11281_v36  ;;  %v11287_v3 = vld [vmem:[#allocation125_spill] sm:$0xff] }
 0xf28   : > { %7115 = vrcp.f32 %v10123_v59  ;;  %4615 = vrot.lane.b32.xlu1 %v1752_v39, %s7567_s21  ;;  %v4341_v40 = vpop.xlane.xlu1 %4340  ;;  %v1751_v48 = vpack.c.bf16 %v1738_v18, %v1737_v49  ;;  %v7094_v19 = vpop.eup %7093  ;;  %v2212_v14 = vmul.f32 %v10156_v33, %v11283_v25  ;;  %v2685_v49 = vmul.f32 %v7084_v43, %v11286_v52  ;;  %v11297_v52 = vld [vmem:[#allocation185_spill] sm:$0xff] }
 0xf29   : > { %7117 = vpow2.f32 %v4382_v58  ;;  %v4378_v6 = vmul.f32 1.442695, %v4357_v63  ;;  %v7096_v59 = vpop.eup %7095  ;;  %v4362_v32 = vsub.f32 %v11284_v23, %v4341_v40  ;;  %v2700_v16 = vpack.c.bf16 %v2688_v53, %v2687_v7 }
 0xf2a   : > { %7119 = vpow2.f32 %v4376_v55  ;;  %v4343_v35 = vpop.xlane.xlu0 %4342  ;;  %v7098_v57 = vpop.eup %7097  ;;  %v2225_v61 = vpack.c.bf16 %v2212_v14, %v2211_v60  ;;  %v2686_v11 = vmul.f32 %v10184_v24, %v11288_v13  ;;  %v11289_v55 = vld [vmem:[#allocation168_spill] sm:$0xff]  ;;  %v11291_v24 = vld [vmem:[#allocation170_spill] sm:$0xff]  ;;  %v11294_v14 = vld [vmem:[#allocation67_spill] sm:$0xff] }
 0xf2b   : > { %7121 = vpow2.f32 %v4378_v6  ;;  %v4363_v28 = vsub.f32 %v11282_v37, %v4343_v35  ;;  %4613 = vrot.lane.b32.xlu0 %v1751_v48, %s7567_s21  ;;  %v3161_v54 = vmul.f32 %v7096_v59, %v11289_v55  ;;  %v4388_v40 = vmul.f32 1.442695, %v4362_v32  ;;  %v11292_v35 = vld [vmem:[#allocation169_spill] sm:$0xff]  ;;  %v11293_v37 = vld [vmem:[#allocation183_spill] sm:$0xff]  ;;  %v11300_v55 = vld [vmem:[#allocation186_spill] sm:$0xff] }
 0xf2c   : > { %7123 = vpow2.f32 %v4380_v51  ;;  %4639 = vrot.lane.b32.xlu1 %v2226_v20, %s7568_s16  ;;  %v4337_v0 = vpop.xlane.xlu1 %4336  ;;  %v10232_v58 = vpop.eup %7099  ;;  %v2699_v2 = vpack.c.bf16 %v2686_v11, %v2685_v49  ;;  %v3162_v6 = vmul.f32 %v7086_v15, %v11291_v24  ;;  %v3159_v20 = vmul.f32 %v7092_v45, %v11292_v35  ;;  %v11295_v15 = vld [vmem:[#allocation171_spill] sm:$0xff] }
 0xf2d   : > { %v4390_v8 = vmul.f32 1.442695, %v4363_v28  ;;  %v4360_v62 = vsub.f32 %v11287_v3, %v4337_v0  ;;  %v3635_v28 = vmul.f32 %v7098_v57, %v11293_v37  ;;  %v3160_v32 = vmul.f32 %v10198_v31, %v11295_v15  ;;  %v11298_v57 = vld [vmem:[#allocation184_spill] sm:$0xff] }
 0xf2e   : > { %v10235_v39 = vpop.eup %7101  ;;  %v4339_v33 = vpop.xlane.xlu0 %4338  ;;  %v3174_v59 = vpack.c.bf16 %v3162_v6, %v3161_v54  ;;  %v3636_v49 = vmul.f32 %v7094_v19, %v11297_v52  ;;  %v3634_v54 = vmul.f32 %v10216_v22, %v11300_v55  ;;  %v11302_v19 = vld [vmem:[#allocation97_spill] sm:$0xff] }
 0xf2f   : > { %v10240_v63 = vpop.eup %7103  ;;  %v4384_v42 = vmul.f32 1.442695, %v4360_v62  ;;  %v4361_v43 = vsub.f32 %v11290_v29, %v4339_v33  ;;  %4637 = vrot.lane.b32.xlu0 %v2225_v61, %s7568_s16  ;;  %v4432_v18 = vpack.c.bf16 %v10235_v39, %v10232_v58  ;;  %7125 = vpow2.f32 %v4390_v8  ;;  %v11299_v61 = vld [vmem:[#allocation66_spill] sm:$0xff] }
 0xf30   : > { %v10246_v51 = vpop.eup %7105  ;;  %4663 = vrot.lane.b32.xlu1 %v2700_v16, %s7569_s8  ;;  %v4349_v56 = vpop.xlane.xlu1 %4348  ;;  %v3173_v16 = vpack.c.bf16 %v3160_v32, %v3159_v20  ;;  %v3648_v31 = vpack.c.bf16 %v3636_v49, %v3635_v28  ;;  %v11304_v20 = vld [vmem:[#allocation90_spill] sm:$0xff] }
 0xf31   : > { %v7108_v48 = vpop.eup %7107  ;;  %v4433_v12 = vpack.c.bf16 %v10246_v51, %v10240_v63  ;;  %v4386_v60 = vmul.f32 1.442695, %v4361_v43  ;;  %6516 = vmatprep.mubr.bf16.mxu0 %v4432_v18  ;;  %7127 = vpow2.f32 %v4384_v42  ;;  %v4366_v45 = vsub.f32 %v11296_v9, %v4349_v56  ;;  %v11301_v42 = vld [vmem:[#allocation120_spill] sm:$0xff] }
 0xf32   : > { %v7110_v36 = vpop.eup %7109  ;;  %v4351_v7 = vpop.xlane.xlu0 %4350  ;;  %v3633_v8 = vmul.f32 %v7108_v48, %v11298_v57  ;;  %v11303_v48 = vld [vmem:[#allocation119_spill] sm:$0xff] }
 0xf33   : > { %v7112_v25 = vpop.eup %7111  ;;  %7129 = vpow2.f32 %v4386_v60  ;;  %v4367_v23 = vsub.f32 %v11294_v14, %v4351_v7  ;;  %4661 = vrot.lane.b32.xlu0 %v2699_v2, %s7569_s8  ;;  %6517 = vmatmul.mubr.bf16.vlgmr.msra.gmra.mxu0 %v4433_v12  ;;  %v4396_v2 = vmul.f32 1.442695, %v4366_v45  ;;  %v4110_v12 = vmul.f32 %v7110_v36, %v11303_v48  ;;  %v11305_v36 = vld [vmem:[#allocation122_spill] sm:$0xff] }
 0xf34   : > { %v7114_v0 = vpop.eup %7113  ;;  %7131 = vpow2.f32 %v4388_v40  ;;  %4687 = vrot.lane.b32.xlu1 %v3174_v59, %s7570_s23  ;;  %v4345_v53 = vpop.xlane.xlu1 %4344  ;;  %v4109_v29 = vmul.f32 %v7112_v25, %v11301_v42  ;;  %v3647_v6 = vpack.c.bf16 %v3634_v54, %v3633_v8 }
 0xf35   : > { %v7116_v3 = vpop.eup %7115  ;;  %v4398_v62 = vmul.f32 1.442695, %v4367_v23  ;;  %v4364_v33 = vsub.f32 %v11299_v61, %v4345_v53  ;;  %v4108_v25 = vmul.f32 %v7114_v0, %v11305_v36 }
 0xf36   : > { %v10263_v13 = vpop.eup %7117  ;;  %v4347_v11 = vpop.xlane.xlu0 %4346  ;;  %v4107_v7 = vmul.f32 %v7116_v3, %v11304_v20  ;;  %v4122_v37 = vpack.c.bf16 %v4110_v12, %v4109_v29 }
 0xf37   : > { %v10268_v43 = vpop.eup %7119  ;;  %v4392_v18 = vmul.f32 1.442695, %v4364_v33  ;;  %v4365_v40 = vsub.f32 %v11302_v19, %v4347_v11  ;;  %4685 = vrot.lane.b32.xlu0 %v3173_v16, %s7570_s23  ;;  %7133 = vpow2.f32 %v4398_v62 }
 0xf38   : > { %v10272_v56 = vpop.eup %7121  ;;  %4711 = vrot.lane.b32.xlu1 %v3648_v31, %s7571_s18  ;;  %v10275_v24 = vpop.xlane.xlu1 %1572  ;;  %v4121_v23 = vpack.c.bf16 %v4108_v25, %v4107_v7  ;;  %v11306_v7 = vld [vmem:[#allocation96_spill] sm:$0xff] }
 0xf39   : > { %v10278_v22 = vpop.eup %7123  ;;  %v4394_v60 = vmul.f32 1.442695, %v4365_v40  ;;  %v4434_v35 = vpack.c.bf16 %v10272_v56, %v10268_v43  ;;  %7135 = vpow2.f32 %v4392_v18 }
 0xf3a   : > { %v10283_v59 = vpop.xlane.xlu0 %3948  ;;  %v4435_v28 = vpack.c.bf16 %v10263_v13, %v10278_v22 }
 0xf3b   : > { %7137 = vpow2.f32 %v4394_v60  ;;  %4709 = vrot.lane.b32.xlu0 %v3647_v6, %s7571_s18  ;;  %6520 = vmatprep.mubr.bf16.mxu0 %v4434_v35 }
 0xf3c   : > { %7139 = vpow2.f32 %v4396_v2  ;;  %4735 = vrot.lane.b32.xlu1 %v4122_v37, %s7572_s3  ;;  %6521 = vmatmul.mubr.bf16.gmra.mxu0 %v4435_v28  ;;  %v10290_v14 = vpop.xlane.xlu1 %1576  ;;  %v10292_v15 = vpop.eup %7125 }
 0xf3e   : > { %v10294_v32 = vpop.xlane.xlu0 %1574  ;;  %v10296_v9 = vpop.eup %7127 }
 0xf3f   : > { %4733 = vrot.lane.b32.xlu0 %v4121_v23, %s7572_s3 }
 0xf40   : > { %v10299_v45 = vpop.eup %7129  ;;  %v10301_v53 = vpop.xlane.xlu1 %2054 }
 0xf41   : > { %v10303_v0 = vpop.eup %7131  ;;  %v4436_v52 = vpack.c.bf16 %v10299_v45, %v10296_v9 }
 0xf42   : > { %v4437_v49 = vpack.c.bf16 %v10292_v15, %v10303_v0  ;;  %v10309_v57 = vpop.xlane.xlu0 %1578 }
 0xf43   : > { %6524 = vmatprep.mubr.bf16.mxu1 %v4436_v52  ;;  %v11310_v52 = vld [vmem:[#allocation129_spill] sm:$0xff] }
 0xf44   : > { %6525 = vmatmul.mubr.bf16.vlgmr.msra.gmra.mxu1 %v4437_v49  ;;  %v10311_v8 = vpop.xlane.xlu1 %2058  ;;  %v10313_v3 = vpop.eup %7133 }
 0xf46   : > { %v10315_v62 = vpop.xlane.xlu0 %2056  ;;  %v10317_v61 = vpop.eup %7135 }
 0xf48   : > { %v10319_v33 = vpop.eup %7137  ;;  %v10321_v16 = vpop.xlane.xlu1 %2528 }
 0xf49   : > { %v10323_v11 = vpop.eup %7139  ;;  %v4438_v31 = vpack.c.bf16 %v10319_v33, %v10317_v61 }
 0xf4a   : > { %v10327_v55 = vpop.xlane.xlu0 %2060  ;;  %v4439_v54 = vpack.c.bf16 %v10313_v3, %v10323_v11 }
 0xf4b   : > { %6528 = vmatprep.mubr.bf16.mxu1 %v4438_v31 }
 0xf4c   : > { %6529 = vmatmul.mubr.bf16.gmra.mxu1 %v4439_v54  ;;  %v10331_v42 = vpop.xlane.xlu1 %2532  ;;  %v11311_v54 = vld [vmem:[#allocation191_spill] sm:$0xff] }
 0xf4e   : > { %v10333_v29 = vpop.xlane.xlu0 %2530 }
 0xf50   : > { %v10335_v18 = vpop.xlane.xlu1 %3002 }
 0xf52   : > { %v10337_v19 = vpop.xlane.xlu0 %2534 }
 0xf54   : > { %v10339_v40 = vpop.xlane.xlu1 %3006 }
 0xf56   : > { %v10341_v2 = vpop.xlane.xlu0 %3004 }
 0xf58   : > { %v3477_v6 = vpop.xlane.xlu1 %3476 }
 0xf59   : > { %7141 = vrcp.f32 %v3477_v6 }
 0xf5a   : > { %v10343_v48 = vpop.xlane.xlu0 %3008 }
 0xf5c   : > { %v3481_v12 = vpop.xlane.xlu1 %3480 }
 0xf5e   : > { %v3479_v60 = vpop.xlane.xlu0 %3478  ;;  %4406 = vadd.xlane.f32.xlu0 %v10246_v51  ;;  %v11307_v51 = vld [vmem:[#allocation68_spill] sm:$0xff] }
 0xf5f   : > { %7143 = vrcp.f32 %v3479_v60 }
 0xf60   : > { %4404 = vadd.xlane.f32.xlu1 %v10240_v63  ;;  %v3951_v35 = vpop.xlane.xlu1 %3950  ;;  %7145 = vrcp.f32 %v3481_v12  ;;  %v11312_v12 = vld [vmem:[#allocation193_spill] sm:$0xff] }
 0xf62   : > { %v3483_v20 = vpop.xlane.xlu0 %3482  ;;  %4402 = vadd.xlane.f32.xlu0 %v10235_v39 }
 0xf63   : > { %7147 = vrcp.f32 %v3483_v20 }
 0xf64   : > { %7149 = vrcp.f32 %v11306_v7  ;;  %4400 = vadd.xlane.f32.xlu1 %v10232_v58  ;;  %v3955_v37 = vpop.xlane.xlu1 %3954 }
 0xf65   : > { %7151 = vrcp.f32 %v3951_v35 }
 0xf66   : > { %7153 = vrcp.f32 %v10024_v46  ;;  %v3953_v28 = vpop.xlane.xlu0 %3952  ;;  %4414 = vadd.xlane.f32.xlu0 %v10263_v13  ;;  %v7142_v39 = vpop.eup %7141  ;;  %v11308_v13 = vld [vmem:[#allocation192_spill] sm:$0xff] }
 0xf67   : > { %7155 = vrcp.f32 %v3953_v28  ;;  %v11313_v28 = vld [vmem:[#allocation94_spill] sm:$0xff] }
 0xf68   : > { %7157 = vrcp.f32 %v10031_v50  ;;  %4412 = vadd.xlane.f32.xlu1 %v10278_v22  ;;  %v1083_v63 = vpop.xlane.xlu1 %1082  ;;  %v10359_v50 = vmul.f32 %v7142_v39, %v11308_v13  ;;  %v11309_v22 = vld [vmem:[#allocation194_spill] sm:$0xff]  ;;  %v11315_v13 = vld [vmem:[#allocation61_spill] sm:$0xff] }
 0xf69   : > { %7159 = vrcp.f32 %v3955_v37 }
 0xf6a   : > { %7161 = vrcp.f32 %v11307_v51  ;;  %v3957_v36 = vpop.xlane.xlu0 %3956  ;;  %4410 = vadd.xlane.f32.xlu0 %v10272_v56 }
 0xf6b   : > { %7163 = vrcp.f32 %v3957_v36 }
 0xf6c   : > { %v7144_v58 = vpop.eup %7143  ;;  %7165 = vrcp.f32 %v10038_v34  ;;  %4408 = vadd.xlane.f32.xlu1 %v10268_v43  ;;  %v1087_v46 = vpop.xlane.xlu1 %1086 }
 0xf6d   : > { %7167 = vrcp.f32 %v1083_v63  ;;  %v10362_v25 = vmul.f32 %v7144_v58, %v11309_v22  ;;  %v7146_v23 = vpop.eup %7145  ;;  %v11314_v63 = vld [vmem:[#allocation124_spill] sm:$0xff] }
 0xf6e   : > { %7169 = vrcp.f32 %v11310_v52  ;;  %v1085_v49 = vpop.xlane.xlu0 %1084  ;;  %4422 = vadd.xlane.f32.xlu0 %v10292_v15  ;;  %v10373_v6 = vmul.f32 %v7146_v23, %v11311_v54  ;;  %v11316_v22 = vld [vmem:[#allocation64_spill] sm:$0xff]  ;;  %v11317_v52 = vld [vmem:[#allocation95_spill] sm:$0xff] }
 0xf6f   : > { %7171 = vrcp.f32 %v1085_v49 }
 0xf70   : > { %v7148_v56 = vpop.eup %7147  ;;  %7173 = vrcp.f32 %v10045_v30  ;;  %4420 = vadd.xlane.f32.xlu1 %v10303_v0  ;;  %v1091_v43 = vpop.xlane.xlu1 %1090 }
 0xf71   : > { %v10370_v31 = vpop.eup %7149  ;;  %7175 = vrcp.f32 %v1087_v46  ;;  %v10376_v60 = vmul.f32 %v7148_v56, %v11312_v12 }
 0xf72   : > { %v7152_v15 = vpop.eup %7151  ;;  %7177 = vrcp.f32 %v10033_v17  ;;  %v1089_v35 = vpop.xlane.xlu0 %1088  ;;  %4418 = vadd.xlane.f32.xlu0 %v10299_v45 }
 0xf73   : > { %v10380_v20 = vpop.eup %7153  ;;  %7179 = vrcp.f32 %v1089_v35  ;;  %v10389_v17 = vmul.f32 %v7152_v15, %v11313_v28  ;;  %v11319_v15 = vld [vmem:[#allocation45_spill] sm:$0xff] }
 0xf74   : > { %v7156_v0 = vpop.eup %7155  ;;  %7181 = vrcp.f32 %v10052_v10  ;;  %4416 = vadd.xlane.f32.xlu1 %v10296_v9  ;;  %v1095_v7 = vpop.xlane.xlu1 %1094 }
 0xf75   : > { %v10386_v37 = vpop.eup %7157  ;;  %7183 = vrcp.f32 %v1091_v43  ;;  %v10392_v45 = vmul.f32 %v7156_v0, %v11314_v63  ;;  %v11318_v43 = vld [vmem:[#allocation158_spill] sm:$0xff]  ;;  %v11320_v0 = vld [vmem:[#allocation47_spill] sm:$0xff] }
 0xf76   : > { %v7160_v39 = vpop.eup %7159  ;;  %7185 = vrcp.f32 %v10040_v5  ;;  %v1093_v51 = vpop.xlane.xlu0 %1092  ;;  %4430 = vadd.xlane.f32.xlu0 %v10313_v3 }
 0xf77   : > { %v10396_v36 = vpop.eup %7161  ;;  %7187 = vrcp.f32 %v1093_v51  ;;  %v10405_v5 = vmul.f32 %v7160_v39, %v11315_v13  ;;  %v11322_v13 = vld [vmem:[#allocation98_spill] sm:$0xff] }
 0xf78   : > { %v7164_v9 = vpop.eup %7163  ;;  %7189 = vrcp.f32 %v10059_v44  ;;  %4428 = vadd.xlane.f32.xlu1 %v10323_v11  ;;  %v1099_v58 = vpop.xlane.xlu1 %1098 }
 0xf79   : > { %v10402_v46 = vpop.eup %7165  ;;  %7191 = vrcp.f32 %v1095_v7  ;;  %v10408_v3 = vmul.f32 %v7164_v9, %v11316_v22 }
 0xf7a   : > { %v7168_v23 = vpop.eup %7167  ;;  %7193 = vrcp.f32 %v11317_v52  ;;  %v1097_v49 = vpop.xlane.xlu0 %1096  ;;  %4426 = vadd.xlane.f32.xlu0 %v10319_v33  ;;  %v11321_v33 = vld [vmem:[#allocation128_spill] sm:$0xff] }
 0xf7b   : > { %v7170_v56 = vpop.eup %7169  ;;  %7195 = vrcp.f32 %v1097_v49  ;;  %v1235_v35 = vmul.f32 %v7168_v23, %v11319_v15  ;;  %v11324_v23 = vld [vmem:[#allocation44_spill] sm:$0xff] }
 0xf7c   : > { %v7172_v11 = vpop.eup %7171  ;;  %7197 = vrcp.f32 %v11318_v43  ;;  %4424 = vadd.xlane.f32.xlu1 %v10317_v61  ;;  %v1103_v54 = vpop.xlane.xlu1 %1102 }
 0xf7d   : > { %v10416_v12 = vpop.eup %7173  ;;  %7199 = vrcp.f32 %v1099_v58  ;;  %v1236_v7 = vmul.f32 %v7172_v11, %v11320_v0  ;;  %v11323_v58 = vld [vmem:[#allocation46_spill] sm:$0xff] }
 0xf7e   : > { %v7176_v28 = vpop.eup %7175  ;;  %7201 = vrcp.f32 %v11321_v33  ;;  %v1101_v63 = vpop.xlane.xlu0 %1100 }
 0xf7f   : > { %v10421_v39 = vpop.eup %7177  ;;  %7203 = vrcp.f32 %v1101_v63  ;;  %v1251_v51 = vpack.c.bf16 %v1236_v7, %v1235_v35  ;;  %v1237_v49 = vmul.f32 %v7176_v28, %v11324_v23  ;;  %v11325_v63 = vld [vmem:[#allocation51_spill] sm:$0xff] }
 0xf80   : > { %v7180_v9 = vpop.eup %7179  ;;  %7205 = vrcp.f32 %v11322_v13  ;;  %v1107_v61 = vpop.xlane.xlu1 %1106 }
 0xf81   : > { %v10424_v22 = vpop.eup %7181  ;;  %7207 = vrcp.f32 %v1103_v54  ;;  %v1238_v52 = vmul.f32 %v7180_v9, %v11323_v58  ;;  %v11326_v9 = vld [vmem:[#allocation49_spill] sm:$0xff] }
 0xf82   : > { %v7184_v11 = vpop.eup %7183  ;;  %7209 = vrcp.f32 %v10068_v47  ;;  %v1105_v43 = vpop.xlane.xlu0 %1104 }
 0xf83   : > { %v7186_v15 = vpop.eup %7185  ;;  %7211 = vrcp.f32 %v1105_v43  ;;  %v1252_v0 = vpack.c.bf16 %v1238_v52, %v1237_v49  ;;  %v10436_v13 = vmul.f32 %v7184_v11, %v11326_v9  ;;  %v11327_v52 = vld [vmem:[#allocation81_spill] sm:$0xff]  ;;  %v11328_v43 = vld [vmem:[#allocation83_spill] sm:$0xff] }
 0xf84   : > { %v7188_v33 = vpop.eup %7187  ;;  %7213 = vrcp.f32 %v10080_v21  ;;  %v1111_v35 = vpop.xlane.xlu1 %1110  ;;  %v1743_v23 = vmul.f32 %v7170_v56, %v11327_v52 }
 0xf85   : > { %v10430_v7 = vpop.eup %7189  ;;  %7215 = vrcp.f32 %v1107_v61  ;;  %v10433_v54 = vmul.f32 %v7188_v33, %v11325_v63  ;;  %v1744_v33 = vmul.f32 %v10380_v20, %v11328_v43  ;;  %v11329_v63 = vld [vmem:[#allocation48_spill] sm:$0xff]  ;;  %v11332_v20 = vld [vmem:[#allocation111_spill] sm:$0xff] }
 0xf86   : > { %v7192_v28 = vpop.eup %7191  ;;  %7217 = vrcp.f32 %v10082_v27  ;;  %v1109_v47 = vpop.xlane.xlu0 %1108  ;;  %v2217_v43 = vmul.f32 %v7186_v15, %v11332_v20 }
 0xf87   : > { %v7194_v58 = vpop.eup %7193  ;;  %7219 = vrcp.f32 %v1109_v47  ;;  %v1253_v21 = vpack.c.bf16 %v10433_v54, %v10436_v13  ;;  %v10449_v9 = vmul.f32 %v7192_v28, %v11329_v63  ;;  %v11330_v47 = vld [vmem:[#allocation50_spill] sm:$0xff]  ;;  %v11334_v63 = vld [vmem:[#allocation113_spill] sm:$0xff]  ;;  %v11366_v54 = vld [vmem:[#allocation115_spill] sm:$0xff] }
 0xf88   : > { %v7196_v49 = vpop.eup %7195  ;;  %7221 = vrcp.f32 %v10075_v41  ;;  %v4610_v61 = vpop.permute.xlu1 %4609  ;;  %v11331_v41 = vld [vmem:[#allocation82_spill] sm:$0xff] }
 0xf89   : > { %v10445_v11 = vpop.eup %7197  ;;  %7223 = vrcp.f32 %v1111_v35  ;;  %v4771_v27 = vsel %vm838_vm0, %v1251_v51, %v4610_v61  ;;  %v10452_v56 = vmul.f32 %v7196_v49, %v11330_v47  ;;  %v1741_v44 = vmul.f32 %v10396_v36, %v11331_v41  ;;  %v11333_v61 = vld [vmem:[#allocation84_spill] sm:$0xff] }
 0xf8a   : > { %v7200_v52 = vpop.eup %7199  ;;  %7225 = vrcp.f32 %v10283_v59  ;;  %v1113_v10 = vpop.xlane.xlu0 %1112  ;;  %v1754_v35 = vpack.c.bf16 %v1744_v33, %v1743_v23  ;;  %v1742_v59 = vmul.f32 %v10370_v31, %v11333_v61  ;;  %v2218_v47 = vmul.f32 %v10402_v46, %v11334_v63  ;;  %v11336_v23 = vld [vmem:[#allocation53_spill] sm:$0xff]  ;;  %v11337_v46 = vld [vmem:[#allocation112_spill] sm:$0xff] }
 0xf8b   : > { %v7202_v34 = vpop.eup %7201  ;;  %7227 = vrcp.f32 %v1113_v10  ;;  %v1254_v51 = vpack.c.bf16 %v10452_v56, %v10449_v9  ;;  %v11335_v10 = vld [vmem:[#allocation55_spill] sm:$0xff]  ;;  %v10472_v33 = vmul.f32 %v7200_v52, %v11336_v23  ;;  %v2215_v61 = vmul.f32 %v10421_v39, %v11337_v46  ;;  %v11369_v56 = vld [vmem:[#allocation116_spill] sm:$0xff] }
 0xf8c   : > { %v7204_v28 = vpop.eup %7203  ;;  %7229 = vrcp.f32 %v10073_v26  ;;  %v4634_v49 = vpop.permute.xlu1 %4633  ;;  %v1753_v41 = vpack.c.bf16 %v1742_v59, %v1741_v44  ;;  %v2228_v20 = vpack.c.bf16 %v2218_v47, %v2217_v43  ;;  %v11339_v44 = vld [vmem:[#allocation114_spill] sm:$0xff]  ;;  %v11340_v43 = vld [vmem:[#allocation145_spill] sm:$0xff] }
 0xf8d   : > { %v7206_v30 = vpop.eup %7205  ;;  %7231 = vrcp.f32 %v10138_v4  ;;  %v4795_v36 = vsel %vm4793_vm2, %v4771_v27, %v4634_v49  ;;  %4619 = vrot.lane.b32.xlu1 %v1754_v35, %s7567_s21  ;;  %v10469_v15 = vmul.f32 %v7204_v28, %v11335_v10  ;;  %v11338_v35 = vld [vmem:[#allocation143_spill] sm:$0xff]  ;;  %v2216_v39 = vmul.f32 %v10386_v37, %v11339_v44 }
 0xf8e   : > { %v7208_v26 = vpop.eup %7207  ;;  %7233 = vrcp.f32 %v10159_v38  ;;  %v4612_v31 = vpop.permute.xlu0 %4611  ;;  %v2691_v28 = vmul.f32 %v7202_v34, %v11338_v35 }
 0xf8f   : > { %v7210_v4 = vpop.eup %7209  ;;  %7235 = vrcp.f32 %v10309_v57  ;;  %v4774_v27 = vsel %vm838_vm0, %v1252_v0, %v4612_v31  ;;  %v1255_v52 = vpack.c.bf16 %v10469_v15, %v10472_v33  ;;  %v2692_v57 = vmul.f32 %v10424_v22, %v11340_v43  ;;  %v11341_v0 = vld [vmem:[#allocation52_spill] sm:$0xff] }
 0xf90   : > { %v7212_v49 = vpop.eup %7211  ;;  %7237 = vrcp.f32 %v10136_v1  ;;  %4617 = vrot.lane.b32.xlu0 %v1753_v41, %s7567_s21  ;;  %v4636_v38 = vpop.permute.xlu1 %4635  ;;  %v10492_v63 = vmul.f32 %v7208_v26, %v11341_v0  ;;  %v11342_v1 = vld [vmem:[#allocation54_spill] sm:$0xff]  ;;  %v2227_v23 = vpack.c.bf16 %v2216_v39, %v2215_v61  ;;  %v11343_v31 = vld [vmem:[#allocation144_spill] sm:$0xff] }
 0xf91   : > { %v7214_v59 = vpop.eup %7213  ;;  %7239 = vrcp.f32 %v10290_v14  ;;  %v4797_v34 = vsel %vm4793_vm2, %v4774_v27, %v4636_v38  ;;  %4643 = vrot.lane.b32.xlu1 %v2228_v20, %s7568_s16  ;;  %v10495_v47 = vmul.f32 %v7212_v49, %v11342_v1  ;;  %v2689_v22 = vmul.f32 %v7194_v58, %v11343_v31  ;;  %v11344_v41 = vld [vmem:[#allocation172_spill] sm:$0xff]  ;;  %v11345_v61 = vld [vmem:[#allocation146_spill] sm:$0xff]  ;;  %v11351_v31 = vld [vmem:[#allocation175_spill] sm:$0xff] }
 0xf92   : > { %v7216_v10 = vpop.eup %7215  ;;  %7241 = vrcp.f32 %v10294_v32  ;;  %v4658_v37 = vpop.permute.xlu0 %4657  ;;  %v3165_v46 = vmul.f32 %v7210_v4, %v11344_v41  ;;  %v2702_v27 = vpack.c.bf16 %v2692_v57, %v2691_v28  ;;  %v2690_v58 = vmul.f32 %v10416_v12, %v11345_v61  ;;  %v11346_v4 = vld [vmem:[#allocation174_spill] sm:$0xff]  ;;  %v11347_v28 = vld [vmem:[#allocation59_spill] sm:$0xff]  ;;  %v11355_v61 = vld [vmem:[#allocation188_spill] sm:$0xff] }
 0xf93   : > { %v7218_v14 = vpop.eup %7217  ;;  %7243 = vrcp.f32 %v10327_v55  ;;  %v4812_v20 = vsel %vm4810_vm3, %v4795_v36, %v4658_v37  ;;  %v1256_v26 = vpack.c.bf16 %v10495_v47, %v10492_v63  ;;  %v3166_v49 = vmul.f32 %v10445_v11, %v11346_v4  ;;  %v11349_v11 = vld [vmem:[#allocation173_spill] sm:$0xff] }
 0xf94   : > { %v7220_v35 = vpop.eup %7219  ;;  %7245 = vrcp.f32 %v10275_v24  ;;  %4641 = vrot.lane.b32.xlu0 %v2227_v23, %s7568_s16  ;;  %v4660_v32 = vpop.permute.xlu1 %4659  ;;  %v11348_v24 = vld [vmem:[#allocation57_spill] sm:$0xff]  ;;  %v2701_v43 = vpack.c.bf16 %v2690_v58, %v2689_v22  ;;  %v3163_v0 = vmul.f32 %v7206_v30, %v11349_v11  ;;  %v3164_v30 = vmul.f32 %v10430_v7, %v11351_v31  ;;  %v11360_v31 = vld [vmem:[#allocation87_spill] sm:$0xff] }
 0xf95   : > { %v7222_v55 = vpop.eup %7221  ;;  %7247 = vrcp.f32 %v10311_v8  ;;  %v4814_v36 = vsel %vm4810_vm3, %v4797_v34, %v4660_v32  ;;  %4667 = vrot.lane.b32.xlu1 %v2702_v27, %s7569_s8  ;;  %v10514_v38 = vmul.f32 %v7220_v35, %v11347_v28  ;;  %v10517_v44 = vmul.f32 %v7216_v10, %v11348_v24  ;;  %v11350_v34 = vld [vmem:[#allocation187_spill] sm:$0xff]  ;;  %v11352_v22 = vld [vmem:[#allocation189_spill] sm:$0xff] }
 0xf96   : > { %v7224_v39 = vpop.eup %7223  ;;  %7249 = vrcp.f32 %v10315_v62  ;;  %v4682_v12 = vpop.permute.xlu0 %4681  ;;  %v3176_v57 = vpack.c.bf16 %v3166_v49, %v3165_v46  ;;  %v3639_v37 = vmul.f32 %v7218_v14, %v11350_v34  ;;  %v3640_v41 = vmul.f32 %v7214_v59, %v11352_v22  ;;  %v11353_v14 = vld [vmem:[#allocation56_spill] sm:$0xff]  ;;  %v11356_v49 = vld [vmem:[#allocation62_spill] sm:$0xff]  ;;  %v11359_v34 = vld [vmem:[#allocation63_spill] sm:$0xff] }
 0xf97   : > { %v7226_v1 = vpop.eup %7225  ;;  %7251 = vrcp.f32 %v10337_v19  ;;  %v4829_v8 = vsel %vm4827_vm4, %v4812_v20, %v4682_v12  ;;  %v1257_v23 = vpack.c.bf16 %v10514_v38, %v10517_v44  ;;  %v10535_v20 = vmul.f32 %v7224_v39, %v11353_v14 }
 0xf98   : > { %v7228_v10 = vpop.eup %7227  ;;  %7253 = vrcp.f32 %v10301_v53  ;;  %4665 = vrot.lane.b32.xlu0 %v2701_v43, %s7569_s8  ;;  %v4684_v62 = vpop.permute.xlu1 %4683  ;;  %v11354_v53 = vld [vmem:[#allocation58_spill] sm:$0xff]  ;;  %v3175_v7 = vpack.c.bf16 %v3164_v30, %v3163_v0  ;;  %v3637_v59 = vmul.f32 %v7222_v55, %v11355_v61  ;;  %v3650_v4 = vpack.c.bf16 %v3640_v41, %v3639_v37 }
 0xf99   : > { %v7230_v19 = vpop.eup %7229  ;;  %7255 = vrcp.f32 %v10331_v42  ;;  %v4831_v46 = vsel %vm4827_vm4, %v4814_v36, %v4684_v62  ;;  %4691 = vrot.lane.b32.xlu1 %v3176_v57, %s7570_s23  ;;  %v10538_v27 = vmul.f32 %v7228_v10, %v11354_v53  ;;  %v4114_v36 = vmul.f32 %v7226_v1, %v11356_v49  ;;  %v11358_v57 = vld [vmem:[#allocation151_spill] sm:$0xff] }
 0xf9a   : > { %v7232_v35 = vpop.eup %7231  ;;  %7257 = vrcp.f32 %v10333_v29  ;;  %v4706_v32 = vpop.permute.xlu0 %4705  ;;  %v11357_v29 = vld [vmem:[#allocation190_spill] sm:$0xff] }
 0xf9b   : > { %v7234_v58 = vpop.eup %7233  ;;  %v4846_v42 = vsel %vm4844_vm5, %v4829_v8, %v4706_v32  ;;  %v1258_v28 = vpack.c.bf16 %v10538_v27, %v10535_v20  ;;  %7259 = vrcp.f32 %v10321_v16  ;;  %v3638_v12 = vmul.f32 %v7230_v19, %v11357_v29  ;;  %v11361_v19 = vld [vmem:[#allocation92_spill] sm:$0xff] }
 0xf9c   : > { %v7236_v24 = vpop.eup %7235  ;;  %4689 = vrot.lane.b32.xlu0 %v3175_v7, %s7570_s23  ;;  %v4708_v39 = vpop.permute.xlu1 %4707  ;;  %v4113_v11 = vmul.f32 %v7232_v35, %v11358_v57  ;;  %v4111_v37 = vmul.f32 %v7234_v58, %v11359_v34  ;;  %v11362_v35 = vld [vmem:[#allocation85_spill] sm:$0xff]  ;;  %v11363_v58 = vld [vmem:[#allocation88_spill] sm:$0xff]  ;;  %7261 = vrcp.f32 %v10343_v48 }
 0xf9d   : > { %v7238_v43 = vpop.eup %7237  ;;  %v4848_v55 = vsel %vm4844_vm5, %v4831_v46, %v4708_v39  ;;  %4715 = vrot.lane.b32.xlu1 %v3650_v4, %s7571_s18  ;;  %v3649_v8 = vpack.c.bf16 %v3638_v12, %v3637_v59  ;;  %v1748_v30 = vmul.f32 %v7236_v24, %v11360_v31  ;;  %v11364_v24 = vld [vmem:[#allocation117_spill] sm:$0xff] }
 0xf9e   : > { %v7240_v0 = vpop.eup %7239  ;;  %v4730_v1 = vpop.permute.xlu0 %4729  ;;  %v4124_v62 = vpack.c.bf16 %v4114_v36, %v4113_v11  ;;  %v4112_v46 = vmul.f32 %v7238_v43, %v11361_v19  ;;  %v11365_v43 = vld [vmem:[#allocation86_spill] sm:$0xff]  ;;  %v11368_v31 = vld [vmem:[#allocation149_spill] sm:$0xff]  ;;  %v11370_v19 = vld [vmem:[#allocation147_spill] sm:$0xff] }
 0xf9f   : > { %v7242_v10 = vpop.eup %7241  ;;  %v10554_v16 = vsel %vm4861_vm6, %v4846_v42, %v4730_v1  ;;  %v1747_v32 = vmul.f32 %v7240_v0, %v11362_v35 }
 0xfa0   : > { %v7244_v22 = vpop.eup %7243  ;;  %4713 = vrot.lane.b32.xlu0 %v3649_v8, %s7571_s18  ;;  %v4732_v41 = vpop.permute.xlu1 %4731  ;;  %v4123_v59 = vpack.c.bf16 %v4112_v46, %v4111_v37  ;;  %v1746_v42 = vmul.f32 %v7242_v10, %v11363_v58  ;;  %v11367_v8 = vld [vmem:[#allocation118_spill] sm:$0xff] }
 0xfa1   : > { %v7246_v14 = vpop.eup %7245  ;;  %v10560_v53 = vsel %vm4861_vm6, %v4848_v55, %v4732_v41  ;;  %4739 = vrot.lane.b32.xlu1 %v4124_v62, %s7572_s3  ;;  %v1756_v36 = vpack.c.bf16 %v1748_v30, %v1747_v32  ;;  %v2222_v39 = vmul.f32 %v7244_v22, %v11364_v24  ;;  %v11371_v32 = vld [vmem:[#allocation150_spill] sm:$0xff] }
 0xfa2   : > { %v7248_v7 = vpop.eup %7247  ;;  %v4614_v61 = vpop.permute.xlu0 %4613  ;;  %v1745_v55 = vmul.f32 %v7246_v14, %v11365_v43 }
 0xfa3   : > { %v7250_v4 = vpop.eup %7249  ;;  %v4777_v49 = vsel %vm838_vm0, %v1253_v21, %v4614_v61  ;;  %v2221_v13 = vmul.f32 %v7248_v7, %v11366_v54  ;;  %v6787_v61 = vld [vmem:[#allocation11 + $0x8] sm:$0xff]  }
 0xfa4   : > { %v7252_v29 = vpop.eup %7251  ;;  %4737 = vrot.lane.b32.xlu0 %v4123_v59, %s7572_s3  ;;  %v4616_v12 = vpop.permute.xlu1 %4615  ;;  %v1755_v1 = vpack.c.bf16 %v1746_v42, %v1745_v55  ;;  %v2220_v34 = vmul.f32 %v7250_v4, %v11367_v8  ;;  %v6788_v59 = vld [vmem:[#allocation11] sm:$0xff]   ;;  %6532 = vmatprep.subr.bf16.mxu1 %v6787_v61 }
 0xfa5   : > { %v7254_v57 = vpop.eup %7253  ;;  %v4780_v11 = vsel %vm838_vm0, %v1254_v51, %v4616_v12  ;;  %4623 = vrot.lane.b32.xlu1 %v1756_v36, %s7567_s21  ;;  %v2230_v62 = vpack.c.bf16 %v2222_v39, %v2221_v13  ;;  %v2696_v30 = vmul.f32 %v7252_v29, %v11368_v31  ;;  %6533 = vmatpush3.bf16.msra.mxu1 %v6787_v61 }
 0xfa6   : > { %v7256_v21 = vpop.eup %7255  ;;  %v4638_v0 = vpop.permute.xlu0 %4637  ;;  %v2219_v51 = vmul.f32 %v7254_v57, %v11369_v56  ;;  %6534 = vmatprep.subr.bf16.mxu1 %v6788_v59 }
 0xfa7   : > { %v7258_v37 = vpop.eup %7257  ;;  %v4799_v10 = vsel %vm4793_vm2, %v4777_v49, %v4638_v0  ;;  %v2695_v46 = vmul.f32 %v7256_v21, %v11370_v19  ;;  %v11372_v49 = vld [vmem:[#allocation148_spill] sm:$0xff] }
 0xfa8   : > { %4621 = vrot.lane.b32.xlu0 %v1755_v1, %s7567_s21  ;;  %v4640_v9 = vpop.permute.xlu1 %4639  ;;  %v7260_v22 = vpop.eup %7259  ;;  %v2229_v35 = vpack.c.bf16 %v2220_v34, %v2219_v51  ;;  %v2694_v7 = vmul.f32 %v7258_v37, %v11371_v32  ;;  %s10738_s21 = scalar_lea.hbm %s10853_s6, %s5654_s11 }
 0xfa9   : > { %v4801_v41 = vsel %vm4793_vm2, %v4780_v11, %v4640_v9  ;;  %4647 = vrot.lane.b32.xlu1 %v2230_v62, %s7568_s16  ;;  %v2704_v42 = vpack.c.bf16 %v2696_v30, %v2695_v46  ;;  %v2693_v36 = vmul.f32 %v7260_v22, %v11372_v49  ;;  %6535 = vmatpush3.bf16.msra.mxu1 %v6788_v59  ;;  %v7262_v48 = vpop.eup %7261 }
 0xfaa   : > { %v4662_v14 = vpop.permute.xlu0 %4661 }
 0xfab   : > { %v4816_v58 = vsel %vm4810_vm3, %v4799_v10, %v4662_v14  ;;  %v2703_v29 = vpack.c.bf16 %v2694_v7, %v2693_v36 }
 0xfac   : > { %4645 = vrot.lane.b32.xlu0 %v2229_v35, %s7568_s16  ;;  %v4664_v4 = vpop.permute.xlu1 %4663 }
 0xfad   : > { %v4818_v24 = vsel %vm4810_vm3, %v4801_v41, %v4664_v4  ;;  %4671 = vrot.lane.b32.xlu1 %v2704_v42, %s7569_s8 }
 0xfae   : > { %v4686_v39 = vpop.permute.xlu0 %4685 }
 0xfaf   : > { %v4833_v12 = vsel %vm4827_vm4, %v4816_v58, %v4686_v39  ;;  %v11373_v58 = vld [vmem:[#allocation178_spill] sm:$0xff] }
 0xfb0   : > { %4669 = vrot.lane.b32.xlu0 %v2703_v29, %s7569_s8  ;;  %v4688_v43 = vpop.permute.xlu1 %4687  ;;  %v3170_v42 = vmul.f32 %v7262_v48, %v11373_v58  ;;  %v11374_v29 = vld [vmem:[#allocation176_spill] sm:$0xff]  ;;  %s10746_s8 = scalar_lea.vmem [#allocation13], %s5546_s17 }
 0xfb1   : > { %v4835_v55 = vsel %vm4827_vm4, %v4818_v24, %v4688_v43 }
 0xfb2   : > { %v4710_v57 = vpop.permute.xlu0 %4709 }
 0xfb3   : > { %v4850_v11 = vsel %vm4844_vm5, %v4833_v12, %v4710_v57 }
 0xfb4   : > { %v4712_v54 = vpop.permute.xlu1 %4711 }
 0xfb5   : > { %v4852_v13 = vsel %vm4844_vm5, %v4835_v55, %v4712_v54 }
 0xfb6   : > { %v4734_v21 = vpop.permute.xlu0 %4733 }
 0xfb7   : > { %v10598_v0 = vsel %vm4861_vm6, %v4850_v11, %v4734_v21 }
 0xfb8   : > { %v4736_v1 = vpop.permute.xlu1 %4735 }
 0xfb9   : > { %v10601_v8 = vsel %vm4861_vm6, %v4852_v13, %v4736_v1  ;;  %v11375_v13 = vld [vmem:[#allocation179_spill] sm:$0xff] }
 0xfe7   : > { %v4407_v34 = vpop.xlane.xlu0 %4406 }
 0xfe8   : > { %7263 = vrcp.f32 %v4407_v34 }
 0xfe9   : > { %v4405_v37 = vpop.xlane.xlu1 %4404 }
 0xfea   : > { %7265 = vrcp.f32 %v4405_v37 }
 0xfeb   : > { %7267 = vrcp.f32 %v10339_v40  ;;  %v4403_v10 = vpop.xlane.xlu0 %4402 }
 0xfec   : > { %7269 = vrcp.f32 %v4403_v10 }
 0xfed   : > { %7271 = vrcp.f32 %v10341_v2  ;;  %v4401_v62 = vpop.xlane.xlu1 %4400 }
 0xfee   : > { %7273 = vrcp.f32 %v4401_v62 }
 0xfef   : > { %v4415_v31 = vpop.xlane.xlu0 %4414  ;;  %7275 = vrcp.f32 %v10335_v18 }
 0xff1   : > { %v4413_v30 = vpop.xlane.xlu1 %4412 }
 0xff2   : > { %7277 = vrcp.f32 %v4413_v30 }
 0xff3   : > { %7279 = vrcp.f32 %v4415_v31  ;;  %v4411_v9 = vpop.xlane.xlu0 %4410  ;;  %v6518_v56 = vpop.f32.mrf.mxu0  ;;  %v11376_v31 = vld [vmem:[#allocation177_spill] sm:$0xff] }
 0xff4   : > { %7281 = vrcp.f32 %v4411_v9 }
 0xff5   : > { %v4498_v51 = vpop.f32.mrf.mxu0  ;;  %v4409_v22 = vpop.xlane.xlu1 %4408 }
 0xff6   : > { %v7264_v41 = vpop.eup %7263  ;;  %7283 = vrcp.f32 %v4409_v22 }
 0xff7   : > { %v7266_v40 = vpop.eup %7265  ;;  %v4423_v19 = vpop.xlane.xlu0 %4422 }
 0xff8   : > { %v6519_v46 = vpop.f32.mrf.mxu0  ;;  %v7268_v2 = vpop.eup %7267  ;;  %v4579_v14 = vmul.f32 %v7266_v40, %v6518_v56 }
 0xff9   : > { %v4580_v35 = vmul.f32 %v7264_v41, %v6519_v46  ;;  %v7270_v32 = vpop.eup %7269  ;;  %v4421_v18 = vpop.xlane.xlu1 %4420  ;;  %v3169_v12 = vmul.f32 %v7268_v2, %v11374_v29 }
 0xffa   : > { %v4501_v7 = vpop.f32.mrf.mxu0  ;;  %v7272_v61 = vpop.eup %7271  ;;  %7285 = vrcp.f32 %v4421_v18 }
 0xffb   : > { %v4594_v59 = vpack.c.bf16 %v4580_v35, %v4579_v14  ;;  %v7274_v4 = vpop.eup %7273  ;;  %7287 = vrcp.f32 %v4423_v19  ;;  %v4419_v49 = vpop.xlane.xlu0 %4418  ;;  %v4578_v24 = vmul.f32 %v7270_v32, %v4501_v7  ;;  %v3178_v54 = vpack.c.bf16 %v3170_v42, %v3169_v12 }
 0xffc   : > { %v4577_v36 = vmul.f32 %v7274_v4, %v4498_v51  ;;  %7289 = vrcp.f32 %v4419_v49  ;;  %v6522_v39 = vpop.f32.mrf.mxu0  ;;  %v7276_v43 = vpop.eup %7275  ;;  %v3168_v21 = vmul.f32 %v7272_v61, %v11375_v13  ;;  %v11377_v49 = vpack.c.bf16 %v10376_v60, %v10373_v6 }
 0xffd   : > { %4755 = vrot.lane.b32.xlu1 %v4594_v59, %s7573_s20  ;;  %v4417_v55 = vpop.xlane.xlu1 %4416  ;;  %v3167_v30 = vmul.f32 %v7276_v43, %v11376_v31  ;;  %v11380_v31 = vpack.c.bf16 %v10392_v45, %v10389_v17 }
 0xffe   : > { %v4593_v57 = vpack.c.bf16 %v4578_v24, %v4577_v36  ;;  %7291 = vrcp.f32 %v4417_v55  ;;  %v4514_v11 = vpop.f32.mrf.mxu0  ;;  %v11378_v55 = vpack.c.bf16 %v10362_v25, %v10359_v50 }
 0xfff   : > { %v7278_v1 = vpop.eup %7277  ;;  %v4431_v34 = vpop.xlane.xlu0 %4430  ;;  %v3177_v22 = vpack.c.bf16 %v3168_v21, %v3167_v30 }
0x1000   : > { %v7280_v37 = vpop.eup %7279  ;;  %v4583_v10 = vmul.f32 %v7278_v1, %v6522_v39  ;;  %v6523_v62 = vpop.f32.mrf.mxu0  ;;  %4753 = vrot.lane.b32.xlu0 %v4593_v57, %s7573_s20 }
0x1001   : > { %4695 = vrot.lane.b32.xlu1 %v3178_v54, %s7570_s23  ;;  %v7282_v9 = vpop.eup %7281  ;;  %v4584_v56 = vmul.f32 %v7280_v37, %v6523_v62  ;;  %v4429_v48 = vpop.xlane.xlu1 %4428 }
0x1002   : > { %7293 = vrcp.f32 %v4429_v48  ;;  %v4517_v51 = vpop.f32.mrf.mxu0 }
0x1003   : > { %v7284_v41 = vpop.eup %7283  ;;  %7295 = vrcp.f32 %v4431_v34  ;;  %v4596_v40 = vpack.c.bf16 %v4584_v56, %v4583_v10  ;;  %v4582_v19 = vmul.f32 %v7282_v9, %v4517_v51  ;;  %v4427_v46 = vpop.xlane.xlu0 %4426  ;;  %v11379_v34 = vpack.c.bf16 %v10408_v3, %v10405_v5 }
0x1004   : > { %v4581_v2 = vmul.f32 %v7284_v41, %v4514_v11  ;;  %7297 = vrcp.f32 %v4427_v46  ;;  %v6526_v14 = vpop.f32.mrf.mxu1  ;;  %4693 = vrot.lane.b32.xlu0 %v3177_v22, %s7570_s23  ;;  %s5336_s23 = scalar_lea.sflag [#allocation5], %s7770_s30 }
0x1005   : > { %4759 = vrot.lane.b32.xlu1 %v4596_v40, %s7573_s20  ;;  %v4425_v35 = vpop.xlane.xlu1 %4424 }
0x1006   : > { %v4595_v32 = vpack.c.bf16 %v4582_v19, %v4581_v2  ;;  %7299 = vrcp.f32 %v4425_v35  ;;  %v4530_v7 = vpop.f32.mrf.mxu1 }
0x1007   : > { %v7286_v18 = vpop.eup %7285  ;;  %v4618_v56 = vpop.permute.xlu0 %4617 }
0x1008   : > { %v7288_v61 = vpop.eup %7287  ;;  %v4587_v59 = vmul.f32 %v7286_v18, %v6526_v14  ;;  %v6527_v58 = vpop.f32.mrf.mxu1  ;;  %4757 = vrot.lane.b32.xlu0 %v4595_v32, %s7573_s20 }
0x1009   : > { %v7290_v42 = vpop.eup %7289  ;;  %v4588_v4 = vmul.f32 %v7288_v61, %v6527_v58  ;;  %4719 = vrot.lane.b32.xlu1 %v11377_v49, %s7571_s18  ;;  %v4620_v9 = vpop.permute.xlu1 %4619 }
0x100a   : > { %v4533_v36 = vpop.f32.mrf.mxu1 }
0x100b   : > { %v7292_v24 = vpop.eup %7291  ;;  %v4598_v39 = vpack.c.bf16 %v4588_v4, %v4587_v59  ;;  %v4586_v29 = vmul.f32 %v7290_v42, %v4533_v36  ;;  %v4642_v5 = vpop.permute.xlu0 %4641 }
0x100c   : > { %v4585_v12 = vmul.f32 %v7292_v24, %v4530_v7  ;;  %v6530_v43 = vpop.f32.mrf.mxu1  ;;  %4717 = vrot.lane.b32.xlu0 %v11378_v55, %s7571_s18  ;;  %s7433_s18 = scalar_lea.vmem %s10741_s13, 2048 }
0x100d   : > { %4763 = vrot.lane.b32.xlu1 %v4598_v39, %s7573_s20  ;;  %v4644_v48 = vpop.permute.xlu1 %4643  ;;  %p7434_p1 = scmp.ne.s32.totalorder %s10741_s13, %s7433_s18 }
0x100e   : > { %v4597_v57 = vpack.c.bf16 %v4586_v29, %v4585_v12  ;;  %v4546_v11 = vpop.f32.mrf.mxu1 }
0x100f   : > { %v7294_v54 = vpop.eup %7293  ;;  %v4666_v51 = vpop.permute.xlu0 %4665  ;;  %p7435_p4 = pnand %p7434_p1, %p7740_p0 }
0x1010   : > { %v7296_v13 = vpop.eup %7295  ;;  %v4591_v21 = vmul.f32 %v7294_v54, %v6530_v43  ;;  %v6531_v6 = vpop.f32.mrf.mxu1  ;;  %4761 = vrot.lane.b32.xlu0 %v4597_v57, %s7573_s20 }
0x1011   : > { %v7298_v60 = vpop.eup %7297  ;;  %v4592_v1 = vmul.f32 %v7296_v13, %v6531_v6  ;;  %4743 = vrot.lane.b32.xlu1 %v11379_v34, %s7572_s3  ;;  %v4668_v3 = vpop.permute.xlu1 %4667  ;;  %p7436_p8 = pneg %p7435_p4 }
0x1012   : > { %v4549_v37 = vpop.f32.mrf.mxu1 }
0x1013   : > { %v7300_v50 = vpop.eup %7299  ;;  %v4600_v25 = vpack.c.bf16 %v4592_v1, %v4591_v21  ;;  %v4590_v10 = vmul.f32 %v7298_v60, %v4549_v37  ;;  %v4690_v41 = vpop.permute.xlu0 %4689 }
0x1014   : > { %v4589_v62 = vmul.f32 %v7300_v50, %v4546_v11  ;;  %4741 = vrot.lane.b32.xlu0 %v11380_v31, %s7572_s3  ;;  %s7574_s3 = smov [#allocation12]  }
0x1015   : > { %4767 = vrot.lane.b32.xlu1 %v4600_v25, %s7573_s20  ;;  %v4692_v22 = vpop.permute.xlu1 %4691 }
0x1016   : > { %v4599_v30 = vpack.c.bf16 %v4590_v10, %v4589_v62 }
0x1017   : > { %v4714_v19 = vpop.permute.xlu0 %4713 }
0x1018   : > { %4765 = vrot.lane.b32.xlu0 %v4599_v30, %s7573_s20  ;;  %s7437_s20 = sshll.u32 %s7574_s3, 4  ;;  %s7438_s20 = int_to_ptr.vmem [resolvable:$false] %s7437_s20 }
0x1019   : > { %v4716_v40 = vpop.permute.xlu1 %4715  ;;  %s7439_s1 = scalar_lea.vmem %s7438_s20, 4096  ;;  %p7440_p13 = scmp.lt.s32.totalorder %s10741_s13, %s7438_s20 }
0x101a   : > { %p7441_p11 = scmp.lt.s32.totalorder %s7439_s1, %s7433_s18 }
0x101b   : > { %v4738_v2 = vpop.permute.xlu0 %4737 }
0x101c   : > { %p7442_p2 = por %p7441_p11, %p7440_p13 }
0x101d   : > { %v4740_v46 = vpop.permute.xlu1 %4739 }
0x101e   : > { %p7443_p5 = pnand %p7442_p2, %p7436_p8 }
0x101f   : > { %v4622_v17 = vpop.permute.xlu0 %4621 }
0x1020   : > { %v4789_v6 = vsel %vm838_vm0, %v1257_v23, %v4622_v17 }
0x1021   : > { %v4624_v14 = vpop.permute.xlu1 %4623 }
0x1022   : > { %v4792_v60 = vsel %vm838_vm0, %v1258_v28, %v4624_v14 }
0x1023   : > { %v4646_v35 = vpop.permute.xlu0 %4645 }
0x1024   : > { %v4807_v1 = vsel %vm4793_vm2, %v4789_v6, %v4646_v35 }
0x1025   : > { %v4648_v45 = vpop.permute.xlu1 %4647 }
0x1026   : > { %v4809_v37 = vsel %vm4793_vm2, %v4792_v60, %v4648_v45 }
0x1027   : > { %v4670_v7 = vpop.permute.xlu0 %4669 }
0x1028   : > { %v4824_v50 = vsel %vm4810_vm3, %v4807_v1, %v4670_v7 }
0x1029   : > { %v4672_v32 = vpop.permute.xlu1 %4671 }
0x102a   : > { %v4826_v25 = vsel %vm4810_vm3, %v4809_v37, %v4672_v32 }
0x106f   : > { %v4756_v18 = vpop.permute.xlu1 %4755 }
0x1070   : > { %v4882_v42 = vsel %vm4878_vm7, %v10560_v53, %v4756_v18  ;;  %v4786_v53 = vsel %vm838_vm0, %v1256_v26, %v4620_v9  ;;  %v11381_v9 = vld [vmem:[#allocation27_spill] sm:$0xff] }
0x1071   : > { %v4805_v43 = vsel %vm4793_vm2, %v4786_v53, %v4644_v48  ;;  %v11383_v48 = vld [vmem:[#allocation25_spill] sm:$0xff] }
0x1072   : > { %v4754_v61 = vpop.permute.xlu0 %4753  ;;  %v4822_v57 = vsel %vm4810_vm3, %v4805_v43, %v4668_v3  ;;  %v11385_v3 = vld [vmem:[#allocation23_spill] sm:$0xff] }
0x1073   : > { %v4696_v59 = vpop.permute.xlu1 %4695  ;;  %v4880_v58 = vsel %vm4878_vm7, %v10554_v16, %v4754_v61  ;;  %v4783_v16 = vsel %vm838_vm0, %v1255_v52, %v4618_v56  ;;  %v4839_v33 = vsel %vm4827_vm4, %v4822_v57, %v4692_v22  ;;  %v11382_v56 = vld [vmem:[#allocation26_spill] sm:$0xff]  ;;  %v11387_v22 = vld [vmem:[#allocation21_spill] sm:$0xff] }
0x1074   : > { %6536 = vmatprep.mubr.msk.bf16.mxu1 %vm4907_vm8, %v4880_v58  ;;  %v4856_v63 = vsel %vm4844_vm5, %v4839_v33, %v4716_v40  ;;  %v4843_v44 = vsel %vm4827_vm4, %v4826_v25, %v4696_v59  ;;  %v5644_v40 = vld [vmem:[%s10852_s5] ss:$0 sm:$0xff] }
0x1075   : > { %6537 = vmatmul.mubr.msk.bf16.vlgmr.msra.gmra.mxu1 %vm4907_vm8, %v4882_v42  ;;  %v4873_v11 = vsel %vm4861_vm6, %v4856_v63, %v4740_v46 }
0x1076   : > { %v4694_v4 = vpop.permute.xlu0 %4693 }
0x1077   : > { %v4760_v49 = vpop.permute.xlu1 %4759  ;;  %v4841_v38 = vsel %vm4827_vm4, %v4824_v50, %v4694_v4 }
0x1078   : > { %v4886_v29 = vsel %vm4878_vm7, %v10601_v8, %v4760_v49 }
0x107a   : > { %v4758_v36 = vpop.permute.xlu0 %4757 }
0x107b   : > { %v4884_v24 = vsel %vm4878_vm7, %v10598_v0, %v4758_v36  ;;  %v4720_v39 = vpop.permute.xlu1 %4719  ;;  %v4803_v0 = vsel %vm4793_vm2, %v4783_v16, %v4642_v5  ;;  %v11384_v5 = vld [vmem:[#allocation24_spill] sm:$0xff] }
0x107c   : > { %6540 = vmatprep.mubr.msk.bf16.mxu1 %vm4907_vm8, %v4884_v24  ;;  %v4820_v8 = vsel %vm4810_vm3, %v4803_v0, %v4666_v51  ;;  %v4860_v20 = vsel %vm4844_vm5, %v4843_v44, %v4720_v39  ;;  %v11386_v51 = vld [vmem:[#allocation22_spill] sm:$0xff] }
0x107d   : > { %6541 = vmatmul.mubr.msk.bf16.gmra.mxu1 %vm4907_vm8, %v4886_v29  ;;  %v4837_v15 = vsel %vm4827_vm4, %v4820_v8, %v4690_v41  ;;  %v11388_v41 = vld [vmem:[#allocation20_spill] sm:$0xff] }
0x107e   : > { %v4718_v12 = vpop.permute.xlu0 %4717  ;;  %v4854_v52 = vsel %vm4844_vm5, %v4837_v15, %v4714_v19 }
0x107f   : > { %v4764_v55 = vpop.permute.xlu1 %4763  ;;  %v4871_v47 = vsel %vm4861_vm6, %v4854_v52, %v4738_v2  ;;  %v4858_v23 = vsel %vm4844_vm5, %v4841_v38, %v4718_v12 }
0x1080   : > { %v4890_v21 = vsel %vm4878_vm7, %v4873_v11, %v4764_v55 }
0x1082   : > { %v4762_v26 = vpop.permute.xlu0 %4761 }
0x1083   : > { %v4888_v54 = vsel %vm4878_vm7, %v4871_v47, %v4762_v26  ;;  %v4744_v13 = vpop.permute.xlu1 %4743 }
0x1084   : > { %6544 = vmatprep.mubr.msk.bf16.mxu1 %vm4907_vm8, %v4888_v54  ;;  %v4877_v62 = vsel %vm4861_vm6, %v4860_v20, %v4744_v13 }
0x1085   : > { %6545 = vmatmul.mubr.msk.bf16.gmra.mxu1 %vm4907_vm8, %v4890_v21 }
0x1086   : > { %v4742_v34 = vpop.permute.xlu0 %4741 }
0x1087   : > { %v4768_v10 = vpop.permute.xlu1 %4767  ;;  %v4875_v27 = vsel %vm4861_vm6, %v4858_v23, %v4742_v34 }
0x1088   : > { %v4894_v30 = vsel %vm4878_vm7, %v4877_v62, %v4768_v10 }
0x108a   : > { %v4766_v28 = vpop.permute.xlu0 %4765 }
0x108b   : > { %v4892_v31 = vsel %vm4878_vm7, %v4875_v27, %v4766_v28 }
0x108c   : > { %6548 = vmatprep.mubr.msk.bf16.mxu1 %vm4907_vm8, %v4892_v31 }
0x108d   : > { %6549 = vmatmul.mubr.msk.bf16.gmra.mxu1 %vm4907_vm8, %v4894_v30 }
0x108e   : > { %6552 = vmatprep.mubr.msk.bf16.mxu1 %vm4907_vm8, %v11381_v9 }
0x1095   : > { %6553 = vmatmul.mubr.msk.bf16.gmra.mxu1 %vm4907_vm8, %v11382_v56 }
0x1096   : > { %6556 = vmatprep.mubr.msk.bf16.mxu1 %vm4907_vm8, %v11383_v48 }
0x109d   : > { %6557 = vmatmul.mubr.msk.bf16.gmra.mxu1 %vm4907_vm8, %v11384_v5 }
0x109e   : > { %6560 = vmatprep.mubr.msk.bf16.mxu1 %vm4907_vm8, %v11385_v3 }
0x10a5   : > { %6561 = vmatmul.mubr.msk.bf16.gmra.mxu1 %vm4907_vm8, %v11386_v51 }
0x10a6   : > { %6564 = vmatprep.mubr.msk.bf16.mxu1 %vm4907_vm8, %v11387_v22 }
0x10ad   : > { %6565 = vmatmul.mubr.msk.bf16.gmra.mxu1 %vm4907_vm8, %v11388_v41 }
0x1135   : > { %v6538_v19 = vpop.f32.mrf.mxu1 }
0x1136   : > { %v5289_v46 = vadd.f32 %v6538_v19, %v5644_v40 }
0x1137   : > { %v4982_v2 = vpop.f32.mrf.mxu1 }
0x1138   : > { %5305 = vst [vmem:[%s10715_s9 + $0x10] sm:$0xff] %v5289_v46  ;;  %v5287_v14 = vadd.f32 %v5644_v40, %v4982_v2 }
0x1139   : > { %v6539_v17 = vpop.f32.mrf.mxu1 }
0x113a   : > { %5303 = vst [vmem:[%s10715_s9] sm:$0xff] %v5287_v14  ;;  %v5290_v45 = vadd.f32 %v6539_v17, %v5644_v40 }
0x113b   : > { %v4985_v35 = vpop.f32.mrf.mxu1 }
0x113c   : > { %5306 = vst [vmem:[%s10715_s9 + $0x18] sm:$0xff] %v5290_v45  ;;  %v5288_v32 = vadd.f32 %v5644_v40, %v4985_v35 }
0x113d   : > { %v6542_v7 = vpop.f32.mrf.mxu1 }
0x113e   : > { %5304 = vst [vmem:[%s10715_s9 + $0x8] sm:$0xff] %v5288_v32  ;;  %v5293_v18 = vadd.f32 %v6542_v7, %v5644_v40 }
0x113f   : > { %v4998_v61 = vpop.f32.mrf.mxu1 }
0x1140   : > { %5309 = vst [vmem:[%s10715_s9 + $0x30] sm:$0xff] %v5293_v18  ;;  %v5291_v59 = vadd.f32 %v5644_v40, %v4998_v61 }
0x1141   : > { %v6543_v58 = vpop.f32.mrf.mxu1 }
0x1142   : > { %5307 = vst [vmem:[%s10715_s9 + $0x20] sm:$0xff] %v5291_v59  ;;  %v5294_v42 = vadd.f32 %v6543_v58, %v5644_v40 }
0x1143   : > { %v5001_v4 = vpop.f32.mrf.mxu1 }
0x1144   : > { %5310 = vst [vmem:[%s10715_s9 + $0x38] sm:$0xff] %v5294_v42  ;;  %v5292_v49 = vadd.f32 %v5644_v40, %v5001_v4 }
0x1145   : > { %v6546_v36 = vpop.f32.mrf.mxu1 }
0x1146   : > { %5308 = vst [vmem:[%s10715_s9 + $0x28] sm:$0xff] %v5292_v49  ;;  %v5297_v24 = vadd.f32 %v6546_v36, %v5644_v40 }
0x1147   : > { %v5014_v39 = vpop.f32.mrf.mxu1 }
0x1148   : > { %5313 = vst [vmem:[%s10715_s9 + $0x50] sm:$0xff] %v5297_v24  ;;  %v5295_v29 = vadd.f32 %v5644_v40, %v5014_v39 }
0x1149   : > { %v6547_v16 = vpop.f32.mrf.mxu1 }
0x114a   : > { %5311 = vst [vmem:[%s10715_s9 + $0x40] sm:$0xff] %v5295_v29  ;;  %v5298_v53 = vadd.f32 %v6547_v16, %v5644_v40 }
0x114b   : > { %v5017_v0 = vpop.f32.mrf.mxu1 }
0x114c   : > { %5314 = vst [vmem:[%s10715_s9 + $0x58] sm:$0xff] %v5298_v53  ;;  %v5296_v12 = vadd.f32 %v5644_v40, %v5017_v0 }
0x114d   : > { %v6550_v43 = vpop.f32.mrf.mxu1 }
0x114e   : > { %5312 = vst [vmem:[%s10715_s9 + $0x48] sm:$0xff] %v5296_v12  ;;  %v5301_v8 = vadd.f32 %v6550_v43, %v5644_v40 }
0x114f   : > { %v5030_v55 = vpop.f32.mrf.mxu1 }
0x1150   : > { %5317 = vst [vmem:[%s10715_s9 + $0x70] sm:$0xff] %v5301_v8  ;;  %v5299_v57 = vadd.f32 %v5644_v40, %v5030_v55 }
0x1151   : > { %v6551_v15 = vpop.f32.mrf.mxu1 }
0x1152   : > { %5315 = vst [vmem:[%s10715_s9 + $0x60] sm:$0xff] %v5299_v57  ;;  %v5302_v33 = vadd.f32 %v6551_v15, %v5644_v40 }
0x1153   : > { %v5033_v52 = vpop.f32.mrf.mxu1 }
0x1154   : > { %5318 = vst [vmem:[%s10715_s9 + $0x78] sm:$0xff] %v5302_v33  ;;  %v5300_v63 = vadd.f32 %v5644_v40, %v5033_v52 }
0x1155   : > { %v6554_v47 = vpop.f32.mrf.mxu1 }
0x1156   : > { %5316 = vst [vmem:[%s10715_s9 + $0x68] sm:$0xff] %v5300_v63  ;;  %5321 = vst [vmem:[%s10746_s8 + $0x10] sm:$0xff] %v6554_v47 }
0x1157   : > { %v5046_v26 = vpop.f32.mrf.mxu1 }
0x1158   : > { %7446 = shalt.err (!%p7443_p5)
}
0x1159   : > { %s7447_s17 = scalar_lea.hbm %s10738_s21, 2048  ;;  %s7451_s22 = scalar_lea.hbm %s10853_s6, 4096 }
0x115a   : > { %p7448_p10 = scmp.ne.s32.totalorder %s10738_s21, %s7447_s17  ;;  %p7452_p6 = scmp.lt.s32.totalorder %s10738_s21, %s10853_s6 }
0x115b   : > { %p7453_p3 = scmp.lt.s32.totalorder %s7451_s22, %s7447_s17 }
0x115c   : > { %p7449_p12 = pnand %p7448_p10, %p7740_p0 }
0x115d   : > { %p7454_p9 = por %p7453_p3, %p7452_p6 }
0x115e   : > { %p7450_p7 = pneg %p7449_p12 }
0x1160   : > { %p7455_p1 = pnand %p7454_p9, %p7450_p7 }
0x1162   : > { %7458 = shalt.err (!%p7455_p1)
}
0x1163   : > { %s7575_s18 = smov 128   ;;  %5319 = vst [vmem:[%s10746_s8] sm:$0xff] %v5046_v26  ;;  %v6555_v11 = vpop.f32.mrf.mxu1  ;;  %s10795_s20 = scalar_lea.hbm %s10854_s7, %s5654_s11 }
0x1164   : > { %6666 = dma.vmem_to_hbm [thread:$0]  (%p7740_p0), %s10741_s13, 2048, %s10738_s21, %s5336_s23, %s7575_s18, %s7575_s18, %s7568_s16  }
0x1165   : > { %5322 = vst [vmem:[%s10746_s8 + $0x18] sm:$0xff] %v6555_v11  ;;  %v5049_v54 = vpop.f32.mrf.mxu1  ;;  %s5370_s13 = sshll.u32 %s10746_s8, 4  ;;  %s5341_s1 = scalar_lea.sflag [#allocation14], %s7770_s30  ;;  %s10797_s13 = int_to_ptr.vmem [resolvable:$true] %s5370_s13 }
0x1166   : > { %5320 = vst [vmem:[%s10746_s8 + $0x8] sm:$0xff] %v5049_v54  ;;  %s7459_s17 = scalar_lea.vmem %s10797_s13, 2048  ;;  %s7576_s2 = smov [#allocation13]  }
0x1167   : > { %v6558_v13 = vpop.f32.mrf.mxu1  ;;  %p7460_p4 = scmp.ne.s32.totalorder %s10797_s13, %s7459_s17  ;;  %s7463_s27 = sshll.u32 %s7576_s2, 4  ;;  %s7464_s27 = int_to_ptr.vmem [resolvable:$false] %s7463_s27 }
0x1168   : > { %5325 = vst [vmem:[%s10746_s8 + $0x30] sm:$0xff] %v6558_v13  ;;  %s7465_s9 = scalar_lea.vmem %s7464_s27, 4096  ;;  %p7466_p11 = scmp.lt.s32.totalorder %s10797_s13, %s7464_s27 }
0x1169   : > { %v5062_v21 = vpop.f32.mrf.mxu1  ;;  %p7461_p8 = pnand %p7460_p4, %p7740_p0  ;;  %p7467_p2 = scmp.lt.s32.totalorder %s7465_s9, %s7459_s17 }
0x116a   : > { %5323 = vst [vmem:[%s10746_s8 + $0x20] sm:$0xff] %v5062_v21 }
0x116b   : > { %v6559_v6 = vpop.f32.mrf.mxu1  ;;  %p7462_p13 = pneg %p7461_p8  ;;  %p7468_p5 = por %p7467_p2, %p7466_p11 }
0x116c   : > { %5326 = vst [vmem:[%s10746_s8 + $0x38] sm:$0xff] %v6559_v6 }
0x116d   : > { %v5065_v60 = vpop.f32.mrf.mxu1  ;;  %p7469_p10 = pnand %p7468_p5, %p7462_p13 }
0x116e   : > { %5324 = vst [vmem:[%s10746_s8 + $0x28] sm:$0xff] %v5065_v60 }
0x116f   : > { %v6562_v1 = vpop.f32.mrf.mxu1 }
0x1170   : > { %5329 = vst [vmem:[%s10746_s8 + $0x50] sm:$0xff] %v6562_v1 }
0x1171   : > { %v5078_v34 = vpop.f32.mrf.mxu1 }
0x1172   : > { %5327 = vst [vmem:[%s10746_s8 + $0x40] sm:$0xff] %v5078_v34 }
0x1173   : > { %v6563_v37 = vpop.f32.mrf.mxu1 }
0x1174   : > { %5330 = vst [vmem:[%s10746_s8 + $0x58] sm:$0xff] %v6563_v37 }
0x1175   : > { %v5081_v50 = vpop.f32.mrf.mxu1 }
0x1176   : > { %5328 = vst [vmem:[%s10746_s8 + $0x48] sm:$0xff] %v5081_v50 }
0x1177   : > { %v6566_v25 = vpop.f32.mrf.mxu1 }
0x1178   : > { %5333 = vst [vmem:[%s10746_s8 + $0x70] sm:$0xff] %v6566_v25 }
0x1179   : > { %v5094_v38 = vpop.f32.mrf.mxu1 }
0x117a   : > { %5331 = vst [vmem:[%s10746_s8 + $0x60] sm:$0xff] %v5094_v38 }
0x117b   : > { %v6567_v44 = vpop.f32.mrf.mxu1 }
0x117c   : > { %5334 = vst [vmem:[%s10746_s8 + $0x78] sm:$0xff] %v6567_v44 }
0x117d   : > { %v5097_v23 = vpop.f32.mrf.mxu1 }
0x117e   : > { %5332 = vst [vmem:[%s10746_s8 + $0x68] sm:$0xff] %v5097_v23 }
0x117f   : > { %7472 = shalt.err (!%p7469_p10)
}
0x1180   : > { %s7473_s11 = scalar_lea.hbm %s10795_s20, 2048  ;;  %s7477_s22 = scalar_lea.hbm %s10854_s7, 4096 }
0x1181   : > { %p7474_p12 = scmp.ne.s32.totalorder %s10795_s20, %s7473_s11  ;;  %p7478_p3 = scmp.lt.s32.totalorder %s10795_s20, %s10854_s7 }
0x1182   : > { %p7479_p9 = scmp.lt.s32.totalorder %s7477_s22, %s7473_s11 }
0x1183   : > { %p7475_p7 = pnand %p7474_p12, %p7740_p0 }
0x1184   : > { %p7480_p1 = por %p7479_p9, %p7478_p3 }
0x1185   : > { %p7476_p6 = pneg %p7475_p7 }
0x1187   : > { %p7481_p4 = pnand %p7480_p1, %p7476_p6 }
0x1189   : > { %7484 = shalt.err (!%p7481_p4)
}
0x118a   : > { %6667 = dma.vmem_to_hbm [thread:$0]  (%p7740_p0), %s10797_s13, 2048, %s10795_s20, %s5341_s1, %s7575_s18, %s7575_s18, %s7568_s16  }
0x118b PF: > { %s5385_s21 = sand.u32 1, %s7531_s24   ;;  %p11389_p8 = scmp.ne.s32.totalorder %s10955_s12, 0 }
0x118c   : > { %p11390_p13 = scmp.ge.s32.totalorder %s7551_s29, 2  ;;  %s5386_s23 = scalar_lea.sflag [#allocation5], %s5385_s21 }
0x118e   : > { %p6688_p11 = pnand %p11390_p13, %p11389_p8 }
0x1190   : > { %p6689_p2 = pneg %p6688_p11 }
0x1192   : > { %7522 = dma.done.wait (%p6689_p2), %s5386_s23, 2048  }
0x1193   : > { %7524 = vsyncadd (%p6689_p2), %s5386_s23, 4294965248  ;;  %s5395_s17 = scalar_lea.sflag [#allocation14], %s5385_s21 }
0x1194   : > { %7526 = dma.done.wait (%p6689_p2), %s5395_s17, 2048  }
0x1195   : > { %7528 = vsyncadd (%p6689_p2), %s5395_s17, 4294965248  ;;  %s29_s29 = sadd.s32 1, %s7551_s29   ;;  %s11391_s24 = smov %s7535_s25 }
0x1196   : > { %p26_p5 = scmp.ge.s32.totalorder %s29_s29, 4   ;;  %s11392_s25 = smov %s7539_s26 }
0x1197   : > { %s11393_s26 = smov %s7749_s14  ;;  %s11394_s27 = smov %s7547_s28 }
0x1198   : > { %s11395_s28 = smov %s11397_s19  ;;  %28 = sbr.rel (!%p26_p5) target bundleno = 14 (0xe), region = 138 }
0x119d   :  { %5400 = vsyncpa [#allocation4], 1 }
0x119e   :  { %5402 = vsyncpa [#allocation4 + $0x1], 1 }
0x119f   :  { %5403 = vsyncpa [#allocation7], 1 }
0x11a0   :  { %5404 = vsyncpa [#allocation10], 1 }
0x11a1   :  { %5405 = vsyncpa [#allocation5], 1 }
0x11a2   :  { %5407 = vsyncpa [#allocation5 + $0x1], 1 }
0x11a3   :  { %5408 = vsyncpa [#allocation14], 1 }
0x11a4   :  { %5410 = vsyncpa [#allocation14 + $0x1], 1 }

</bundles_post_ra>
